<compile_context>
chip_gen: v6e
topology: v6e:2x2x1
jax: 0.10.0
libtpu: 0.0.40
codegen_flags: <defaults>
</compile_context>

<pallas_src>
import jax
import jax.numpy as jnp
import numpy as np
from jax.experimental import pallas as pl
from jax.experimental.pallas import tpu as pltpu

COUT = 32
EPS = 1e-5


def make_cfe_kernel(H, W, Cin, Nb):
    Wout = (W - 3) // 2 + 1  # MaxPool2d(kernel=(1,3), stride=(1,2)), no padding

    def kernel(xp_ref, w1_ref, w2_ref, w3_ref, b_ref, out_ref,
               a1_ref, pad_ref, acc_ref):
        b1 = b_ref[0:1, :]                                   # (1, 32) each
        b2 = b_ref[1:2, :]
        b3 = b_ref[2:3, :]

        # ---- conv1 (3x3 'same') + bn1 + relu: ONE im2col matmul for all Nb images ----
        x_all = xp_ref[...].reshape(Nb * W * H, 9 * Cin)
        a1_ref[...] = jnp.maximum(
            jnp.dot(x_all, w1_ref[...], preferred_element_type=jnp.float32) + b1, 0.0)

        # ---- zero the pad-scratch border ONCE per grid step (interior stores below ----
        # ---- never touch it; re-done every step so a megacore grid split is safe) ----
        zrow = jnp.zeros((1, H + 2, COUT), jnp.float32)
        pad_ref[0:1, :, :] = zrow
        pad_ref[W + 1:W + 2, :, :] = zrow
        zcol = jnp.zeros((W + 2, 1, COUT), jnp.float32)
        pad_ref[:, 0:1, :] = zcol
        pad_ref[:, H + 1:H + 2, :] = zcol

        for i in range(Nb):
            a1 = a1_ref[i * W * H:(i + 1) * W * H, :].reshape(W, H, COUT)
            pad_ref[1:W + 1, 1:H + 1, :] = a1

            # ---- conv2 (3x3 'same') + bn2 + relu: 9 accumulating K=32 matmuls read ----
            # ---- straight from the padded scratch (no im2col buffer).              ----
            for dy in range(3):
                for dx in range(3):
                    k = dy * 3 + dx
                    tap = pad_ref[dx:dx + W, dy:dy + H, :].reshape(W * H, COUT)
                    contrib = jnp.dot(tap, w2_ref[k],
                                      preferred_element_type=jnp.float32)
                    if k == 0:
                        acc_ref[...] = contrib
                    else:
                        acc_ref[...] += contrib
            a2 = jnp.maximum(acc_ref[...] + b2, 0.0).reshape(W, H, COUT)

            # ---- maxpool (1,3)/(1,2) along W (leading dim), vectorized ----
            pairs = a2[0:2 * Wout].reshape(Wout, 2, H, COUT)
            m01 = jnp.maximum(pairs[:, 0], pairs[:, 1])          # a2[2wo], a2[2wo+1]
            third = a2[1:2 * Wout + 1].reshape(Wout, 2, H, COUT)[:, 1]   # a2[2wo+2]
            pooled = jnp.maximum(m01, third).reshape(Wout * H, COUT)

            # ---- conv3 (1x1) + bn3 + relu ----
            y = jnp.dot(pooled, w3_ref[...], preferred_element_type=jnp.float32)
            out_ref[i, :, :] = jnp.maximum(y + b3, 0.0)

    return kernel, Wout


def _choose_batch_block(N):
    """Images per grid step: amortize per-step overhead but keep >=2 steps (v7x TCs)."""
    for cand in range(min(8, max(N // 2, 1)), 0, -1):
        if N % cand == 0:
            return cand
    return 1


def cfe_block(x_nhwc, params):
    N, H, W, Cin = x_nhwc.shape
    assert W >= 3, "maxpool(1,3) needs W >= 3"
    w1, w2, w3, sb1, sb2, sb3 = params
    nb = _choose_batch_block(N)
    kernel, Wout = make_cfe_kernel(H, W, Cin, nb)

    # Fold BN scale into the conv weights (per output channel); bias stays as an add.
    w1s = (w1 * sb1[0]).reshape(9 * Cin, COUT).astype(jnp.float32)
    w2s = (w2 * sb2[0]).reshape(9, COUT, COUT).astype(jnp.float32)
    w3s = (w3 * sb3[0]).astype(jnp.float32)
    bias = jnp.concatenate([sb1[1:2], sb2[1:2], sb3[1:2]], axis=0)      # (3, 32)

    # conv1 im2col, precomputed in the wrapper.  Rows are W-major ((w, h) order) so the
    # in-kernel maxpool windows become leading-dim slices.
    xp = jnp.pad(x_nhwc, ((0, 0), (1, 1), (1, 1), (0, 0)))
    taps = [xp[:, dy:dy + H, dx:dx + W, :] for dy in range(3) for dx in range(3)]
    pat = jnp.concatenate(taps, axis=-1)                                # (N, H, W, 9*Cin)
    x_patches = pat.transpose(0, 2, 1, 3).reshape(N, W * H, 9 * Cin)

    flat = pl.pallas_call(
        kernel,
        out_shape=jax.ShapeDtypeStruct((N, Wout * H, COUT), jnp.float32),
        grid=(N // nb,),
        in_specs=[
            pl.BlockSpec((nb, W * H, 9 * Cin), lambda b: (b, 0, 0)),
            pl.BlockSpec((9 * Cin, COUT), lambda b: (0, 0)),
            pl.BlockSpec((9, COUT, COUT), lambda b: (0, 0, 0)),
            pl.BlockSpec((COUT, COUT), lambda b: (0, 0)),
            pl.BlockSpec((3, COUT), lambda b: (0, 0)),
        ],
        out_specs=pl.BlockSpec((nb, Wout * H, COUT), lambda b: (b, 0, 0)),
        scratch_shapes=[
            pltpu.VMEM((nb * W * H, COUT), jnp.float32),    # conv1 activations (Nb imgs)
            pltpu.VMEM((W + 2, H + 2, COUT), jnp.float32),  # zero-padded a1 (one image)
            pltpu.VMEM((W * H, COUT), jnp.float32),         # conv2 f32 accumulator
        ],
        compiler_params=pltpu.CompilerParams(
            dimension_semantics=("parallel",),
            vmem_limit_bytes=32 * 1024 * 1024,
        ),
    )(x_patches, w1s, w2s, w3s, bias)

    # rows are (w_out, h); back to NHWC.
    return flat.reshape(N, Wout, H, COUT).transpose(0, 2, 1, 3)


def fold_bn(conv_bias, gamma, beta, mean, var):
    scale = gamma / jnp.sqrt(var + EPS)
    bias = beta + (conv_bias - mean) * scale
    return jnp.stack([scale, bias], axis=0).astype(jnp.float32)  # (2, COUT)


def init_params(key, Cin):
    ks = jax.random.split(key, 18)

    def conv_w(k, kh, kw, cin, cout):
        bound = 1.0 / np.sqrt(cin * kh * kw)
        return jax.random.uniform(k, (kh, kw, cin, cout), jnp.float32, -bound, bound)

    def conv_b(k, kh, kw, cin, cout):
        bound = 1.0 / np.sqrt(cin * kh * kw)
        return jax.random.uniform(k, (cout,), jnp.float32, -bound, bound)

    def bn_stats(k1, k2, k3, k4):
        gamma = jax.random.uniform(k1, (COUT,), jnp.float32, 0.5, 1.5)
        beta = jax.random.uniform(k2, (COUT,), jnp.float32, -0.5, 0.5)
        mean = 0.1 * jax.random.normal(k3, (COUT,), jnp.float32)
        var = jax.random.uniform(k4, (COUT,), jnp.float32, 0.5, 1.5)
        return gamma, beta, mean, var

    w1 = conv_w(ks[0], 3, 3, Cin, COUT)
    cb1 = conv_b(ks[1], 3, 3, Cin, COUT)
    w2 = conv_w(ks[2], 3, 3, COUT, COUT)
    cb2 = conv_b(ks[3], 3, 3, COUT, COUT)
    w3 = conv_w(ks[4], 1, 1, COUT, COUT)[0, 0]      # (COUT, COUT) for the 1x1 conv
    cb3 = conv_b(ks[5], 1, 1, COUT, COUT)

    sb1 = fold_bn(cb1, *bn_stats(ks[6], ks[7], ks[8], ks[9]))
    sb2 = fold_bn(cb2, *bn_stats(ks[10], ks[11], ks[12], ks[13]))
    sb3 = fold_bn(cb3, *bn_stats(ks[14], ks[15], ks[16], ks[17]))
    return (w1, w2, w3, sb1, sb2, sb3)


def ref_forward(x, w1, w2, w3, sb1, sb2, sb3):
    """Pure-JAX reference with identical semantics (NHWC)."""
    def conv(x, w, padding):
        return jax.lax.conv_general_dilated(
            x, w, window_strides=(1, 1), padding=padding,
            dimension_numbers=("NHWC", "HWIO", "NHWC"))

    def affine_relu(x, sb):
        return jax.nn.relu(x * sb[0] + sb[1])

    a1 = affine_relu(conv(x, w1, "SAME"), sb1)
    a2 = affine_relu(conv(a1, w2, "SAME"), sb2)
    pooled = jax.lax.reduce_window(a2, -jnp.inf, jax.lax.max,
                                   (1, 1, 3, 1), (1, 1, 2, 1), "VALID")
    y = affine_relu(conv(pooled, w3[None, None], "SAME"), sb3)
    return y


if __name__ == "__main__":
    N, Cin, H, W = 2, 4, 16, 16        # PyTorch NCHW x: (2, 4, 16, 16)
    key = jax.random.PRNGKey(0)
    kx, kp = jax.random.split(key)
    x_nhwc = jax.random.normal(kx, (N, H, W, Cin), jnp.float32)
    params = init_params(kp, Cin)

    out = cfe_block(x_nhwc, params)
    out = jax.block_until_ready(out)

    ref = ref_forward(x_nhwc, *params)
    np.testing.assert_allclose(np.asarray(out), np.asarray(ref), rtol=1e-4, atol=1e-4)
    print("KERNEL_OK")
</pallas_src>

<mosaic_0001>
module attributes {stable_mosaic.version = 11 : i64} {
  func.func @kernel(%arg0: i32, %arg1: memref<1x256x36xf32, #tpu.memory_space<vmem>>, %arg2: memref<36x32xf32, #tpu.memory_space<vmem>>, %arg3: memref<9x32x32xf32, #tpu.memory_space<vmem>>, %arg4: memref<32x32xf32, #tpu.memory_space<vmem>>, %arg5: memref<3x32xf32, #tpu.memory_space<vmem>>, %arg6: memref<1x112x32xf32, #tpu.memory_space<vmem>>, %arg7: memref<256x32xf32, #tpu.memory_space<vmem>>, %arg8: memref<18x18x32xf32, #tpu.memory_space<vmem>>, %arg9: memref<256x32xf32, #tpu.memory_space<vmem>>) attributes {dimension_semantics = [#tpu.dimension_semantics<parallel>], iteration_bounds = array<i64: 2>, scalar_prefetch = 0 : i64, scratch_operands = 3 : i64, tpu.core_type = #tpu.core_type<tc>, window_params = [{transform_indices = @transform_0, window_bounds = array<i64: 1, 256, 36>}, {pipeline_mode = #tpu.pipeline_mode<synchronous>, transform_indices = @transform_1, window_bounds = array<i64: 36, 32>}, {pipeline_mode = #tpu.pipeline_mode<synchronous>, transform_indices = @transform_2, window_bounds = array<i64: 9, 32, 32>}, {pipeline_mode = #tpu.pipeline_mode<synchronous>, transform_indices = @transform_3, window_bounds = array<i64: 32, 32>}, {pipeline_mode = #tpu.pipeline_mode<synchronous>, transform_indices = @transform_4, window_bounds = array<i64: 3, 32>}, {transform_indices = @transform_5, window_bounds = array<i64: 1, 112, 32>}]} {
    %c0 = arith.constant 0 : index
    %c0_0 = arith.constant 0 : index
    %0 = vector.load %arg5[%c0, %c0_0] : memref<3x32xf32, #tpu.memory_space<vmem>>, vector<1x32xf32>
    %c1 = arith.constant 1 : index
    %c0_1 = arith.constant 0 : index
    %1 = vector.load %arg5[%c1, %c0_1] : memref<3x32xf32, #tpu.memory_space<vmem>>, vector<1x32xf32>
    %c2 = arith.constant 2 : index
    %c0_2 = arith.constant 0 : index
    %2 = vector.load %arg5[%c2, %c0_2] : memref<3x32xf32, #tpu.memory_space<vmem>>, vector<1x32xf32>
    %c0_3 = arith.constant 0 : index
    %c0_4 = arith.constant 0 : index
    %c0_5 = arith.constant 0 : index
    %3 = vector.load %arg1[%c0_3, %c0_4, %c0_5] : memref<1x256x36xf32, #tpu.memory_space<vmem>>, vector<1x256x36xf32>
    %4 = vector.shape_cast %3 : vector<1x256x36xf32> to vector<256x36xf32>
    %c0_6 = arith.constant 0 : index
    %c0_7 = arith.constant 0 : index
    %5 = vector.load %arg2[%c0_6, %c0_7] : memref<36x32xf32, #tpu.memory_space<vmem>>, vector<36x32xf32>
    %cst = arith.constant dense<0.000000e+00> : vector<256x32xf32>
    %6 = tpu.matmul %4, %5, %cst {dimension_numbers = #tpu.dot_dimension_numbers<[1], [0], [0], [1], [0, 0, 1, 1], [], []>} : vector<256x36xf32>, vector<36x32xf32>, vector<256x32xf32> -> vector<256x32xf32>
    %7 = vector.broadcast %0 : vector<1x32xf32> to vector<256x32xf32>
    %8 = arith.addf %6, %7 : vector<256x32xf32>
    %cst_8 = arith.constant 0.000000e+00 : f32
    %9 = vector.broadcast %cst_8 : f32 to vector<256x32xf32>
    %10 = arith.maximumf %8, %9 : vector<256x32xf32>
    %c0_9 = arith.constant 0 : index
    %c0_10 = arith.constant 0 : index
    %11 = vector.load %arg7[%c0_9, %c0_10] : memref<256x32xf32, #tpu.memory_space<vmem>>, vector<256x32xf32>
    tpu.vector_store %arg7[%c0_9, %c0_10], %10 {strides = array<i32>} : memref<256x32xf32, #tpu.memory_space<vmem>>, vector<256x32xf32>,
    %cst_11 = arith.constant 0.000000e+00 : f32
    %12 = vector.broadcast %cst_11 : f32 to vector<1x18x32xf32>
    %c0_12 = arith.constant 0 : index
    %c0_13 = arith.constant 0 : index
    %c0_14 = arith.constant 0 : index
    %13 = vector.load %arg8[%c0_12, %c0_13, %c0_14] : memref<18x18x32xf32, #tpu.memory_space<vmem>>, vector<1x18x32xf32>
    tpu.vector_store %arg8[%c0_12, %c0_13, %c0_14], %12 {strides = array<i32>} : memref<18x18x32xf32, #tpu.memory_space<vmem>>, vector<1x18x32xf32>,
    %c17 = arith.constant 17 : index
    %c0_15 = arith.constant 0 : index
    %c0_16 = arith.constant 0 : index
    %14 = vector.load %arg8[%c17, %c0_15, %c0_16] : memref<18x18x32xf32, #tpu.memory_space<vmem>>, vector<1x18x32xf32>
    tpu.vector_store %arg8[%c17, %c0_15, %c0_16], %12 {strides = array<i32>} : memref<18x18x32xf32, #tpu.memory_space<vmem>>, vector<1x18x32xf32>,
    %cst_17 = arith.constant 0.000000e+00 : f32
    %15 = vector.broadcast %cst_17 : f32 to vector<18x1x32xf32>
    %c0_18 = arith.constant 0 : index
    %c0_19 = arith.constant 0 : index
    %c0_20 = arith.constant 0 : index
    %16 = vector.load %arg8[%c0_18, %c0_19, %c0_20] : memref<18x18x32xf32, #tpu.memory_space<vmem>>, vector<18x1x32xf32>
    tpu.vector_store %arg8[%c0_18, %c0_19, %c0_20], %15 {strides = array<i32>} : memref<18x18x32xf32, #tpu.memory_space<vmem>>, vector<18x1x32xf32>,
    %c0_21 = arith.constant 0 : index
    %c17_22 = arith.constant 17 : index
    %c0_23 = arith.constant 0 : index
    %17 = vector.load %arg8[%c0_21, %c17_22, %c0_23] : memref<18x18x32xf32, #tpu.memory_space<vmem>>, vector<18x1x32xf32>
    tpu.vector_store %arg8[%c0_21, %c17_22, %c0_23], %15 {strides = array<i32>} : memref<18x18x32xf32, #tpu.memory_space<vmem>>, vector<18x1x32xf32>,
    %c0_24 = arith.constant 0 : index
    %c0_25 = arith.constant 0 : index
    %18 = vector.load %arg7[%c0_24, %c0_25] : memref<256x32xf32, #tpu.memory_space<vmem>>, vector<256x32xf32>
    %19 = vector.shape_cast %18 : vector<256x32xf32> to vector<16x16x32xf32>
    %c1_26 = arith.constant 1 : index
    %c1_27 = arith.constant 1 : index
    %c0_28 = arith.constant 0 : index
    %20 = vector.load %arg8[%c1_26, %c1_27, %c0_28] : memref<18x18x32xf32, #tpu.memory_space<vmem>>, vector<16x16x32xf32>
    tpu.vector_store %arg8[%c1_26, %c1_27, %c0_28], %19 {strides = array<i32>} : memref<18x18x32xf32, #tpu.memory_space<vmem>>, vector<16x16x32xf32>,
    %c0_29 = arith.constant 0 : index
    %c0_30 = arith.constant 0 : index
    %c0_31 = arith.constant 0 : index
    %21 = vector.load %arg8[%c0_29, %c0_30, %c0_31] : memref<18x18x32xf32, #tpu.memory_space<vmem>>, vector<16x16x32xf32>
    %22 = vector.shape_cast %21 : vector<16x16x32xf32> to vector<256x32xf32>
    %c0_32 = arith.constant 0 : index
    %c0_33 = arith.constant 0 : index
    %c0_34 = arith.constant 0 : index
    %23 = vector.load %arg3[%c0_32, %c0_33, %c0_34] : memref<9x32x32xf32, #tpu.memory_space<vmem>>, vector<1x32x32xf32>
    %24 = vector.shape_cast %23 : vector<1x32x32xf32> to vector<32x32xf32>
    %cst_35 = arith.constant dense<0.000000e+00> : vector<256x32xf32>
    %25 = tpu.matmul %22, %24, %cst_35 {dimension_numbers = #tpu.dot_dimension_numbers<[1], [0], [0], [1], [0, 0, 1, 1], [], []>} : vector<256x32xf32>, vector<32x32xf32>, vector<256x32xf32> -> vector<256x32xf32>
    %c0_36 = arith.constant 0 : index
    %c0_37 = arith.constant 0 : index
    %26 = vector.load %arg9[%c0_36, %c0_37] : memref<256x32xf32, #tpu.memory_space<vmem>>, vector<256x32xf32>
    tpu.vector_store %arg9[%c0_36, %c0_37], %25 {strides = array<i32>} : memref<256x32xf32, #tpu.memory_space<vmem>>, vector<256x32xf32>,
    %c1_38 = arith.constant 1 : index
    %c0_39 = arith.constant 0 : index
    %c0_40 = arith.constant 0 : index
    %27 = vector.load %arg8[%c1_38, %c0_39, %c0_40] : memref<18x18x32xf32, #tpu.memory_space<vmem>>, vector<16x16x32xf32>
    %28 = vector.shape_cast %27 : vector<16x16x32xf32> to vector<256x32xf32>
    %c1_41 = arith.constant 1 : index
    %c0_42 = arith.constant 0 : index
    %c0_43 = arith.constant 0 : index
    %29 = vector.load %arg3[%c1_41, %c0_42, %c0_43] : memref<9x32x32xf32, #tpu.memory_space<vmem>>, vector<1x32x32xf32>
    %30 = vector.shape_cast %29 : vector<1x32x32xf32> to vector<32x32xf32>
    %cst_44 = arith.constant dense<0.000000e+00> : vector<256x32xf32>
    %31 = tpu.matmul %28, %30, %cst_44 {dimension_numbers = #tpu.dot_dimension_numbers<[1], [0], [0], [1], [0, 0, 1, 1], [], []>} : vector<256x32xf32>, vector<32x32xf32>, vector<256x32xf32> -> vector<256x32xf32>
    %c0_45 = arith.constant 0 : index
    %c0_46 = arith.constant 0 : index
    %32 = vector.load %arg9[%c0_45, %c0_46] : memref<256x32xf32, #tpu.memory_space<vmem>>, vector<256x32xf32>
    %33 = arith.addf %32, %31 : vector<256x32xf32>
    %c0_47 = arith.constant 0 : index
    %c0_48 = arith.constant 0 : index
    %34 = vector.load %arg9[%c0_47, %c0_48] : memref<256x32xf32, #tpu.memory_space<vmem>>, vector<256x32xf32>
    tpu.vector_store %arg9[%c0_47, %c0_48], %33 {strides = array<i32>} : memref<256x32xf32, #tpu.memory_space<vmem>>, vector<256x32xf32>,
    %c2_49 = arith.constant 2 : index
    %c0_50 = arith.constant 0 : index
    %c0_51 = arith.constant 0 : index
    %35 = vector.load %arg8[%c2_49, %c0_50, %c0_51] : memref<18x18x32xf32, #tpu.memory_space<vmem>>, vector<16x16x32xf32>
    %36 = vector.shape_cast %35 : vector<16x16x32xf32> to vector<256x32xf32>
    %c2_52 = arith.constant 2 : index
    %c0_53 = arith.constant 0 : index
    %c0_54 = arith.constant 0 : index
    %37 = vector.load %arg3[%c2_52, %c0_53, %c0_54] : memref<9x32x32xf32, #tpu.memory_space<vmem>>, vector<1x32x32xf32>
    %38 = vector.shape_cast %37 : vector<1x32x32xf32> to vector<32x32xf32>
    %cst_55 = arith.constant dense<0.000000e+00> : vector<256x32xf32>
    %39 = tpu.matmul %36, %38, %cst_55 {dimension_numbers = #tpu.dot_dimension_numbers<[1], [0], [0], [1], [0, 0, 1, 1], [], []>} : vector<256x32xf32>, vector<32x32xf32>, vector<256x32xf32> -> vector<256x32xf32>
    %c0_56 = arith.constant 0 : index
    %c0_57 = arith.constant 0 : index
    %40 = vector.load %arg9[%c0_56, %c0_57] : memref<256x32xf32, #tpu.memory_space<vmem>>, vector<256x32xf32>
    %41 = arith.addf %40, %39 : vector<256x32xf32>
    %c0_58 = arith.constant 0 : index
    %c0_59 = arith.constant 0 : index
    %42 = vector.load %arg9[%c0_58, %c0_59] : memref<256x32xf32, #tpu.memory_space<vmem>>, vector<256x32xf32>
    tpu.vector_store %arg9[%c0_58, %c0_59], %41 {strides = array<i32>} : memref<256x32xf32, #tpu.memory_space<vmem>>, vector<256x32xf32>,
    %c0_60 = arith.constant 0 : index
    %c1_61 = arith.constant 1 : index
    %c0_62 = arith.constant 0 : index
    %43 = vector.load %arg8[%c0_60, %c1_61, %c0_62] : memref<18x18x32xf32, #tpu.memory_space<vmem>>, vector<16x16x32xf32>
    %44 = vector.shape_cast %43 : vector<16x16x32xf32> to vector<256x32xf32>
    %c3 = arith.constant 3 : index
    %c0_63 = arith.constant 0 : index
    %c0_64 = arith.constant 0 : index
    %45 = vector.load %arg3[%c3, %c0_63, %c0_64] : memref<9x32x32xf32, #tpu.memory_space<vmem>>, vector<1x32x32xf32>
    %46 = vector.shape_cast %45 : vector<1x32x32xf32> to vector<32x32xf32>
    %cst_65 = arith.constant dense<0.000000e+00> : vector<256x32xf32>
    %47 = tpu.matmul %44, %46, %cst_65 {dimension_numbers = #tpu.dot_dimension_numbers<[1], [0], [0], [1], [0, 0, 1, 1], [], []>} : vector<256x32xf32>, vector<32x32xf32>, vector<256x32xf32> -> vector<256x32xf32>
    %c0_66 = arith.constant 0 : index
    %c0_67 = arith.constant 0 : index
    %48 = vector.load %arg9[%c0_66, %c0_67] : memref<256x32xf32, #tpu.memory_space<vmem>>, vector<256x32xf32>
    %49 = arith.addf %48, %47 : vector<256x32xf32>
    %c0_68 = arith.constant 0 : index
    %c0_69 = arith.constant 0 : index
    %50 = vector.load %arg9[%c0_68, %c0_69] : memref<256x32xf32, #tpu.memory_space<vmem>>, vector<256x32xf32>
    tpu.vector_store %arg9[%c0_68, %c0_69], %49 {strides = array<i32>} : memref<256x32xf32, #tpu.memory_space<vmem>>, vector<256x32xf32>,
    %c1_70 = arith.constant 1 : index
    %c1_71 = arith.constant 1 : index
    %c0_72 = arith.constant 0 : index
    %51 = vector.load %arg8[%c1_70, %c1_71, %c0_72] : memref<18x18x32xf32, #tpu.memory_space<vmem>>, vector<16x16x32xf32>
    %52 = vector.shape_cast %51 : vector<16x16x32xf32> to vector<256x32xf32>
    %c4 = arith.constant 4 : index
    %c0_73 = arith.constant 0 : index
    %c0_74 = arith.constant 0 : index
    %53 = vector.load %arg3[%c4, %c0_73, %c0_74] : memref<9x32x32xf32, #tpu.memory_space<vmem>>, vector<1x32x32xf32>
    %54 = vector.shape_cast %53 : vector<1x32x32xf32> to vector<32x32xf32>
    %cst_75 = arith.constant dense<0.000000e+00> : vector<256x32xf32>
    %55 = tpu.matmul %52, %54, %cst_75 {dimension_numbers = #tpu.dot_dimension_numbers<[1], [0], [0], [1], [0, 0, 1, 1], [], []>} : vector<256x32xf32>, vector<32x32xf32>, vector<256x32xf32> -> vector<256x32xf32>
    %c0_76 = arith.constant 0 : index
    %c0_77 = arith.constant 0 : index
    %56 = vector.load %arg9[%c0_76, %c0_77] : memref<256x32xf32, #tpu.memory_space<vmem>>, vector<256x32xf32>
    %57 = arith.addf %56, %55 : vector<256x32xf32>
    %c0_78 = arith.constant 0 : index
    %c0_79 = arith.constant 0 : index
    %58 = vector.load %arg9[%c0_78, %c0_79] : memref<256x32xf32, #tpu.memory_space<vmem>>, vector<256x32xf32>
    tpu.vector_store %arg9[%c0_78, %c0_79], %57 {strides = array<i32>} : memref<256x32xf32, #tpu.memory_space<vmem>>, vector<256x32xf32>,
    %c2_80 = arith.constant 2 : index
    %c1_81 = arith.constant 1 : index
    %c0_82 = arith.constant 0 : index
    %59 = vector.load %arg8[%c2_80, %c1_81, %c0_82] : memref<18x18x32xf32, #tpu.memory_space<vmem>>, vector<16x16x32xf32>
    %60 = vector.shape_cast %59 : vector<16x16x32xf32> to vector<256x32xf32>
    %c5 = arith.constant 5 : index
    %c0_83 = arith.constant 0 : index
    %c0_84 = arith.constant 0 : index
    %61 = vector.load %arg3[%c5, %c0_83, %c0_84] : memref<9x32x32xf32, #tpu.memory_space<vmem>>, vector<1x32x32xf32>
    %62 = vector.shape_cast %61 : vector<1x32x32xf32> to vector<32x32xf32>
    %cst_85 = arith.constant dense<0.000000e+00> : vector<256x32xf32>
    %63 = tpu.matmul %60, %62, %cst_85 {dimension_numbers = #tpu.dot_dimension_numbers<[1], [0], [0], [1], [0, 0, 1, 1], [], []>} : vector<256x32xf32>, vector<32x32xf32>, vector<256x32xf32> -> vector<256x32xf32>
    %c0_86 = arith.constant 0 : index
    %c0_87 = arith.constant 0 : index
    %64 = vector.load %arg9[%c0_86, %c0_87] : memref<256x32xf32, #tpu.memory_space<vmem>>, vector<256x32xf32>
    %65 = arith.addf %64, %63 : vector<256x32xf32>
    %c0_88 = arith.constant 0 : index
    %c0_89 = arith.constant 0 : index
    %66 = vector.load %arg9[%c0_88, %c0_89] : memref<256x32xf32, #tpu.memory_space<vmem>>, vector<256x32xf32>
    tpu.vector_store %arg9[%c0_88, %c0_89], %65 {strides = array<i32>} : memref<256x32xf32, #tpu.memory_space<vmem>>, vector<256x32xf32>,
    %c0_90 = arith.constant 0 : index
    %c2_91 = arith.constant 2 : index
    %c0_92 = arith.constant 0 : index
    %67 = vector.load %arg8[%c0_90, %c2_91, %c0_92] : memref<18x18x32xf32, #tpu.memory_space<vmem>>, vector<16x16x32xf32>
    %68 = vector.shape_cast %67 : vector<16x16x32xf32> to vector<256x32xf32>
    %c6 = arith.constant 6 : index
    %c0_93 = arith.constant 0 : index
    %c0_94 = arith.constant 0 : index
    %69 = vector.load %arg3[%c6, %c0_93, %c0_94] : memref<9x32x32xf32, #tpu.memory_space<vmem>>, vector<1x32x32xf32>
    %70 = vector.shape_cast %69 : vector<1x32x32xf32> to vector<32x32xf32>
    %cst_95 = arith.constant dense<0.000000e+00> : vector<256x32xf32>
    %71 = tpu.matmul %68, %70, %cst_95 {dimension_numbers = #tpu.dot_dimension_numbers<[1], [0], [0], [1], [0, 0, 1, 1], [], []>} : vector<256x32xf32>, vector<32x32xf32>, vector<256x32xf32> -> vector<256x32xf32>
    %c0_96 = arith.constant 0 : index
    %c0_97 = arith.constant 0 : index
    %72 = vector.load %arg9[%c0_96, %c0_97] : memref<256x32xf32, #tpu.memory_space<vmem>>, vector<256x32xf32>
    %73 = arith.addf %72, %71 : vector<256x32xf32>
    %c0_98 = arith.constant 0 : index
    %c0_99 = arith.constant 0 : index
    %74 = vector.load %arg9[%c0_98, %c0_99] : memref<256x32xf32, #tpu.memory_space<vmem>>, vector<256x32xf32>
    tpu.vector_store %arg9[%c0_98, %c0_99], %73 {strides = array<i32>} : memref<256x32xf32, #tpu.memory_space<vmem>>, vector<256x32xf32>,
    %c1_100 = arith.constant 1 : index
    %c2_101 = arith.constant 2 : index
    %c0_102 = arith.constant 0 : index
    %75 = vector.load %arg8[%c1_100, %c2_101, %c0_102] : memref<18x18x32xf32, #tpu.memory_space<vmem>>, vector<16x16x32xf32>
    %76 = vector.shape_cast %75 : vector<16x16x32xf32> to vector<256x32xf32>
    %c7 = arith.constant 7 : index
    %c0_103 = arith.constant 0 : index
    %c0_104 = arith.constant 0 : index
    %77 = vector.load %arg3[%c7, %c0_103, %c0_104] : memref<9x32x32xf32, #tpu.memory_space<vmem>>, vector<1x32x32xf32>
    %78 = vector.shape_cast %77 : vector<1x32x32xf32> to vector<32x32xf32>
    %cst_105 = arith.constant dense<0.000000e+00> : vector<256x32xf32>
    %79 = tpu.matmul %76, %78, %cst_105 {dimension_numbers = #tpu.dot_dimension_numbers<[1], [0], [0], [1], [0, 0, 1, 1], [], []>} : vector<256x32xf32>, vector<32x32xf32>, vector<256x32xf32> -> vector<256x32xf32>
    %c0_106 = arith.constant 0 : index
    %c0_107 = arith.constant 0 : index
    %80 = vector.load %arg9[%c0_106, %c0_107] : memref<256x32xf32, #tpu.memory_space<vmem>>, vector<256x32xf32>
    %81 = arith.addf %80, %79 : vector<256x32xf32>
    %c0_108 = arith.constant 0 : index
    %c0_109 = arith.constant 0 : index
    %82 = vector.load %arg9[%c0_108, %c0_109] : memref<256x32xf32, #tpu.memory_space<vmem>>, vector<256x32xf32>
    tpu.vector_store %arg9[%c0_108, %c0_109], %81 {strides = array<i32>} : memref<256x32xf32, #tpu.memory_space<vmem>>, vector<256x32xf32>,
    %c2_110 = arith.constant 2 : index
    %c2_111 = arith.constant 2 : index
    %c0_112 = arith.constant 0 : index
    %83 = vector.load %arg8[%c2_110, %c2_111, %c0_112] : memref<18x18x32xf32, #tpu.memory_space<vmem>>, vector<16x16x32xf32>
    %84 = vector.shape_cast %83 : vector<16x16x32xf32> to vector<256x32xf32>
    %c8 = arith.constant 8 : index
    %c0_113 = arith.constant 0 : index
    %c0_114 = arith.constant 0 : index
    %85 = vector.load %arg3[%c8, %c0_113, %c0_114] : memref<9x32x32xf32, #tpu.memory_space<vmem>>, vector<1x32x32xf32>
    %86 = vector.shape_cast %85 : vector<1x32x32xf32> to vector<32x32xf32>
    %cst_115 = arith.constant dense<0.000000e+00> : vector<256x32xf32>
    %87 = tpu.matmul %84, %86, %cst_115 {dimension_numbers = #tpu.dot_dimension_numbers<[1], [0], [0], [1], [0, 0, 1, 1], [], []>} : vector<256x32xf32>, vector<32x32xf32>, vector<256x32xf32> -> vector<256x32xf32>
    %c0_116 = arith.constant 0 : index
    %c0_117 = arith.constant 0 : index
    %88 = vector.load %arg9[%c0_116, %c0_117] : memref<256x32xf32, #tpu.memory_space<vmem>>, vector<256x32xf32>
    %89 = arith.addf %88, %87 : vector<256x32xf32>
    %c0_118 = arith.constant 0 : index
    %c0_119 = arith.constant 0 : index
    %90 = vector.load %arg9[%c0_118, %c0_119] : memref<256x32xf32, #tpu.memory_space<vmem>>, vector<256x32xf32>
    tpu.vector_store %arg9[%c0_118, %c0_119], %89 {strides = array<i32>} : memref<256x32xf32, #tpu.memory_space<vmem>>, vector<256x32xf32>,
    %c0_120 = arith.constant 0 : index
    %c0_121 = arith.constant 0 : index
    %91 = vector.load %arg9[%c0_120, %c0_121] : memref<256x32xf32, #tpu.memory_space<vmem>>, vector<256x32xf32>
    %92 = vector.broadcast %1 : vector<1x32xf32> to vector<256x32xf32>
    %93 = arith.addf %91, %92 : vector<256x32xf32>
    %cst_122 = arith.constant 0.000000e+00 : f32
    %94 = vector.broadcast %cst_122 : f32 to vector<256x32xf32>
    %95 = arith.maximumf %93, %94 : vector<256x32xf32>
    %96 = vector.shape_cast %95 : vector<256x32xf32> to vector<16x16x32xf32>
    %97 = vector.extract_strided_slice %96 {offsets = [0, 0, 0], sizes = [14, 16, 32], strides = [1, 1, 1]} : vector<16x16x32xf32> to vector<14x16x32xf32>
    %98 = vector.shape_cast %97 : vector<14x16x32xf32> to vector<7x2x16x32xf32>
    %99 = vector.extract_strided_slice %98 {offsets = [0, 0, 0, 0], sizes = [7, 1, 16, 32], strides = [1, 1, 1, 1]} : vector<7x2x16x32xf32> to vector<7x1x16x32xf32>
    %100 = vector.shape_cast %99 : vector<7x1x16x32xf32> to vector<7x16x32xf32>
    %101 = vector.extract_strided_slice %98 {offsets = [0, 1, 0, 0], sizes = [7, 1, 16, 32], strides = [1, 1, 1, 1]} : vector<7x2x16x32xf32> to vector<7x1x16x32xf32>
    %102 = vector.shape_cast %101 : vector<7x1x16x32xf32> to vector<7x16x32xf32>
    %103 = arith.maximumf %100, %102 : vector<7x16x32xf32>
    %104 = vector.extract_strided_slice %96 {offsets = [1, 0, 0], sizes = [14, 16, 32], strides = [1, 1, 1]} : vector<16x16x32xf32> to vector<14x16x32xf32>
    %105 = vector.shape_cast %104 : vector<14x16x32xf32> to vector<7x2x16x32xf32>
    %106 = vector.extract_strided_slice %105 {offsets = [0, 1, 0, 0], sizes = [7, 1, 16, 32], strides = [1, 1, 1, 1]} : vector<7x2x16x32xf32> to vector<7x1x16x32xf32>
    %107 = vector.shape_cast %106 : vector<7x1x16x32xf32> to vector<7x16x32xf32>
    %108 = arith.maximumf %103, %107 : vector<7x16x32xf32>
    %109 = vector.shape_cast %108 : vector<7x16x32xf32> to vector<112x32xf32>
    %c0_123 = arith.constant 0 : index
    %c0_124 = arith.constant 0 : index
    %110 = vector.load %arg4[%c0_123, %c0_124] : memref<32x32xf32, #tpu.memory_space<vmem>>, vector<32x32xf32>
    %cst_125 = arith.constant dense<0.000000e+00> : vector<112x32xf32>
    %111 = tpu.matmul %109, %110, %cst_125 {dimension_numbers = #tpu.dot_dimension_numbers<[1], [0], [0], [1], [0, 0, 1, 1], [], []>} : vector<112x32xf32>, vector<32x32xf32>, vector<112x32xf32> -> vector<112x32xf32>
    %112 = vector.broadcast %2 : vector<1x32xf32> to vector<112x32xf32>
    %113 = arith.addf %111, %112 : vector<112x32xf32>
    %cst_126 = arith.constant 0.000000e+00 : f32
    %114 = vector.broadcast %cst_126 : f32 to vector<112x32xf32>
    %115 = arith.maximumf %113, %114 : vector<112x32xf32>
    %c0_127 = arith.constant 0 : index
    %c0_128 = arith.constant 0 : index
    %c0_129 = arith.constant 0 : index
    %116 = vector.load %arg6[%c0_127, %c0_128, %c0_129] : memref<1x112x32xf32, #tpu.memory_space<vmem>>, vector<1x112x32xf32>
    %117 = vector.shape_cast %116 : vector<1x112x32xf32> to vector<112x32xf32>
    %118 = vector.shape_cast %115 : vector<112x32xf32> to vector<1x112x32xf32>
    tpu.vector_store %arg6[%c0_127, %c0_128, %c0_129], %118 {strides = array<i32>} : memref<1x112x32xf32, #tpu.memory_space<vmem>>, vector<1x112x32xf32>,
    return
  }
  func.func @transform_0(%arg0: i32) -> (i32, i32, i32) {
    %c0_i32 = arith.constant 0 : i32
    %c0_i32_0 = arith.constant 0 : i32
    %c0_i32_1 = arith.constant 0 : i32
    return %arg0, %c0_i32, %c0_i32_0 : i32, i32, i32
  }
  func.func @transform_1(%arg0: i32) -> (i32, i32) {
    %c0_i32 = arith.constant 0 : i32
    %c0_i32_0 = arith.constant 0 : i32
    %c0_i32_1 = arith.constant 0 : i32
    return %c0_i32, %c0_i32_0 : i32, i32
  }
  func.func @transform_2(%arg0: i32) -> (i32, i32, i32) {
    %c0_i32 = arith.constant 0 : i32
    %c0_i32_0 = arith.constant 0 : i32
    %c0_i32_1 = arith.constant 0 : i32
    %c0_i32_2 = arith.constant 0 : i32
    return %c0_i32, %c0_i32_0, %c0_i32_1 : i32, i32, i32
  }
  func.func @transform_3(%arg0: i32) -> (i32, i32) {
    %c0_i32 = arith.constant 0 : i32
    %c0_i32_0 = arith.constant 0 : i32
    %c0_i32_1 = arith.constant 0 : i32
    return %c0_i32, %c0_i32_0 : i32, i32
  }
  func.func @transform_4(%arg0: i32) -> (i32, i32) {
    %c0_i32 = arith.constant 0 : i32
    %c0_i32_0 = arith.constant 0 : i32
    %c0_i32_1 = arith.constant 0 : i32
    return %c0_i32, %c0_i32_0 : i32, i32
  }
  func.func @transform_5(%arg0: i32) -> (i32, i32, i32) {
    %c0_i32 = arith.constant 0 : i32
    %c0_i32_0 = arith.constant 0 : i32
    %c0_i32_1 = arith.constant 0 : i32
    return %arg0, %c0_i32, %c0_i32_0 : i32, i32, i32
  }
}

</mosaic_0001>

<bundles_post_ra>
// kernel: tpu_custom_call.1
= control target key start
LH: loop header
LB: loop body
LE: loop exit
PB: predicated region body
PF: predicated region fallthrough
CT: control target
= control target key end

     0   :  { %s6590_s18 = smov 0   ;;  %s8533_s0 = inlined_call_operand.vmem [shape: f32[2,256,36], index: 0, kind: input, shape index: {}]   ;;  %s8534_s1 = inlined_call_operand.vmem [shape: f32[36,32], index: 1, kind: input, shape index: {}]   ;;  %s8535_s2 = inlined_call_operand.vmem [shape: f32[9,32,32], index: 2, kind: input, shape index: {}]   ;;  %s8536_s3 = inlined_call_operand.vmem [shape: f32[32,32], index: 3, kind: input, shape index: {}]   ;;  %s8537_s4 = inlined_call_operand.vmem [shape: f32[3,32], index: 4, kind: input, shape index: {}]   ;;  %s8538_s5 = inlined_call_operand.vmem [shape: f32[2,112,32], index: 5, kind: output, shape index: {}]  }
   0x1 LB: > { %s5182_s19 = sadd.s32 4294967295, %s6557_s18   ;;  %p5186_p0 = scmp.ge.s32.totalorder %s6557_s18, 1  ;;  %s6557_s18 = sphi %s6590_s18, %s15_s18  }
   0x2   : > { %p187_p1 = scmp.lt.s32.totalorder %s6557_s18, 3 }
   0x4   : > { %p188_p2 = pnand %p5186_p0, %p187_p1 }
   0x6   : > { %191 = sbr.rel (%p188_p2) target bundleno = 969 (0x3c9), region = 40 }
   0xb   : > { %v264_v0 = vld [vmem:[%s8534_s1 + $0x20] sm:$0xf]  ;;  %vm366_vm0 = vcmask 1043456   ;;  %v263_v1 = vld [vmem:[%s8534_s1 + $0x18] sm:$0xff]  ;;  %p215_p3 = scmp.lt.s32.totalorder %s5182_s19, 1  ;;  %v262_v2 = vld [vmem:[%s8534_s1 + $0x10] sm:$0xff] }
   0xc   : > { %5942 = vmatprep.subr.msk.mxu0 %vm366_vm0, %v264_v0  ;;  %v261_v3 = vld [vmem:[%s8534_s1 + $0x8] sm:$0xff]  ;;  %vm269_vm1 = vcmask 293888   ;;  %v260_v4 = vld [vmem:[%s8534_s1] sm:$0xff]  ;;  %vm627_vm2 = vcmask 261120   ;;  %v6559_v37 = vmov 0.0   ;;  %vm668_vm3 = vcmask 253952  }
   0xd   : > { %5943 = vmatpush3.msk.msra.mxu0 %vm366_vm0, %v264_v0  ;;  %s8554_s19 = smov (!%p215_p3, %s5182_s19), 1  ;;  %660 = vst.msk [vmem:[#allocation3] sm:$0xff] %vm627_vm2, %v6559_v37  ;;  %661 = vst.msk [vmem:[#allocation3 + $0x8] sm:$0xff] %vm627_vm2, %v6559_v37  ;;  %v805_v38 = vld [vmem:[%s8535_s2 + $0x18] sm:$0xff]  ;;  %v804_v39 = vld [vmem:[%s8535_s2 + $0x10] sm:$0xff]  ;;  %vm662_vm4 = vcmask 254976  }
   0xe   : > { %5944 = vmatprep.subr.mxu0 %v263_v1  ;;  %s5562_s28 = sshll.u32 %s8554_s19, 8  ;;  %665 = vst.msk [vmem:[#allocation3 + $0x198] sm:$0xff] %vm627_vm2, %v6559_v37  ;;  %666 = vst.msk [vmem:[#allocation3 + $0x1a0] sm:$0xff] %vm627_vm2, %v6559_v37  ;;  %6533 = vmatprep.subr.mxu1 %v805_v38  ;;  %v803_v40 = vld [vmem:[%s8535_s2 + $0x8] sm:$0xff]  ;;  %v802_v41 = vld [vmem:[%s8535_s2] sm:$0xff]  ;;  %s6541_s26 = smul.u32 112, %s8554_s19 }
   0xf   : > { %5945 = vmatpush3.msra.mxu0 %v263_v1  ;;  %s6616_s6 = scalar_lea.vmem %s8533_s0, %s5562_s28  ;;  %669 = vst.msk [vmem:[#allocation3] sm:$0x1] %vm668_vm3, %v6559_v37  ;;  %670 = vst.msk [vmem:[#allocation3 + $0x18] sm:$0x1] %vm668_vm3, %v6559_v37  ;;  %6537 = vmatpush3.msra.mxu1 %v805_v38  ;;  %v5295_v44 = vld [vmem:[%s8535_s2 + $0x58] sm:$0xff]  ;;  %v5294_v45 = vld [vmem:[%s8535_s2 + $0x50] sm:$0xff] }
  0x10   : > { %5946 = vmatprep.subr.mxu0 %v262_v2  ;;  %v228_v5 = vld [vmem:[%s6616_s6] sm:$0xff]  ;;  %v229_v6 = vld [vmem:[%s6616_s6 + $0x8] sm:$0xff]  ;;  %v230_v7 = vld [vmem:[%s6616_s6 + $0x10] sm:$0xff]  ;;  %671 = vst.msk [vmem:[#allocation3 + $0x30] sm:$0x1] %vm668_vm3, %v6559_v37  ;;  %6534 = vmatprep.subr.mxu1 %v804_v39 }
  0x11   : > { %5947 = vmatpush3.msra.mxu0 %v262_v2  ;;  %5952 = vmatprep.mubr.msk.f32.mxu0 %vm269_vm1, %v228_v5  ;;  %v231_v8 = vld [vmem:[%s6616_s6 + $0x18] sm:$0xff]  ;;  %v232_v9 = vld [vmem:[%s6616_s6 + $0x20] sm:$0xff]  ;;  %v233_v10 = vld [vmem:[%s6616_s6 + $0x28] sm:$0xff]  ;;  %672 = vst.msk [vmem:[#allocation3 + $0x48] sm:$0x1] %vm668_vm3, %v6559_v37 }
  0x12   : > { %5948 = vmatprep.subr.mxu0 %v261_v3  ;;  %v234_v11 = vld [vmem:[%s6616_s6 + $0x30] sm:$0xff]  ;;  %v235_v12 = vld [vmem:[%s6616_s6 + $0x38] sm:$0xff]  ;;  %v236_v13 = vld [vmem:[%s6616_s6 + $0x40] sm:$0xff]  ;;  %673 = vst.msk [vmem:[#allocation3 + $0x60] sm:$0x1] %vm668_vm3, %v6559_v37  ;;  %6538 = vmatpush3.msra.mxu1 %v804_v39 }
  0x13   : > { %5949 = vmatpush3.msra.mxu0 %v261_v3  ;;  %v237_v14 = vld [vmem:[%s6616_s6 + $0x48] sm:$0xff]  ;;  %v238_v15 = vld [vmem:[%s6616_s6 + $0x50] sm:$0xff]  ;;  %v239_v16 = vld [vmem:[%s6616_s6 + $0x58] sm:$0xff]  ;;  %674 = vst.msk [vmem:[#allocation3 + $0x78] sm:$0x1] %vm668_vm3, %v6559_v37  ;;  %6535 = vmatprep.subr.mxu1 %v803_v40 }
  0x14   : > { %5950 = vmatprep.subr.mxu0 %v260_v4  ;;  %v240_v17 = vld [vmem:[%s6616_s6 + $0x60] sm:$0xff]  ;;  %v241_v18 = vld [vmem:[%s6616_s6 + $0x68] sm:$0xff]  ;;  %v242_v19 = vld [vmem:[%s6616_s6 + $0x70] sm:$0xff]  ;;  %675 = vst.msk [vmem:[#allocation3 + $0x90] sm:$0x1] %vm668_vm3, %v6559_v37  ;;  %6539 = vmatpush3.msra.mxu1 %v803_v40 }
  0x15   : > { %5951 = vmatpush3.msra.mxu0 %v260_v4  ;;  %v243_v20 = vld [vmem:[%s6616_s6 + $0x78] sm:$0xff]  ;;  %v244_v21 = vld [vmem:[%s6616_s6 + $0x80] sm:$0xff]  ;;  %v245_v22 = vld [vmem:[%s6616_s6 + $0x88] sm:$0xff]  ;;  %676 = vst.msk [vmem:[#allocation3 + $0xa8] sm:$0x1] %vm668_vm3, %v6559_v37  ;;  %6536 = vmatprep.subr.mxu1 %v802_v41 }
  0x16   : > { %5953 = vmatmul.mubr.msk.f32.vlgmr.msra.gmra.mxu0 %vm269_vm1, %v229_v6  ;;  %v246_v23 = vld [vmem:[%s6616_s6 + $0x90] sm:$0xff]  ;;  %v247_v24 = vld [vmem:[%s6616_s6 + $0x98] sm:$0xff]  ;;  %v248_v25 = vld [vmem:[%s6616_s6 + $0xa0] sm:$0xff]  ;;  %677 = vst.msk [vmem:[#allocation3 + $0xc0] sm:$0x1] %vm668_vm3, %v6559_v37  ;;  %6000 = vmatprep.subr.mxu0 %v805_v38 }
  0x17   : > { %5955 = vmatprep.mubr.msk.f32.mxu0 %vm269_vm1, %v230_v7  ;;  %v249_v26 = vld [vmem:[%s6616_s6 + $0xa8] sm:$0xff]  ;;  %v250_v27 = vld [vmem:[%s6616_s6 + $0xb0] sm:$0xff]  ;;  %v251_v28 = vld [vmem:[%s6616_s6 + $0xb8] sm:$0xff]  ;;  %678 = vst.msk [vmem:[#allocation3 + $0xd8] sm:$0x1] %vm668_vm3, %v6559_v37  ;;  %6001 = vmatpush3.msra.mxu0 %v805_v38 }
  0x18   : > { %v252_v29 = vld [vmem:[%s6616_s6 + $0xc0] sm:$0xff]  ;;  %v253_v30 = vld [vmem:[%s6616_s6 + $0xc8] sm:$0xff]  ;;  %v254_v31 = vld [vmem:[%s6616_s6 + $0xd0] sm:$0xff]  ;;  %679 = vst.msk [vmem:[#allocation3 + $0xf0] sm:$0x1] %vm668_vm3, %v6559_v37  ;;  %6002 = vmatprep.subr.mxu0 %v804_v39  ;;  %6540 = vmatpush3.msra.mxu1 %v802_v41 }
  0x19   : > { %v255_v32 = vld [vmem:[%s6616_s6 + $0xd8] sm:$0xff]  ;;  %v256_v33 = vld [vmem:[%s6616_s6 + $0xe0] sm:$0xff]  ;;  %v257_v34 = vld [vmem:[%s6616_s6 + $0xe8] sm:$0xff]  ;;  %680 = vst.msk [vmem:[#allocation3 + $0x108] sm:$0x1] %vm668_vm3, %v6559_v37  ;;  %6003 = vmatpush3.msra.mxu0 %v804_v39 }
  0x1a   : > { %5956 = vmatmul.mubr.msk.f32.gmra.mxu0 %vm269_vm1, %v231_v8  ;;  %v258_v35 = vld [vmem:[%s6616_s6 + $0xf0] sm:$0xff]  ;;  %v259_v36 = vld [vmem:[%s6616_s6 + $0xf8] sm:$0xff]  ;;  %681 = vst.msk [vmem:[#allocation3 + $0x120] sm:$0x1] %vm668_vm3, %v6559_v37  ;;  %682 = vst.msk [vmem:[#allocation3 + $0x138] sm:$0x1] %vm668_vm3, %v6559_v37  ;;  %6004 = vmatprep.subr.mxu0 %v803_v40  ;;  %s8500_s6 = scalar_lea.vmem %s8538_s5, %s6541_s26 }
  0x1b   : > { %5958 = vmatprep.mubr.msk.f32.mxu0 %vm269_vm1, %v232_v9  ;;  %683 = vst.msk [vmem:[#allocation3 + $0x150] sm:$0x1] %vm668_vm3, %v6559_v37  ;;  %684 = vst.msk [vmem:[#allocation3 + $0x168] sm:$0x1] %vm668_vm3, %v6559_v37  ;;  %6005 = vmatpush3.msra.mxu0 %v803_v40  ;;  %v770_v42 = vld [vmem:[#allocation3] sm:$0xff]  ;;  %v771_v43 = vld [vmem:[#allocation3 + $0x8] sm:$0xff] }
  0x1c   : > { %685 = vst.msk [vmem:[#allocation3 + $0x180] sm:$0x1] %vm668_vm3, %v6559_v37  ;;  %688 = vst.msk [vmem:[#allocation3 + $0x29] sm:$0x1] %vm668_vm3, %v6559_v37  ;;  %6006 = vmatprep.subr.mxu0 %v802_v41  ;;  %v5293_v46 = vld [vmem:[%s8535_s2 + $0x48] sm:$0xff]  ;;  %v5292_v47 = vld [vmem:[%s8535_s2 + $0x40] sm:$0xff] }
  0x1d   : > { %689 = vst.msk [vmem:[#allocation3 + $0x41] sm:$0x1] %vm668_vm3, %v6559_v37  ;;  %690 = vst.msk [vmem:[#allocation3 + $0x59] sm:$0x1] %vm668_vm3, %v6559_v37  ;;  %6007 = vmatpush3.msra.mxu0 %v802_v41  ;;  %v6790_v48 = vld [vmem:[%s8535_s2 + $0x38] sm:$0xff] }
  0x1e   : > { %5959 = vmatmul.mubr.msk.f32.gmra.mxu0 %vm269_vm1, %v233_v10  ;;  %691 = vst.msk [vmem:[#allocation3 + $0x71] sm:$0x1] %vm668_vm3, %v6559_v37  ;;  %692 = vst.msk [vmem:[#allocation3 + $0x89] sm:$0x1] %vm668_vm3, %v6559_v37  ;;  %6112 = vmatprep.subr.mxu0 %v5295_v44  ;;  %v6796_v49 = vld [vmem:[%s8535_s2 + $0x98] sm:$0xff] }
  0x1f   : > { %5961 = vmatprep.mubr.msk.f32.mxu0 %vm269_vm1, %v234_v11  ;;  %693 = vst.msk [vmem:[#allocation3 + $0xa1] sm:$0x1] %vm668_vm3, %v6559_v37  ;;  %694 = vst.msk [vmem:[#allocation3 + $0xb9] sm:$0x1] %vm668_vm3, %v6559_v37  ;;  %6056 = vmatprep.subr.mxu1 %v6790_v48  ;;  %v6802_v50 = vld [vmem:[%s8537_s4] ss:$0 sm:$0xff] }
  0x20   : > { %695 = vst.msk [vmem:[#allocation3 + $0xd1] sm:$0x1] %vm668_vm3, %v6559_v37  ;;  %696 = vst.msk [vmem:[#allocation3 + $0xe9] sm:$0x1] %vm668_vm3, %v6559_v37 }
  0x21   : > { %697 = vst.msk [vmem:[#allocation3 + $0x101] sm:$0x1] %vm668_vm3, %v6559_v37  ;;  %698 = vst.msk [vmem:[#allocation3 + $0x119] sm:$0x1] %vm668_vm3, %v6559_v37 }
  0x22   : > { %5962 = vmatmul.mubr.msk.f32.gmra.mxu0 %vm269_vm1, %v235_v12  ;;  %699 = vst.msk [vmem:[#allocation3 + $0x131] sm:$0x1] %vm668_vm3, %v6559_v37  ;;  %700 = vst.msk [vmem:[#allocation3 + $0x149] sm:$0x1] %vm668_vm3, %v6559_v37 }
  0x23   : > { %5964 = vmatprep.mubr.msk.f32.mxu0 %vm269_vm1, %v236_v13  ;;  %701 = vst.msk [vmem:[#allocation3 + $0x161] sm:$0x1] %vm668_vm3, %v6559_v37  ;;  %702 = vst.msk [vmem:[#allocation3 + $0x179] sm:$0x1] %vm668_vm3, %v6559_v37 }
  0x24   : > { %703 = vst.msk [vmem:[#allocation3 + $0x191] sm:$0x1] %vm668_vm3, %v6559_v37  ;;  %686 = vst.msk [vmem:[#allocation3 + $0x198] sm:$0x1] %vm668_vm3, %v6559_v37 }
  0x25   : > { %663 = vst.msk [vmem:[#allocation3 + $0x10] sm:$0x3] %vm662_vm4, %v6559_v37  ;;  %667 = vst.msk [vmem:[#allocation3 + $0x1a8] sm:$0x3] %vm662_vm4, %v6559_v37 }
  0x26   : > { %5965 = vmatmul.mubr.msk.f32.gmra.mxu0 %vm269_vm1, %v237_v14  ;;  %687 = vst.msk [vmem:[#allocation3 + $0x11] sm:$0x1] %vm668_vm3, %v6559_v37  ;;  %704 = vst.msk [vmem:[#allocation3 + $0x1a9] sm:$0x1] %vm668_vm3, %v6559_v37 }
  0x27   : > { %5967 = vmatprep.mubr.msk.f32.mxu0 %vm269_vm1, %v238_v15 }
  0x2a   : > { %5968 = vmatmul.mubr.msk.f32.gmra.mxu0 %vm269_vm1, %v239_v16 }
  0x2b   : > { %5970 = vmatprep.mubr.msk.f32.mxu0 %vm269_vm1, %v240_v17 }
  0x2e   : > { %5971 = vmatmul.mubr.msk.f32.gmra.mxu0 %vm269_vm1, %v241_v18 }
  0x2f   : > { %5973 = vmatprep.mubr.msk.f32.mxu0 %vm269_vm1, %v242_v19 }
  0x32   : > { %5974 = vmatmul.mubr.msk.f32.gmra.mxu0 %vm269_vm1, %v243_v20 }
  0x33   : > { %5976 = vmatprep.mubr.msk.f32.mxu0 %vm269_vm1, %v244_v21 }
  0x36   : > { %5977 = vmatmul.mubr.msk.f32.gmra.mxu0 %vm269_vm1, %v245_v22 }
  0x37   : > { %5979 = vmatprep.mubr.msk.f32.mxu0 %vm269_vm1, %v246_v23 }
  0x3a   : > { %5980 = vmatmul.mubr.msk.f32.gmra.mxu0 %vm269_vm1, %v247_v24 }
  0x3b   : > { %5982 = vmatprep.mubr.msk.f32.mxu0 %vm269_vm1, %v248_v25 }
  0x3e   : > { %5983 = vmatmul.mubr.msk.f32.gmra.mxu0 %vm269_vm1, %v249_v26 }
  0x3f   : > { %5985 = vmatprep.mubr.msk.f32.mxu0 %vm269_vm1, %v250_v27 }
  0x42   : > { %5986 = vmatmul.mubr.msk.f32.gmra.mxu0 %vm269_vm1, %v251_v28 }
  0x43   : > { %5988 = vmatprep.mubr.msk.f32.mxu0 %vm269_vm1, %v252_v29 }
  0x46   : > { %5989 = vmatmul.mubr.msk.f32.gmra.mxu0 %vm269_vm1, %v253_v30 }
  0x47   : > { %5991 = vmatprep.mubr.msk.f32.mxu0 %vm269_vm1, %v254_v31 }
  0x4a   : > { %5992 = vmatmul.mubr.msk.f32.gmra.mxu0 %vm269_vm1, %v255_v32 }
  0x4b   : > { %5994 = vmatprep.mubr.msk.f32.mxu0 %vm269_vm1, %v256_v33 }
  0x4e   : > { %5995 = vmatmul.mubr.msk.f32.gmra.mxu0 %vm269_vm1, %v257_v34 }
  0x4f   : > { %5997 = vmatprep.mubr.msk.f32.mxu0 %vm269_vm1, %v258_v35 }
  0x52   : > { %5998 = vmatmul.mubr.msk.f32.gmra.mxu0 %vm269_vm1, %v259_v36 }
  0x53   : > { %6008 = vmatprep.mubr.msk.f32.mxu0 %vm627_vm2, %v770_v42 }
  0x56   : > { %6009 = vmatmul.mubr.msk.f32.vlgmr.msra.gmra.mxu0 %vm627_vm2, %v771_v43 }
  0x57   : > { %6113 = vmatpush3.msra.mxu0 %v5295_v44 }
  0x58   : > { %6114 = vmatprep.subr.mxu0 %v5294_v45 }
  0x59   : > { %6115 = vmatpush3.msra.mxu0 %v5294_v45 }
  0x5a   : > { %6116 = vmatprep.subr.mxu0 %v5293_v46 }
  0x5b   : > { %6117 = vmatpush3.msra.mxu0 %v5293_v46 }
  0x5c   : > { %6118 = vmatprep.subr.mxu0 %v5292_v47 }
  0x5d   : > { %6119 = vmatpush3.msra.mxu0 %v5292_v47 }
  0x5e   : > { %6224 = vmatprep.subr.mxu0 %v6796_v49 }
  0xd6   : > { %v5954_v51 = vpop.f32.mrf.mxu0 }
  0xd7   : > { %v442_v52 = vadd.f32 %v5954_v51, %v6802_v50 }
  0xd8   : > { %v436_v53 = vpop.f32.mrf.mxu0 }
  0xd9   : > { %v596_v54 = vmax.f32 %v442_v52, 0.0  ;;  %v437_v55 = vadd.f32 %v6802_v50, %v436_v53  ;;  %v5258_v53 = vld [vmem:[%s8535_s2 + $0x30] sm:$0xff] }
  0xda   : > { %v5957_v56 = vpop.f32.mrf.mxu0 }
  0xdb   : > { %629 = vst.msk [vmem:[#allocation2 + $0x8] sm:$0xff] %vm627_vm2, %v596_v54  ;;  %v595_v57 = vmax.f32 %v437_v55, 0.0  ;;  %v452_v58 = vadd.f32 %v5957_v56, %v6802_v50 }
  0xdc   : > { %v446_v59 = vpop.f32.mrf.mxu0 }
  0xdd   : > { %628 = vst.msk [vmem:[#allocation2] sm:$0xff] %vm627_vm2, %v595_v57  ;;  %v598_v60 = vmax.f32 %v452_v58, 0.0  ;;  %v447_v61 = vadd.f32 %v6802_v50, %v446_v59  ;;  %v5257_v58 = vld [vmem:[%s8535_s2 + $0x28] sm:$0xff] }
  0xde   : > { %v5960_v62 = vpop.f32.mrf.mxu0 }
  0xdf   : > { %631 = vst.msk [vmem:[#allocation2 + $0x18] sm:$0xff] %vm627_vm2, %v598_v60  ;;  %v597_v63 = vmax.f32 %v447_v61, 0.0  ;;  %v462_v0 = vadd.f32 %v5960_v62, %v6802_v50 }
  0xe0   : > { %v456_v1 = vpop.f32.mrf.mxu0 }
  0xe1   : > { %630 = vst.msk [vmem:[#allocation2 + $0x10] sm:$0xff] %vm627_vm2, %v597_v63  ;;  %v600_v2 = vmax.f32 %v462_v0, 0.0  ;;  %v457_v3 = vadd.f32 %v6802_v50, %v456_v1  ;;  %v5366_v0 = vld [vmem:[%s8535_s2 + $0x90] sm:$0xff] }
  0xe2   : > { %v706_v4 = vld [vmem:[#allocation2 + $0x8] sm:$0xff]  ;;  %v5963_v5 = vpop.f32.mrf.mxu0 }
  0xe3   : > { %739 = vst.msk [vmem:[#allocation3 + $0x21] sm:$0xff] %vm627_vm2, %v706_v4  ;;  %633 = vst.msk [vmem:[#allocation2 + $0x28] sm:$0xff] %vm627_vm2, %v600_v2  ;;  %v599_v6 = vmax.f32 %v457_v3, 0.0  ;;  %v472_v7 = vadd.f32 %v5963_v5, %v6802_v50 }
  0xe4   : > { %v705_v8 = vld [vmem:[#allocation2] sm:$0xff]  ;;  %v466_v9 = vpop.f32.mrf.mxu0 }
  0xe5   : > { %738 = vst.msk [vmem:[#allocation3 + $0x19] sm:$0xff] %vm627_vm2, %v705_v8  ;;  %632 = vst.msk [vmem:[#allocation2 + $0x20] sm:$0xff] %vm627_vm2, %v599_v6  ;;  %v602_v10 = vmax.f32 %v472_v7, 0.0  ;;  %v467_v11 = vadd.f32 %v6802_v50, %v466_v9 }
  0xe6   : > { %v708_v12 = vld [vmem:[#allocation2 + $0x18] sm:$0xff]  ;;  %v5966_v13 = vpop.f32.mrf.mxu0 }
  0xe7   : > { %741 = vst.msk [vmem:[#allocation3 + $0x39] sm:$0xff] %vm627_vm2, %v708_v12  ;;  %635 = vst.msk [vmem:[#allocation2 + $0x38] sm:$0xff] %vm627_vm2, %v602_v10  ;;  %v601_v14 = vmax.f32 %v467_v11, 0.0  ;;  %v482_v15 = vadd.f32 %v5966_v13, %v6802_v50  ;;  %v6927_v11 = vld [vmem:[%s8535_s2 + $0x78] sm:$0xff] }
  0xe8   : > { %v707_v16 = vld [vmem:[#allocation2 + $0x10] sm:$0xff]  ;;  %v476_v17 = vpop.f32.mrf.mxu0 }
  0xe9   : > { %740 = vst.msk [vmem:[#allocation3 + $0x31] sm:$0xff] %vm627_vm2, %v707_v16  ;;  %634 = vst.msk [vmem:[#allocation2 + $0x30] sm:$0xff] %vm627_vm2, %v601_v14  ;;  %v604_v18 = vmax.f32 %v482_v15, 0.0  ;;  %v477_v19 = vadd.f32 %v6802_v50, %v476_v17  ;;  %v5365_v14 = vld [vmem:[%s8535_s2 + $0x88] sm:$0xff] }
  0xea   : > { %v710_v20 = vld [vmem:[#allocation2 + $0x28] sm:$0xff]  ;;  %v5969_v21 = vpop.f32.mrf.mxu0 }
  0xeb   : > { %743 = vst.msk [vmem:[#allocation3 + $0x51] sm:$0xff] %vm627_vm2, %v710_v20  ;;  %637 = vst.msk [vmem:[#allocation2 + $0x48] sm:$0xff] %vm627_vm2, %v604_v18  ;;  %v603_v22 = vmax.f32 %v477_v19, 0.0  ;;  %v492_v23 = vadd.f32 %v5969_v21, %v6802_v50 }
  0xec   : > { %v486_v24 = vpop.f32.mrf.mxu0  ;;  %v6835_v25 = vld [vmem:[#allocation3 + $0x18] sm:$0xff]  ;;  %v6837_v26 = vld [vmem:[#allocation3 + $0x20] sm:$0xff] }
  0xed   : > { %v709_v27 = vld [vmem:[#allocation2 + $0x20] sm:$0xff]  ;;  %636 = vst.msk [vmem:[#allocation2 + $0x40] sm:$0xff] %vm627_vm2, %v603_v22  ;;  %v606_v28 = vmax.f32 %v492_v23, 0.0  ;;  %v487_v29 = vadd.f32 %v6802_v50, %v486_v24  ;;  %6011 = vmatprep.mubr.msk.f32.mxu0 %vm627_vm2, %v6835_v25 }
  0xee   : > { %742 = vst.msk [vmem:[#allocation3 + $0x49] sm:$0xff] %vm627_vm2, %v709_v27  ;;  %v712_v30 = vld [vmem:[#allocation2 + $0x38] sm:$0xff]  ;;  %v5972_v31 = vpop.f32.mrf.mxu0  ;;  %6012 = vmatmul.mubr.msk.f32.gmra.mxu0 %vm627_vm2, %v6837_v26  ;;  %v5364_v23 = vld [vmem:[%s8535_s2 + $0x80] sm:$0xff] }
  0xef   : > { %745 = vst.msk [vmem:[#allocation3 + $0x69] sm:$0xff] %vm627_vm2, %v712_v30  ;;  %639 = vst.msk [vmem:[#allocation2 + $0x58] sm:$0xff] %vm627_vm2, %v606_v28  ;;  %v605_v32 = vmax.f32 %v487_v29, 0.0  ;;  %v502_v33 = vadd.f32 %v5972_v31, %v6802_v50  ;;  %v6966_v30 = vld [vmem:[%s8535_s2 + $0xd8] sm:$0xff] }
  0xf0   : > { %v711_v34 = vld [vmem:[#allocation2 + $0x30] sm:$0xff]  ;;  %v496_v35 = vpop.f32.mrf.mxu0  ;;  %v6851_v37 = vld [vmem:[#allocation3 + $0x38] sm:$0xff] }
  0xf1   : > { %v6849_v36 = vld [vmem:[#allocation3 + $0x30] sm:$0xff]  ;;  %744 = vst.msk [vmem:[#allocation3 + $0x61] sm:$0xff] %vm627_vm2, %v711_v34  ;;  %638 = vst.msk [vmem:[#allocation2 + $0x50] sm:$0xff] %vm627_vm2, %v605_v32  ;;  %v608_v38 = vmax.f32 %v502_v33, 0.0  ;;  %v497_v39 = vadd.f32 %v6802_v50, %v496_v35 }
  0xf2   : > { %6014 = vmatprep.mubr.msk.f32.mxu0 %vm627_vm2, %v6849_v36  ;;  %v714_v40 = vld [vmem:[#allocation2 + $0x48] sm:$0xff]  ;;  %v5975_v41 = vpop.f32.mrf.mxu0 }
  0xf3   : > { %6015 = vmatmul.mubr.msk.f32.gmra.mxu0 %vm627_vm2, %v6851_v37  ;;  %747 = vst.msk [vmem:[#allocation3 + $0x81] sm:$0xff] %vm627_vm2, %v714_v40  ;;  %641 = vst.msk [vmem:[#allocation2 + $0x68] sm:$0xff] %vm627_vm2, %v608_v38  ;;  %v607_v42 = vmax.f32 %v497_v39, 0.0  ;;  %v512_v43 = vadd.f32 %v5975_v41, %v6802_v50 }
  0xf4   : > { %6120 = vmatprep.mubr.msk.f32.mxu0 %vm627_vm2, %v6849_v36  ;;  %v713_v44 = vld [vmem:[#allocation2 + $0x40] sm:$0xff]  ;;  %v506_v45 = vpop.f32.mrf.mxu0 }
  0xf5   : > { %v6865_v46 = vld [vmem:[#allocation3 + $0x48] sm:$0xff]  ;;  %v6867_v47 = vld [vmem:[#allocation3 + $0x50] sm:$0xff]  ;;  %746 = vst.msk [vmem:[#allocation3 + $0x79] sm:$0xff] %vm627_vm2, %v713_v44  ;;  %640 = vst.msk [vmem:[#allocation2 + $0x60] sm:$0xff] %vm627_vm2, %v607_v42  ;;  %v610_v51 = vmax.f32 %v512_v43, 0.0  ;;  %v507_v52 = vadd.f32 %v6802_v50, %v506_v45 }
  0xf6   : > { %6017 = vmatprep.mubr.msk.f32.mxu1 %vm627_vm2, %v6865_v46  ;;  %v716_v54 = vld [vmem:[#allocation2 + $0x58] sm:$0xff]  ;;  %v5978_v55 = vpop.f32.mrf.mxu0 }
  0xf7   : > { %6018 = vmatmul.mubr.msk.f32.vlgmr.msra.gmra.mxu1 %vm627_vm2, %v6867_v47  ;;  %6121 = vmatmul.mubr.msk.f32.vlgmr.msra.gmra.mxu0 %vm627_vm2, %v6851_v37  ;;  %749 = vst.msk [vmem:[#allocation3 + $0x99] sm:$0xff] %vm627_vm2, %v716_v54  ;;  %643 = vst.msk [vmem:[#allocation2 + $0x78] sm:$0xff] %vm627_vm2, %v610_v51  ;;  %v609_v56 = vmax.f32 %v507_v52, 0.0  ;;  %v522_v57 = vadd.f32 %v5978_v55, %v6802_v50 }
  0xf8   : > { %6057 = vmatpush3.msra.mxu1 %v6790_v48  ;;  %6123 = vmatprep.mubr.msk.f32.mxu0 %vm627_vm2, %v6865_v46  ;;  %v715_v59 = vld [vmem:[#allocation2 + $0x50] sm:$0xff]  ;;  %v516_v60 = vpop.f32.mrf.mxu0  ;;  %v6890_v61 = vld [vmem:[#allocation3 + $0x60] sm:$0xff]  ;;  %v6892_v62 = vld [vmem:[#allocation3 + $0x68] sm:$0xff] }
  0xf9   : > { %6058 = vmatprep.subr.mxu1 %v5258_v53  ;;  %6225 = vmatpush3.msra.mxu0 %v6796_v49  ;;  %748 = vst.msk [vmem:[#allocation3 + $0x91] sm:$0xff] %vm627_vm2, %v715_v59  ;;  %642 = vst.msk [vmem:[#allocation2 + $0x70] sm:$0xff] %vm627_vm2, %v609_v56  ;;  %v612_v48 = vmax.f32 %v522_v57, 0.0  ;;  %v517_v63 = vadd.f32 %v6802_v50, %v516_v60  ;;  %v5256_v49 = vld [vmem:[%s8535_s2 + $0x20] sm:$0xff] }
  0xfa   : > { %6020 = vmatprep.mubr.msk.f32.mxu1 %vm627_vm2, %v6890_v61  ;;  %6059 = vmatpush3.msra.mxu1 %v5258_v53  ;;  %v718_v1 = vld [vmem:[#allocation2 + $0x68] sm:$0xff]  ;;  %v5981_v2 = vpop.f32.mrf.mxu0 }
  0xfb   : > { %6021 = vmatmul.mubr.msk.f32.gmra.mxu1 %vm627_vm2, %v6892_v62  ;;  %6124 = vmatmul.mubr.msk.f32.gmra.mxu0 %vm627_vm2, %v6867_v47  ;;  %751 = vst.msk [vmem:[#allocation3 + $0xb1] sm:$0xff] %vm627_vm2, %v718_v1  ;;  %645 = vst.msk [vmem:[#allocation2 + $0x88] sm:$0xff] %vm627_vm2, %v612_v48  ;;  %v611_v3 = vmax.f32 %v517_v63, 0.0  ;;  %v532_v4 = vadd.f32 %v5981_v2, %v6802_v50 }
  0xfc   : > { %6126 = vmatprep.mubr.msk.f32.mxu0 %vm627_vm2, %v6890_v61  ;;  %6060 = vmatprep.subr.mxu1 %v5257_v58  ;;  %v717_v5 = vld [vmem:[#allocation2 + $0x60] sm:$0xff]  ;;  %v526_v6 = vpop.f32.mrf.mxu0  ;;  %v6915_v7 = vld [vmem:[#allocation3 + $0x78] sm:$0xff] }
  0xfd   : > { %v6917_v8 = vld [vmem:[#allocation3 + $0x80] sm:$0xff]  ;;  %6061 = vmatpush3.msra.mxu1 %v5257_v58  ;;  %6226 = vmatprep.subr.mxu0 %v5366_v0  ;;  %750 = vst.msk [vmem:[#allocation3 + $0xa9] sm:$0xff] %vm627_vm2, %v717_v5  ;;  %644 = vst.msk [vmem:[#allocation2 + $0x80] sm:$0xff] %vm627_vm2, %v611_v3  ;;  %v614_v9 = vmax.f32 %v532_v4, 0.0  ;;  %v527_v10 = vadd.f32 %v6802_v50, %v526_v6 }
  0xfe   : > { %6023 = vmatprep.mubr.msk.f32.mxu1 %vm627_vm2, %v6915_v7  ;;  %6062 = vmatprep.subr.mxu1 %v5256_v49  ;;  %v720_v12 = vld [vmem:[#allocation2 + $0x78] sm:$0xff]  ;;  %v5984_v13 = vpop.f32.mrf.mxu0 }
  0xff   : > { %6024 = vmatmul.mubr.msk.f32.gmra.mxu1 %vm627_vm2, %v6917_v8  ;;  %6127 = vmatmul.mubr.msk.f32.gmra.mxu0 %vm627_vm2, %v6892_v62  ;;  %753 = vst.msk [vmem:[#allocation3 + $0xc9] sm:$0xff] %vm627_vm2, %v720_v12  ;;  %647 = vst.msk [vmem:[#allocation2 + $0x98] sm:$0xff] %vm627_vm2, %v614_v9  ;;  %v613_v15 = vmax.f32 %v527_v10, 0.0  ;;  %v542_v16 = vadd.f32 %v5984_v13, %v6802_v50 }
 0x100   : > { %6129 = vmatprep.mubr.msk.f32.mxu0 %vm627_vm2, %v6915_v7  ;;  %6063 = vmatpush3.msra.mxu1 %v5256_v49  ;;  %v719_v17 = vld [vmem:[#allocation2 + $0x70] sm:$0xff]  ;;  %v536_v18 = vpop.f32.mrf.mxu0  ;;  %v6943_v20 = vld [vmem:[#allocation3 + $0x98] sm:$0xff] }
 0x101   : > { %v6941_v19 = vld [vmem:[#allocation3 + $0x90] sm:$0xff]  ;;  %6168 = vmatprep.subr.mxu1 %v6927_v11  ;;  %6227 = vmatpush3.msra.mxu0 %v5366_v0  ;;  %752 = vst.msk [vmem:[#allocation3 + $0xc1] sm:$0xff] %vm627_vm2, %v719_v17  ;;  %646 = vst.msk [vmem:[#allocation2 + $0x90] sm:$0xff] %vm627_vm2, %v613_v15  ;;  %v616_v21 = vmax.f32 %v542_v16, 0.0  ;;  %v537_v22 = vadd.f32 %v6802_v50, %v536_v18 }
 0x102   : > { %6026 = vmatprep.mubr.msk.f32.mxu1 %vm627_vm2, %v6941_v19  ;;  %6228 = vmatprep.subr.mxu0 %v5365_v14  ;;  %v722_v24 = vld [vmem:[#allocation2 + $0x88] sm:$0xff]  ;;  %v5987_v27 = vpop.f32.mrf.mxu0 }
 0x103   : > { %6027 = vmatmul.mubr.msk.f32.gmra.mxu1 %vm627_vm2, %v6943_v20  ;;  %6130 = vmatmul.mubr.msk.f32.gmra.mxu0 %vm627_vm2, %v6917_v8  ;;  %755 = vst.msk [vmem:[#allocation3 + $0xe1] sm:$0xff] %vm627_vm2, %v722_v24  ;;  %649 = vst.msk [vmem:[#allocation2 + $0xa8] sm:$0xff] %vm627_vm2, %v616_v21  ;;  %v615_v28 = vmax.f32 %v537_v22, 0.0  ;;  %v552_v29 = vadd.f32 %v5987_v27, %v6802_v50 }
 0x104   : > { %6132 = vmatprep.mubr.msk.f32.mxu0 %vm627_vm2, %v6941_v19  ;;  %6229 = vmatpush3.msra.mxu0 %v5365_v14  ;;  %v721_v31 = vld [vmem:[#allocation2 + $0x80] sm:$0xff]  ;;  %v546_v32 = vpop.f32.mrf.mxu0  ;;  %v6968_v33 = vld [vmem:[#allocation3 + $0xa8] sm:$0xff]  ;;  %v6970_v34 = vld [vmem:[#allocation3 + $0xb0] sm:$0xff] }
 0x105   : > { %6230 = vmatprep.subr.mxu0 %v5364_v23  ;;  %754 = vst.msk [vmem:[#allocation3 + $0xd9] sm:$0xff] %vm627_vm2, %v721_v31  ;;  %648 = vst.msk [vmem:[#allocation2 + $0xa0] sm:$0xff] %vm627_vm2, %v615_v28  ;;  %v618_v35 = vmax.f32 %v552_v29, 0.0  ;;  %v547_v38 = vadd.f32 %v6802_v50, %v546_v32  ;;  %6029 = vmatprep.mubr.msk.f32.mxu1 %vm627_vm2, %v6968_v33 }
 0x106   : > { %6231 = vmatpush3.msra.mxu0 %v5364_v23  ;;  %v724_v39 = vld [vmem:[#allocation2 + $0x98] sm:$0xff]  ;;  %v5990_v40 = vpop.f32.mrf.mxu0 }
 0x107   : > { %6030 = vmatmul.mubr.msk.f32.gmra.mxu1 %vm627_vm2, %v6970_v34  ;;  %6133 = vmatmul.mubr.msk.f32.gmra.mxu0 %vm627_vm2, %v6943_v20  ;;  %757 = vst.msk [vmem:[#allocation3 + $0xf9] sm:$0xff] %vm627_vm2, %v724_v39  ;;  %651 = vst.msk [vmem:[#allocation2 + $0xb8] sm:$0xff] %vm627_vm2, %v618_v35  ;;  %v617_v41 = vmax.f32 %v547_v38, 0.0  ;;  %v562_v42 = vadd.f32 %v5990_v40, %v6802_v50 }
 0x108   : > { %6135 = vmatprep.mubr.msk.f32.mxu0 %vm627_vm2, %v6968_v33  ;;  %6336 = vmatprep.subr.mxu0 %v6966_v30  ;;  %v723_v43 = vld [vmem:[#allocation2 + $0x90] sm:$0xff]  ;;  %v556_v44 = vpop.f32.mrf.mxu0  ;;  %v6987_v45 = vld [vmem:[#allocation3 + $0xc0] sm:$0xff]  ;;  %v6989_v51 = vld [vmem:[#allocation3 + $0xc8] sm:$0xff] }
 0x109   : > { %756 = vst.msk [vmem:[#allocation3 + $0xf1] sm:$0xff] %vm627_vm2, %v723_v43  ;;  %650 = vst.msk [vmem:[#allocation2 + $0xb0] sm:$0xff] %vm627_vm2, %v617_v41  ;;  %v620_v52 = vmax.f32 %v562_v42, 0.0  ;;  %v557_v53 = vadd.f32 %v6802_v50, %v556_v44  ;;  %6032 = vmatprep.mubr.msk.f32.mxu1 %vm627_vm2, %v6987_v45 }
 0x10a   : > { %v726_v54 = vld [vmem:[#allocation2 + $0xa8] sm:$0xff]  ;;  %v5993_v55 = vpop.f32.mrf.mxu0 }
 0x10b   : > { %6033 = vmatmul.mubr.msk.f32.gmra.mxu1 %vm627_vm2, %v6989_v51  ;;  %6136 = vmatmul.mubr.msk.f32.gmra.mxu0 %vm627_vm2, %v6970_v34  ;;  %759 = vst.msk [vmem:[#allocation3 + $0x111] sm:$0xff] %vm627_vm2, %v726_v54  ;;  %653 = vst.msk [vmem:[#allocation2 + $0xc8] sm:$0xff] %vm627_vm2, %v620_v52  ;;  %v619_v56 = vmax.f32 %v557_v53, 0.0  ;;  %v572_v57 = vadd.f32 %v5993_v55, %v6802_v50  ;;  %v5330_v54 = vld [vmem:[%s8535_s2 + $0x70] sm:$0xff] }
 0x10c   : > { %6138 = vmatprep.mubr.msk.f32.mxu0 %vm627_vm2, %v6987_v45  ;;  %v725_v58 = vld [vmem:[#allocation2 + $0xa0] sm:$0xff]  ;;  %v566_v59 = vpop.f32.mrf.mxu0  ;;  %v7005_v60 = vld [vmem:[#allocation3 + $0xd8] sm:$0xff] }
 0x10d   : > { %v7007_v48 = vld [vmem:[#allocation3 + $0xe0] sm:$0xff]  ;;  %758 = vst.msk [vmem:[#allocation3 + $0x109] sm:$0xff] %vm627_vm2, %v725_v58  ;;  %652 = vst.msk [vmem:[#allocation2 + $0xc0] sm:$0xff] %vm627_vm2, %v619_v56  ;;  %v622_v63 = vmax.f32 %v572_v57, 0.0  ;;  %v567_v0 = vadd.f32 %v6802_v50, %v566_v59  ;;  %6035 = vmatprep.mubr.msk.f32.mxu1 %vm627_vm2, %v7005_v60  ;;  %v1644_v56 = vld [vmem:[#allocation3 + $0x198] sm:$0xff] }
 0x10e   : > { %v728_v1 = vld [vmem:[#allocation2 + $0xb8] sm:$0xff]  ;;  %v5996_v2 = vpop.f32.mrf.mxu0  ;;  %v7182_v59 = vld [vmem:[#allocation3 + $0x49] sm:$0xff] }
 0x10f   : > { %6036 = vmatmul.mubr.msk.f32.gmra.mxu1 %vm627_vm2, %v7007_v48  ;;  %6139 = vmatmul.mubr.msk.f32.gmra.mxu0 %vm627_vm2, %v6989_v51  ;;  %761 = vst.msk [vmem:[#allocation3 + $0x129] sm:$0xff] %vm627_vm2, %v728_v1  ;;  %655 = vst.msk [vmem:[#allocation2 + $0xd8] sm:$0xff] %vm627_vm2, %v622_v63  ;;  %v621_v49 = vmax.f32 %v567_v0, 0.0  ;;  %v582_v3 = vadd.f32 %v5996_v2, %v6802_v50  ;;  %v7159_v58 = vld [vmem:[%s8535_s2 + $0xb8] sm:$0xff]  ;;  %v5436_v63 = vld [vmem:[%s8535_s2 + $0xc0] sm:$0xff] }
 0x110   : > { %6141 = vmatprep.mubr.msk.f32.mxu0 %vm627_vm2, %v7005_v60  ;;  %v727_v4 = vld [vmem:[#allocation2 + $0xb0] sm:$0xff]  ;;  %v576_v5 = vpop.f32.mrf.mxu0  ;;  %v7025_v9 = vld [vmem:[#allocation3 + $0xf8] sm:$0xff] }
 0x111   : > { %v7023_v6 = vld [vmem:[#allocation3 + $0xf0] sm:$0xff]  ;;  %760 = vst.msk [vmem:[#allocation3 + $0x121] sm:$0xff] %vm627_vm2, %v727_v4  ;;  %654 = vst.msk [vmem:[#allocation2 + $0xd0] sm:$0xff] %vm627_vm2, %v621_v49  ;;  %v624_v10 = vmax.f32 %v582_v3, 0.0  ;;  %v577_v12 = vadd.f32 %v6802_v50, %v576_v5  ;;  %v7217_v0 = vld [vmem:[%s8535_s2 + $0x118] sm:$0xff] }
 0x112   : > { %6038 = vmatprep.mubr.msk.f32.mxu1 %vm627_vm2, %v7023_v6  ;;  %v730_v13 = vld [vmem:[#allocation2 + $0xc8] sm:$0xff]  ;;  %v5999_v14 = vpop.f32.mrf.mxu0  ;;  %v7266_v2 = vld [vmem:[#allocation3 + $0xd9] sm:$0xff]  ;;  %v7278_v3 = vld [vmem:[#allocation3 + $0xf1] sm:$0xff] }
 0x113   : > { %6039 = vmatmul.mubr.msk.f32.gmra.mxu1 %vm627_vm2, %v7025_v9  ;;  %6142 = vmatmul.mubr.msk.f32.gmra.mxu0 %vm627_vm2, %v7007_v48  ;;  %763 = vst.msk [vmem:[#allocation3 + $0x141] sm:$0xff] %vm627_vm2, %v730_v13  ;;  %657 = vst.msk [vmem:[#allocation2 + $0xe8] sm:$0xff] %vm627_vm2, %v624_v10  ;;  %v623_v15 = vmax.f32 %v577_v12, 0.0  ;;  %v592_v16 = vadd.f32 %v5999_v14, %v6802_v50  ;;  %v7260_v1 = vld [vmem:[#allocation3 + $0xc9] sm:$0xff]  ;;  %v7272_v49 = vld [vmem:[#allocation3 + $0xe1] sm:$0xff] }
 0x114   : > { %6144 = vmatprep.mubr.msk.f32.mxu0 %vm627_vm2, %v7023_v6  ;;  %v729_v17 = vld [vmem:[#allocation2 + $0xc0] sm:$0xff]  ;;  %v7041_v18 = vld [vmem:[#allocation3 + $0x108] sm:$0xff]  ;;  %v7043_v21 = vld [vmem:[#allocation3 + $0x110] sm:$0xff]  ;;  %v586_v22 = vpop.f32.mrf.mxu0 }
 0x115   : > { %762 = vst.msk [vmem:[#allocation3 + $0x139] sm:$0xff] %vm627_vm2, %v729_v17  ;;  %656 = vst.msk [vmem:[#allocation2 + $0xe0] sm:$0xff] %vm627_vm2, %v623_v15  ;;  %6041 = vmatprep.mubr.msk.f32.mxu1 %vm627_vm2, %v7041_v18  ;;  %v626_v23 = vmax.f32 %v592_v16, 0.0  ;;  %v587_v24 = vadd.f32 %v6802_v50, %v586_v22  ;;  %v7284_v4 = vld [vmem:[#allocation3 + $0xf9] sm:$0xff]  ;;  %v7290_v5 = vld [vmem:[#allocation3 + $0x109] sm:$0xff] }
 0x116   : > { %v732_v27 = vld [vmem:[#allocation2 + $0xd8] sm:$0xff]  ;;  %v6010_v55 = vpop.f32.mrf.mxu0  ;;  %v7308_v10 = vld [vmem:[#allocation3 + $0x129] sm:$0xff]  ;;  %v2068_v13 = vld [vmem:[#allocation3 + $0x1] sm:$0xff] }
 0x117   : > { %6042 = vmatmul.mubr.msk.f32.gmra.mxu1 %vm627_vm2, %v7043_v21  ;;  %6145 = vmatmul.mubr.msk.f32.gmra.mxu0 %vm627_vm2, %v7025_v9  ;;  %765 = vst.msk [vmem:[#allocation3 + $0x159] sm:$0xff] %vm627_vm2, %v732_v27  ;;  %659 = vst.msk [vmem:[#allocation2 + $0xf8] sm:$0xff] %vm627_vm2, %v626_v23  ;;  %v625_v28 = vmax.f32 %v587_v24, 0.0  ;;  %v2069_v16 = vld [vmem:[#allocation3 + $0x9] sm:$0xff] }
 0x118   : > { %6147 = vmatprep.mubr.msk.f32.mxu0 %vm627_vm2, %v7041_v18  ;;  %v731_v29 = vld [vmem:[#allocation2 + $0xd0] sm:$0xff]  ;;  %v7058_v31 = vld [vmem:[#allocation3 + $0x120] sm:$0xff]  ;;  %v7060_v32 = vld [vmem:[#allocation3 + $0x128] sm:$0xff]  ;;  %1128 = vst.msk [vmem:[#allocation4 + $0x8] sm:$0xff] %vm627_vm2, %v6010_v55  ;;  %v968_v57 = vpop.f32.mrf.mxu0 }
 0x119   : > { %764 = vst.msk [vmem:[#allocation3 + $0x151] sm:$0xff] %vm627_vm2, %v731_v29  ;;  %658 = vst.msk [vmem:[#allocation2 + $0xf0] sm:$0xff] %vm627_vm2, %v625_v28  ;;  %6044 = vmatprep.mubr.msk.f32.mxu1 %vm627_vm2, %v7058_v31  ;;  %v5401_v23 = vld [vmem:[%s8535_s2 + $0xa8] sm:$0xff]  ;;  %v5400_v29 = vld [vmem:[%s8535_s2 + $0xa0] sm:$0xff] }
 0x11a   : > { %v734_v50 = vld [vmem:[#allocation2 + $0xe8] sm:$0xff]  ;;  %1127 = vst.msk [vmem:[#allocation4] sm:$0xff] %vm627_vm2, %v968_v57 }
 0x11b   : > { %6045 = vmatmul.mubr.msk.f32.gmra.mxu1 %vm627_vm2, %v7060_v32  ;;  %6148 = vmatmul.mubr.msk.f32.gmra.mxu0 %vm627_vm2, %v7043_v21  ;;  %767 = vst.msk [vmem:[#allocation3 + $0x171] sm:$0xff] %vm627_vm2, %v734_v50  ;;  %v7320_v14 = vld [vmem:[#allocation3 + $0x141] sm:$0xff]  ;;  %v7464_v57 = vld [vmem:[#allocation3 + $0xaa] sm:$0xff] }
 0x11c   : > { %6150 = vmatprep.mubr.msk.f32.mxu0 %vm627_vm2, %v7058_v31  ;;  %v733_v35 = vld [vmem:[#allocation2 + $0xe0] sm:$0xff]  ;;  %v7073_v38 = vld [vmem:[#allocation3 + $0x138] sm:$0xff] }
 0x11d   : > { %v7075_v39 = vld [vmem:[#allocation3 + $0x140] sm:$0xff]  ;;  %766 = vst.msk [vmem:[#allocation3 + $0x169] sm:$0xff] %vm627_vm2, %v733_v35  ;;  %6047 = vmatprep.mubr.msk.f32.mxu1 %vm627_vm2, %v7073_v38  ;;  %v5510_v35 = vld [vmem:[%s8535_s2 + $0x110] sm:$0xff] }
 0x11e   : > { %v736_v40 = vld [vmem:[#allocation2 + $0xf8] sm:$0xff]  ;;  %v3430_v27 = vld [vmem:[#allocation3 + $0x2] sm:$0xff] }
 0x11f   : > { %6048 = vmatmul.mubr.msk.f32.gmra.mxu1 %vm627_vm2, %v7075_v39  ;;  %6151 = vmatmul.mubr.msk.f32.gmra.mxu0 %vm627_vm2, %v7060_v32  ;;  %769 = vst.msk [vmem:[#allocation3 + $0x189] sm:$0xff] %vm627_vm2, %v736_v40  ;;  %v7314_v12 = vld [vmem:[#allocation3 + $0x139] sm:$0xff]  ;;  %v5509_v40 = vld [vmem:[%s8535_s2 + $0x108] sm:$0xff] }
 0x120   : > { %6153 = vmatprep.mubr.msk.f32.mxu0 %vm627_vm2, %v7073_v38  ;;  %v735_v41 = vld [vmem:[#allocation2 + $0xf0] sm:$0xff]  ;;  %v7089_v43 = vld [vmem:[#allocation3 + $0x158] sm:$0xff]  ;;  %v7446_v55 = vld [vmem:[#allocation3 + $0x82] sm:$0xff] }
 0x121   : > { %v7087_v42 = vld [vmem:[#allocation3 + $0x150] sm:$0xff]  ;;  %768 = vst.msk [vmem:[#allocation3 + $0x181] sm:$0xff] %vm627_vm2, %v735_v41  ;;  %v7331_v17 = vld [vmem:[#allocation3 + $0x159] sm:$0xff] }
 0x122   : > { %6050 = vmatprep.mubr.msk.f32.mxu1 %vm627_vm2, %v7087_v42  ;;  %v7326_v15 = vld [vmem:[#allocation3 + $0x151] sm:$0xff]  ;;  %v7381_v50 = vld [vmem:[#allocation3 + $0x1a] sm:$0xff] }
 0x123   : > { %6051 = vmatmul.mubr.msk.f32.gmra.mxu1 %vm627_vm2, %v7089_v43  ;;  %6154 = vmatmul.mubr.msk.f32.gmra.mxu0 %vm627_vm2, %v7075_v39  ;;  %v7346_v22 = vld [vmem:[#allocation3 + $0x171] sm:$0xff]  ;;  %v7407_v41 = vld [vmem:[#allocation3 + $0x3a] sm:$0xff] }
 0x124   : > { %6156 = vmatprep.mubr.msk.f32.mxu0 %vm627_vm2, %v7087_v42  ;;  %v7100_v44 = vld [vmem:[#allocation3 + $0x168] sm:$0xff]  ;;  %v7102_v52 = vld [vmem:[#allocation3 + $0x170] sm:$0xff] }
 0x125   : > { %6053 = vmatprep.mubr.msk.f32.mxu1 %vm627_vm2, %v7100_v44 }
 0x126   : > { %v7361_v28 = vld [vmem:[#allocation3 + $0x189] sm:$0xff] }
 0x127   : > { %6054 = vmatmul.mubr.msk.f32.gmra.mxu1 %vm627_vm2, %v7102_v52  ;;  %6157 = vmatmul.mubr.msk.f32.gmra.mxu0 %vm627_vm2, %v7089_v43 }
 0x128   : > { %6064 = vmatprep.mubr.msk.f32.mxu1 %vm627_vm2, %v6835_v25  ;;  %6159 = vmatprep.mubr.msk.f32.mxu0 %vm627_vm2, %v7100_v44  ;;  %v7114_v53 = vld [vmem:[#allocation3 + $0x180] sm:$0xff]  ;;  %v7126_v25 = vld [vmem:[#allocation3 + $0x188] sm:$0xff] }
 0x129   : > { %v7355_v24 = vld [vmem:[#allocation3 + $0x181] sm:$0xff] }
 0x12b   : > { %6065 = vmatmul.mubr.msk.f32.vlgmr.msra.gmra.mxu1 %vm627_vm2, %v6837_v26  ;;  %6160 = vmatmul.mubr.msk.f32.gmra.mxu0 %vm627_vm2, %v7102_v52  ;;  %v5329_v26 = vld [vmem:[%s8535_s2 + $0x68] sm:$0xff] }
 0x12c   : > { %6169 = vmatpush3.msra.mxu1 %v6927_v11  ;;  %6067 = vmatprep.mubr.msk.f32.mxu1 %vm627_vm2, %v6849_v36  ;;  %v1645_v36 = vld [vmem:[#allocation3 + $0x1a0] sm:$0xff] }
 0x12d   : > { %6162 = vmatprep.mubr.msk.f32.mxu0 %vm627_vm2, %v7114_v53  ;;  %6170 = vmatprep.subr.mxu1 %v5330_v54  ;;  %v5328_v11 = vld [vmem:[%s8535_s2 + $0x60] sm:$0xff] }
 0x12e   : > { %6171 = vmatpush3.msra.mxu1 %v5330_v54  ;;  %v7440_v54 = vld [vmem:[#allocation3 + $0x7a] sm:$0xff] }
 0x12f   : > { %6068 = vmatmul.mubr.msk.f32.gmra.mxu1 %vm627_vm2, %v6851_v37  ;;  %6163 = vmatmul.mubr.msk.f32.gmra.mxu0 %vm627_vm2, %v7126_v25  ;;  %v7148_v37 = vld [vmem:[#allocation3 + $0x19] sm:$0xff] }
 0x130   : > { %6070 = vmatprep.mubr.msk.f32.mxu1 %vm627_vm2, %v6865_v46  ;;  %6165 = vmatprep.mubr.msk.f32.mxu0 %vm627_vm2, %v1644_v56  ;;  %v7154_v46 = vld [vmem:[#allocation3 + $0x21] sm:$0xff] }
 0x131   : > { %6172 = vmatprep.subr.mxu1 %v5329_v26  ;;  %v7458_v56 = vld [vmem:[#allocation3 + $0x9a] sm:$0xff] }
 0x132   : > { %6173 = vmatpush3.msra.mxu1 %v5329_v26  ;;  %v7470_v26 = vld [vmem:[#allocation3 + $0xb2] sm:$0xff] }
 0x133   : > { %6071 = vmatmul.mubr.msk.f32.gmra.mxu1 %vm627_vm2, %v6867_v47  ;;  %6166 = vmatmul.mubr.msk.f32.gmra.mxu0 %vm627_vm2, %v1645_v36  ;;  %v7165_v47 = vld [vmem:[#allocation3 + $0x31] sm:$0xff]  ;;  %v7476_v36 = vld [vmem:[#allocation3 + $0xc2] sm:$0xff] }
 0x134   : > { %6073 = vmatprep.mubr.msk.f32.mxu1 %vm627_vm2, %v6890_v61  ;;  %6232 = vmatprep.mubr.msk.f32.mxu0 %vm627_vm2, %v7148_v37  ;;  %v5438_v61 = vld [vmem:[%s8535_s2 + $0xd0] sm:$0xff] }
 0x135   : > { %6174 = vmatprep.subr.mxu1 %v5328_v11 }
 0x136   : > { %6175 = vmatpush3.msra.mxu1 %v5328_v11  ;;  %v7482_v11 = vld [vmem:[#allocation3 + $0xca] sm:$0xff] }
 0x137   : > { %6074 = vmatmul.mubr.msk.f32.gmra.mxu1 %vm627_vm2, %v6892_v62  ;;  %6233 = vmatmul.mubr.msk.f32.vlgmr.msra.gmra.mxu0 %vm627_vm2, %v7154_v46  ;;  %v7176_v62 = vld [vmem:[#allocation3 + $0x39] sm:$0xff] }
 0x138   : > { %6076 = vmatprep.mubr.msk.f32.mxu1 %vm627_vm2, %v6915_v7  ;;  %6235 = vmatprep.mubr.msk.f32.mxu0 %vm627_vm2, %v7165_v47  ;;  %v5437_v7 = vld [vmem:[%s8535_s2 + $0xc8] sm:$0xff] }
 0x139   : > { %6280 = vmatprep.subr.mxu1 %v7159_v58  ;;  %6337 = vmatpush3.msra.mxu0 %v6966_v30  ;;  %v7191_v30 = vld [vmem:[#allocation3 + $0x51] sm:$0xff] }
 0x13a   : > { %6338 = vmatprep.subr.mxu0 %v5438_v61 }
 0x13b   : > { %6077 = vmatmul.mubr.msk.f32.gmra.mxu1 %vm627_vm2, %v6917_v8  ;;  %6236 = vmatmul.mubr.msk.f32.gmra.mxu0 %vm627_vm2, %v7176_v62  ;;  %v7197_v8 = vld [vmem:[#allocation3 + $0x61] sm:$0xff] }
 0x13c   : > { %6079 = vmatprep.mubr.msk.f32.mxu1 %vm627_vm2, %v6941_v19  ;;  %6238 = vmatprep.mubr.msk.f32.mxu0 %vm627_vm2, %v7182_v59  ;;  %v7206_v19 = vld [vmem:[#allocation3 + $0x69] sm:$0xff] }
 0x13d   : > { %6339 = vmatpush3.msra.mxu0 %v5438_v61  ;;  %v7506_v61 = vld [vmem:[#allocation3 + $0xfa] sm:$0xff] }
 0x13e   : > { %6340 = vmatprep.subr.mxu0 %v5437_v7 }
 0x13f   : > { %6080 = vmatmul.mubr.msk.f32.gmra.mxu1 %vm627_vm2, %v6943_v20  ;;  %6239 = vmatmul.mubr.msk.f32.gmra.mxu0 %vm627_vm2, %v7191_v30  ;;  %v7212_v20 = vld [vmem:[#allocation3 + $0x79] sm:$0xff] }
 0x140   : > { %6082 = vmatprep.mubr.msk.f32.mxu1 %vm627_vm2, %v6968_v33  ;;  %6241 = vmatprep.mubr.msk.f32.mxu0 %vm627_vm2, %v7197_v8  ;;  %v7223_v33 = vld [vmem:[#allocation3 + $0x81] sm:$0xff] }
 0x141   : > { %6341 = vmatpush3.msra.mxu0 %v5437_v7  ;;  %v7512_v7 = vld [vmem:[#allocation3 + $0x10a] sm:$0xff] }
 0x142   : > { %6342 = vmatprep.subr.mxu0 %v5436_v63 }
 0x143   : > { %6083 = vmatmul.mubr.msk.f32.gmra.mxu1 %vm627_vm2, %v6970_v34  ;;  %6242 = vmatmul.mubr.msk.f32.gmra.mxu0 %vm627_vm2, %v7206_v19  ;;  %v7230_v34 = vld [vmem:[#allocation3 + $0x91] sm:$0xff] }
 0x144   : > { %6085 = vmatprep.mubr.msk.f32.mxu1 %vm627_vm2, %v6987_v45  ;;  %6244 = vmatprep.mubr.msk.f32.mxu0 %vm627_vm2, %v7212_v20  ;;  %v7236_v45 = vld [vmem:[#allocation3 + $0x99] sm:$0xff] }
 0x145   : > { %6343 = vmatpush3.msra.mxu0 %v5436_v63  ;;  %v7518_v63 = vld [vmem:[#allocation3 + $0x112] sm:$0xff] }
 0x146   : > { %6448 = vmatprep.subr.mxu0 %v7217_v0 }
 0x147   : > { %6086 = vmatmul.mubr.msk.f32.gmra.mxu1 %vm627_vm2, %v6989_v51  ;;  %6245 = vmatmul.mubr.msk.f32.gmra.mxu0 %vm627_vm2, %v7223_v33  ;;  %v7242_v51 = vld [vmem:[#allocation3 + $0xa9] sm:$0xff] }
 0x148   : > { %6088 = vmatprep.mubr.msk.f32.mxu1 %vm627_vm2, %v7005_v60  ;;  %6247 = vmatprep.mubr.msk.f32.mxu0 %vm627_vm2, %v7230_v34  ;;  %v7248_v60 = vld [vmem:[#allocation3 + $0xb1] sm:$0xff] }
 0x14b   : > { %6089 = vmatmul.mubr.msk.f32.gmra.mxu1 %vm627_vm2, %v7007_v48  ;;  %6248 = vmatmul.mubr.msk.f32.gmra.mxu0 %vm627_vm2, %v7236_v45  ;;  %v7254_v48 = vld [vmem:[#allocation3 + $0xc1] sm:$0xff] }
 0x14c   : > { %6091 = vmatprep.mubr.msk.f32.mxu1 %vm627_vm2, %v7023_v6  ;;  %6250 = vmatprep.mubr.msk.f32.mxu0 %vm627_vm2, %v7242_v51  ;;  %v7296_v6 = vld [vmem:[#allocation3 + $0x111] sm:$0xff] }
 0x14f   : > { %6092 = vmatmul.mubr.msk.f32.gmra.mxu1 %vm627_vm2, %v7025_v9  ;;  %6251 = vmatmul.mubr.msk.f32.gmra.mxu0 %vm627_vm2, %v7248_v60  ;;  %v7302_v9 = vld [vmem:[#allocation3 + $0x121] sm:$0xff] }
 0x150   : > { %6094 = vmatprep.mubr.msk.f32.mxu1 %vm627_vm2, %v7041_v18  ;;  %6253 = vmatprep.mubr.msk.f32.mxu0 %vm627_vm2, %v7254_v48  ;;  %v5402_v18 = vld [vmem:[%s8535_s2 + $0xb0] sm:$0xff] }
 0x153   : > { %6095 = vmatmul.mubr.msk.f32.gmra.mxu1 %vm627_vm2, %v7043_v21  ;;  %6254 = vmatmul.mubr.msk.f32.gmra.mxu0 %vm627_vm2, %v7260_v1  ;;  %v7342_v21 = vld [vmem:[#allocation3 + $0x169] sm:$0xff] }
 0x154   : > { %6097 = vmatprep.mubr.msk.f32.mxu1 %vm627_vm2, %v7058_v31  ;;  %6256 = vmatprep.mubr.msk.f32.mxu0 %vm627_vm2, %v7266_v2  ;;  %v3431_v31 = vld [vmem:[#allocation3 + $0xa] sm:$0xff] }
 0x157   : > { %6098 = vmatmul.mubr.msk.f32.gmra.mxu1 %vm627_vm2, %v7060_v32  ;;  %6257 = vmatmul.mubr.msk.f32.gmra.mxu0 %vm627_vm2, %v7272_v49  ;;  %v7376_v32 = vld [vmem:[%s8535_s2 + $0xf8] sm:$0xff] }
 0x158   : > { %6100 = vmatprep.mubr.msk.f32.mxu1 %vm627_vm2, %v7073_v38  ;;  %6259 = vmatprep.mubr.msk.f32.mxu0 %vm627_vm2, %v7278_v3  ;;  %v7392_v38 = vld [vmem:[#allocation3 + $0x22] sm:$0xff] }
 0x15b   : > { %6101 = vmatmul.mubr.msk.f32.gmra.mxu1 %vm627_vm2, %v7075_v39  ;;  %6260 = vmatmul.mubr.msk.f32.gmra.mxu0 %vm627_vm2, %v7284_v4  ;;  %v7398_v39 = vld [vmem:[#allocation3 + $0x32] sm:$0xff] }
 0x15c   : > { %6103 = vmatprep.mubr.msk.f32.mxu1 %vm627_vm2, %v7087_v42  ;;  %6262 = vmatprep.mubr.msk.f32.mxu0 %vm627_vm2, %v7290_v5  ;;  %v7413_v42 = vld [vmem:[#allocation3 + $0x4a] sm:$0xff] }
 0x15f   : > { %6104 = vmatmul.mubr.msk.f32.gmra.mxu1 %vm627_vm2, %v7089_v43  ;;  %6263 = vmatmul.mubr.msk.f32.gmra.mxu0 %vm627_vm2, %v7296_v6  ;;  %v5508_v43 = vld [vmem:[%s8535_s2 + $0x100] sm:$0xff] }
 0x160   : > { %6106 = vmatprep.mubr.msk.f32.mxu1 %vm627_vm2, %v7100_v44  ;;  %6265 = vmatprep.mubr.msk.f32.mxu0 %vm627_vm2, %v7302_v9  ;;  %v7422_v44 = vld [vmem:[#allocation3 + $0x52] sm:$0xff] }
 0x163   : > { %6107 = vmatmul.mubr.msk.f32.gmra.mxu1 %vm627_vm2, %v7102_v52  ;;  %6266 = vmatmul.mubr.msk.f32.gmra.mxu0 %vm627_vm2, %v7308_v10  ;;  %v7428_v52 = vld [vmem:[#allocation3 + $0x62] sm:$0xff] }
 0x164   : > { %6109 = vmatprep.mubr.msk.f32.mxu1 %vm627_vm2, %v7114_v53  ;;  %6268 = vmatprep.mubr.msk.f32.mxu0 %vm627_vm2, %v7314_v12  ;;  %v7434_v53 = vld [vmem:[#allocation3 + $0x6a] sm:$0xff] }
 0x167   : > { %6110 = vmatmul.mubr.msk.f32.gmra.mxu1 %vm627_vm2, %v7126_v25  ;;  %6269 = vmatmul.mubr.msk.f32.gmra.mxu0 %vm627_vm2, %v7320_v14  ;;  %v7452_v25 = vld [vmem:[#allocation3 + $0x92] sm:$0xff] }
 0x168   : > { %6271 = vmatprep.mubr.msk.f32.mxu0 %vm627_vm2, %v7326_v15  ;;  %6176 = vmatprep.mubr.msk.f32.mxu1 %vm627_vm2, %v2068_v13  ;;  %v7530_v13 = vld [vmem:[#allocation3 + $0x12a] sm:$0xff] }
 0x16b   : > { %6177 = vmatmul.mubr.msk.f32.vlgmr.msra.gmra.mxu1 %vm627_vm2, %v2069_v16  ;;  %6272 = vmatmul.mubr.msk.f32.gmra.mxu0 %vm627_vm2, %v7331_v17  ;;  %v7536_v16 = vld [vmem:[#allocation3 + $0x13a] sm:$0xff] }
 0x16c   : > { %6281 = vmatpush3.msra.mxu1 %v7159_v58  ;;  %6179 = vmatprep.mubr.msk.f32.mxu1 %vm627_vm2, %v7148_v37  ;;  %v7488_v37 = vld [vmem:[#allocation3 + $0xda] sm:$0xff]  ;;  %v7500_v58 = vld [vmem:[#allocation3 + $0xf2] sm:$0xff] }
 0x16d   : > { %6274 = vmatprep.mubr.msk.f32.mxu0 %vm627_vm2, %v7342_v21  ;;  %6282 = vmatprep.subr.mxu1 %v5402_v18 }
 0x16e   : > { %6283 = vmatpush3.msra.mxu1 %v5402_v18  ;;  %v7542_v18 = vld [vmem:[#allocation3 + $0x142] sm:$0xff] }
 0x16f   : > { %6180 = vmatmul.mubr.msk.f32.gmra.mxu1 %vm627_vm2, %v7154_v46  ;;  %6275 = vmatmul.mubr.msk.f32.gmra.mxu0 %vm627_vm2, %v7346_v22  ;;  %v7494_v46 = vld [vmem:[#allocation3 + $0xe2] sm:$0xff] }
 0x170   : > { %6182 = vmatprep.mubr.msk.f32.mxu1 %vm627_vm2, %v7165_v47  ;;  %6277 = vmatprep.mubr.msk.f32.mxu0 %vm627_vm2, %v7355_v24 }
 0x171   : > { %6284 = vmatprep.subr.mxu1 %v5401_v23 }
 0x172   : > { %6285 = vmatpush3.msra.mxu1 %v5401_v23  ;;  %v5474_v23 = vld [vmem:[%s8535_s2 + $0xf0] sm:$0xff] }
 0x173   : > { %6183 = vmatmul.mubr.msk.f32.gmra.mxu1 %vm627_vm2, %v7176_v62  ;;  %6278 = vmatmul.mubr.msk.f32.gmra.mxu0 %vm627_vm2, %v7361_v28 }
 0x174   : > { %6185 = vmatprep.mubr.msk.f32.mxu1 %vm627_vm2, %v7182_v59  ;;  %6344 = vmatprep.mubr.msk.f32.mxu0 %vm627_vm2, %v3430_v27  ;;  %v7558_v27 = vld [vmem:[#allocation3 + $0x15a] sm:$0xff] }
 0x175   : > { %6286 = vmatprep.subr.mxu1 %v5400_v29 }
 0x176   : > { %6287 = vmatpush3.msra.mxu1 %v5400_v29 }
 0x177   : > { %6186 = vmatmul.mubr.msk.f32.gmra.mxu1 %vm627_vm2, %v7191_v30  ;;  %6345 = vmatmul.mubr.msk.f32.vlgmr.msra.gmra.mxu0 %vm627_vm2, %v3431_v31 }
 0x178   : > { %6188 = vmatprep.mubr.msk.f32.mxu1 %vm627_vm2, %v7197_v8  ;;  %6347 = vmatprep.mubr.msk.f32.mxu0 %vm627_vm2, %v7381_v50 }
 0x179   : > { %6392 = vmatprep.subr.mxu1 %v7376_v32  ;;  %6449 = vmatpush3.msra.mxu0 %v7217_v0  ;;  %v7524_v0 = vld [vmem:[#allocation3 + $0x122] sm:$0xff] }
 0x17a   : > { %6450 = vmatprep.subr.mxu0 %v5510_v35 }
 0x17b   : > { %6189 = vmatmul.mubr.msk.f32.gmra.mxu1 %vm627_vm2, %v7206_v19  ;;  %6348 = vmatmul.mubr.msk.f32.gmra.mxu0 %vm627_vm2, %v7392_v38 }
 0x17c   : > { %6191 = vmatprep.mubr.msk.f32.mxu1 %vm627_vm2, %v7212_v20  ;;  %6350 = vmatprep.mubr.msk.f32.mxu0 %vm627_vm2, %v7398_v39 }
 0x17d   : > { %6451 = vmatpush3.msra.mxu0 %v5510_v35 }
 0x17e   : > { %6452 = vmatprep.subr.mxu0 %v5509_v40 }
 0x17f   : > { %6192 = vmatmul.mubr.msk.f32.gmra.mxu1 %vm627_vm2, %v7223_v33  ;;  %6351 = vmatmul.mubr.msk.f32.gmra.mxu0 %vm627_vm2, %v7407_v41 }
 0x180   : > { %6194 = vmatprep.mubr.msk.f32.mxu1 %vm627_vm2, %v7230_v34  ;;  %6353 = vmatprep.mubr.msk.f32.mxu0 %vm627_vm2, %v7413_v42 }
 0x181   : > { %6453 = vmatpush3.msra.mxu0 %v5509_v40 }
 0x182   : > { %6454 = vmatprep.subr.mxu0 %v5508_v43 }
 0x183   : > { %6195 = vmatmul.mubr.msk.f32.gmra.mxu1 %vm627_vm2, %v7236_v45  ;;  %6354 = vmatmul.mubr.msk.f32.gmra.mxu0 %vm627_vm2, %v7422_v44 }
 0x184   : > { %6197 = vmatprep.mubr.msk.f32.mxu1 %vm627_vm2, %v7242_v51  ;;  %6356 = vmatprep.mubr.msk.f32.mxu0 %vm627_vm2, %v7428_v52 }
 0x185   : > { %6455 = vmatpush3.msra.mxu0 %v5508_v43 }
 0x187   : > { %6198 = vmatmul.mubr.msk.f32.gmra.mxu1 %vm627_vm2, %v7248_v60  ;;  %6357 = vmatmul.mubr.msk.f32.gmra.mxu0 %vm627_vm2, %v7434_v53 }
 0x188   : > { %6200 = vmatprep.mubr.msk.f32.mxu1 %vm627_vm2, %v7254_v48  ;;  %6359 = vmatprep.mubr.msk.f32.mxu0 %vm627_vm2, %v7440_v54 }
 0x18b   : > { %6201 = vmatmul.mubr.msk.f32.gmra.mxu1 %vm627_vm2, %v7260_v1  ;;  %6360 = vmatmul.mubr.msk.f32.gmra.mxu0 %vm627_vm2, %v7446_v55 }
 0x18c   : > { %6203 = vmatprep.mubr.msk.f32.mxu1 %vm627_vm2, %v7266_v2  ;;  %6362 = vmatprep.mubr.msk.f32.mxu0 %vm627_vm2, %v7452_v25 }
 0x18f   : > { %6204 = vmatmul.mubr.msk.f32.gmra.mxu1 %vm627_vm2, %v7272_v49  ;;  %6363 = vmatmul.mubr.msk.f32.gmra.mxu0 %vm627_vm2, %v7458_v56 }
 0x190   : > { %6206 = vmatprep.mubr.msk.f32.mxu1 %vm627_vm2, %v7278_v3  ;;  %6365 = vmatprep.mubr.msk.f32.mxu0 %vm627_vm2, %v7464_v57 }
 0x193   : > { %6207 = vmatmul.mubr.msk.f32.gmra.mxu1 %vm627_vm2, %v7284_v4  ;;  %6366 = vmatmul.mubr.msk.f32.gmra.mxu0 %vm627_vm2, %v7470_v26 }
 0x194   : > { %6209 = vmatprep.mubr.msk.f32.mxu1 %vm627_vm2, %v7290_v5  ;;  %6368 = vmatprep.mubr.msk.f32.mxu0 %vm627_vm2, %v7476_v36 }
 0x197   : > { %6210 = vmatmul.mubr.msk.f32.gmra.mxu1 %vm627_vm2, %v7296_v6  ;;  %6369 = vmatmul.mubr.msk.f32.gmra.mxu0 %vm627_vm2, %v7482_v11 }
 0x198   : > { %6212 = vmatprep.mubr.msk.f32.mxu1 %vm627_vm2, %v7302_v9  ;;  %6371 = vmatprep.mubr.msk.f32.mxu0 %vm627_vm2, %v7488_v37 }
 0x19b   : > { %6213 = vmatmul.mubr.msk.f32.gmra.mxu1 %vm627_vm2, %v7308_v10  ;;  %6372 = vmatmul.mubr.msk.f32.gmra.mxu0 %vm627_vm2, %v7494_v46 }
 0x19c   : > { %6215 = vmatprep.mubr.msk.f32.mxu1 %vm627_vm2, %v7314_v12  ;;  %6374 = vmatprep.mubr.msk.f32.mxu0 %vm627_vm2, %v7500_v58 }
 0x19f   : > { %6216 = vmatmul.mubr.msk.f32.gmra.mxu1 %vm627_vm2, %v7320_v14  ;;  %6375 = vmatmul.mubr.msk.f32.gmra.mxu0 %vm627_vm2, %v7506_v61 }
 0x1a0   : > { %6218 = vmatprep.mubr.msk.f32.mxu1 %vm627_vm2, %v7326_v15  ;;  %6377 = vmatprep.mubr.msk.f32.mxu0 %vm627_vm2, %v7512_v7 }
 0x1a3   : > { %6219 = vmatmul.mubr.msk.f32.gmra.mxu1 %vm627_vm2, %v7331_v17  ;;  %6378 = vmatmul.mubr.msk.f32.gmra.mxu0 %vm627_vm2, %v7518_v63 }
 0x1a4   : > { %6221 = vmatprep.mubr.msk.f32.mxu1 %vm627_vm2, %v7342_v21  ;;  %6380 = vmatprep.mubr.msk.f32.mxu0 %vm627_vm2, %v7524_v0 }
 0x1a7   : > { %6222 = vmatmul.mubr.msk.f32.gmra.mxu1 %vm627_vm2, %v7346_v22  ;;  %6381 = vmatmul.mubr.msk.f32.gmra.mxu0 %vm627_vm2, %v7530_v13 }
 0x1a8   : > { %6288 = vmatprep.mubr.msk.f32.mxu1 %vm627_vm2, %v7165_v47  ;;  %6383 = vmatprep.mubr.msk.f32.mxu0 %vm627_vm2, %v7536_v16  ;;  %v7554_v47 = vld [vmem:[#allocation3 + $0x152] sm:$0xff] }
 0x1ab   : > { %6289 = vmatmul.mubr.msk.f32.vlgmr.msra.gmra.mxu1 %vm627_vm2, %v7176_v62  ;;  %6384 = vmatmul.mubr.msk.f32.gmra.mxu0 %vm627_vm2, %v7542_v18  ;;  %v5473_v62 = vld [vmem:[%s8535_s2 + $0xe8] sm:$0xff] }
 0x1ac   : > { %6393 = vmatpush3.msra.mxu1 %v7376_v32  ;;  %6291 = vmatprep.mubr.msk.f32.mxu1 %vm627_vm2, %v7182_v59  ;;  %v7567_v59 = vld [vmem:[#allocation3 + $0x16a] sm:$0xff]  ;;  %v7575_v32 = vld [vmem:[#allocation3 + $0x172] sm:$0xff] }
 0x1ad   : > { %6386 = vmatprep.mubr.msk.f32.mxu0 %vm627_vm2, %v7554_v47  ;;  %6394 = vmatprep.subr.mxu1 %v5474_v23 }
 0x1ae   : > { %6395 = vmatpush3.msra.mxu1 %v5474_v23  ;;  %v6013_v29 = vpop.f32.mrf.mxu0 }
 0x1af   : > { %6292 = vmatmul.mubr.msk.f32.gmra.mxu1 %vm627_vm2, %v7191_v30  ;;  %6387 = vmatmul.mubr.msk.f32.gmra.mxu0 %vm627_vm2, %v7558_v27  ;;  %1130 = vst.msk [vmem:[#allocation4 + $0x18] sm:$0xff] %vm627_vm2, %v6013_v29  ;;  %v5472_v30 = vld [vmem:[%s8535_s2 + $0xe0] sm:$0xff] }
 0x1b0   : > { %6294 = vmatprep.mubr.msk.f32.mxu1 %vm627_vm2, %v7197_v8  ;;  %6389 = vmatprep.mubr.msk.f32.mxu0 %vm627_vm2, %v7567_v59  ;;  %v978_v31 = vpop.f32.mrf.mxu0 }
 0x1b1   : > { %6396 = vmatprep.subr.mxu1 %v5473_v62  ;;  %1129 = vst.msk [vmem:[#allocation4 + $0x10] sm:$0xff] %vm627_vm2, %v978_v31 }
 0x1b2   : > { %6397 = vmatpush3.msra.mxu1 %v5473_v62 }
 0x1b3   : > { %v6016_v35 = vpop.f32.mrf.mxu0  ;;  %6295 = vmatmul.mubr.msk.f32.gmra.mxu1 %vm627_vm2, %v7206_v19  ;;  %6390 = vmatmul.mubr.msk.f32.gmra.mxu0 %vm627_vm2, %v7575_v32 }
 0x1b4   : > { %1132 = vst.msk [vmem:[#allocation4 + $0x28] sm:$0xff] %vm627_vm2, %v6016_v35  ;;  %6297 = vmatprep.mubr.msk.f32.mxu1 %vm627_vm2, %v7212_v20  ;;  %6456 = vmatprep.mubr.msk.f32.mxu0 %vm627_vm2, %v7398_v39 }
 0x1b5   : > { %v988_v8 = vpop.f32.mrf.mxu0  ;;  %6398 = vmatprep.subr.mxu1 %v5472_v30 }
 0x1b6   : > { %1131 = vst.msk [vmem:[#allocation4 + $0x20] sm:$0xff] %vm627_vm2, %v988_v8  ;;  %6399 = vmatpush3.msra.mxu1 %v5472_v30 }
 0x1b7   : > { %v6019_v40 = vpop.f32.mrf.mxu1  ;;  %v7590_v43 = vpop.f32.mrf.mxu0  ;;  %6298 = vmatmul.mubr.msk.f32.gmra.mxu1 %vm627_vm2, %v7223_v33  ;;  %6457 = vmatmul.mubr.msk.f32.vlgmr.msra.gmra.mxu0 %vm627_vm2, %v7407_v41 }
 0x1b8   : > { %1134 = vst.msk [vmem:[#allocation4 + $0x38] sm:$0xff] %vm627_vm2, %v6019_v40  ;;  %6300 = vmatprep.mubr.msk.f32.mxu1 %vm627_vm2, %v7230_v34  ;;  %6459 = vmatprep.mubr.msk.f32.mxu0 %vm627_vm2, %v7413_v42 }
 0x1b9   : > { %v998_v19 = vpop.f32.mrf.mxu1  ;;  %v7601_v20 = vpop.f32.mrf.mxu0 }
 0x1ba   : > { %1133 = vst.msk [vmem:[#allocation4 + $0x30] sm:$0xff] %vm627_vm2, %v998_v19 }
 0x1bb   : > { %v6022_v23 = vpop.f32.mrf.mxu1  ;;  %v7604_v62 = vpop.f32.mrf.mxu0  ;;  %6301 = vmatmul.mubr.msk.f32.gmra.mxu1 %vm627_vm2, %v7236_v45  ;;  %6460 = vmatmul.mubr.msk.f32.gmra.mxu0 %vm627_vm2, %v7422_v44 }
 0x1bc   : > { %1136 = vst.msk [vmem:[#allocation4 + $0x48] sm:$0xff] %vm627_vm2, %v6022_v23  ;;  %6303 = vmatprep.mubr.msk.f32.mxu1 %vm627_vm2, %v7242_v51  ;;  %6462 = vmatprep.mubr.msk.f32.mxu0 %vm627_vm2, %v7428_v52 }
 0x1bd   : > { %v1008_v33 = vpop.f32.mrf.mxu1  ;;  %v7615_v34 = vpop.f32.mrf.mxu0 }
 0x1be   : > { %1135 = vst.msk [vmem:[#allocation4 + $0x40] sm:$0xff] %vm627_vm2, %v1008_v33 }
 0x1bf   : > { %v6025_v29 = vpop.f32.mrf.mxu1  ;;  %v7618_v31 = vpop.f32.mrf.mxu0  ;;  %6304 = vmatmul.mubr.msk.f32.gmra.mxu1 %vm627_vm2, %v7248_v60  ;;  %6463 = vmatmul.mubr.msk.f32.gmra.mxu0 %vm627_vm2, %v7434_v53 }
 0x1c0   : > { %1138 = vst.msk [vmem:[#allocation4 + $0x58] sm:$0xff] %vm627_vm2, %v6025_v29  ;;  %6306 = vmatprep.mubr.msk.f32.mxu1 %vm627_vm2, %v7254_v48  ;;  %6465 = vmatprep.mubr.msk.f32.mxu0 %vm627_vm2, %v7440_v54 }
 0x1c1   : > { %v1018_v45 = vpop.f32.mrf.mxu1  ;;  %v7629_v51 = vpop.f32.mrf.mxu0 }
 0x1c2   : > { %1137 = vst.msk [vmem:[#allocation4 + $0x50] sm:$0xff] %vm627_vm2, %v1018_v45 }
 0x1c3   : > { %v6028_v30 = vpop.f32.mrf.mxu1  ;;  %v7632_v35 = vpop.f32.mrf.mxu0  ;;  %6307 = vmatmul.mubr.msk.f32.gmra.mxu1 %vm627_vm2, %v7260_v1  ;;  %6466 = vmatmul.mubr.msk.f32.gmra.mxu0 %vm627_vm2, %v7446_v55 }
 0x1c4   : > { %1140 = vst.msk [vmem:[#allocation4 + $0x68] sm:$0xff] %vm627_vm2, %v6028_v30  ;;  %6309 = vmatprep.mubr.msk.f32.mxu1 %vm627_vm2, %v7266_v2  ;;  %6468 = vmatprep.mubr.msk.f32.mxu0 %vm627_vm2, %v7452_v25 }
 0x1c5   : > { %v1028_v60 = vpop.f32.mrf.mxu1  ;;  %v7643_v48 = vpop.f32.mrf.mxu0 }
 0x1c6   : > { %1139 = vst.msk [vmem:[#allocation4 + $0x60] sm:$0xff] %vm627_vm2, %v1028_v60 }
 0x1c7   : > { %v6031_v8 = vpop.f32.mrf.mxu1  ;;  %v7646_v40 = vpop.f32.mrf.mxu0  ;;  %6310 = vmatmul.mubr.msk.f32.gmra.mxu1 %vm627_vm2, %v7272_v49  ;;  %6469 = vmatmul.mubr.msk.f32.gmra.mxu0 %vm627_vm2, %v7458_v56 }
 0x1c8   : > { %1142 = vst.msk [vmem:[#allocation4 + $0x78] sm:$0xff] %vm627_vm2, %v6031_v8  ;;  %6312 = vmatprep.mubr.msk.f32.mxu1 %vm627_vm2, %v7278_v3  ;;  %6471 = vmatprep.mubr.msk.f32.mxu0 %vm627_vm2, %v7464_v57 }
 0x1c9   : > { %v1038_v1 = vpop.f32.mrf.mxu1  ;;  %v7657_v2 = vpop.f32.mrf.mxu0 }
 0x1ca   : > { %1141 = vst.msk [vmem:[#allocation4 + $0x70] sm:$0xff] %vm627_vm2, %v1038_v1 }
 0x1cb   : > { %v6034_v19 = vpop.f32.mrf.mxu1  ;;  %v7660_v23 = vpop.f32.mrf.mxu0  ;;  %6313 = vmatmul.mubr.msk.f32.gmra.mxu1 %vm627_vm2, %v7284_v4  ;;  %6472 = vmatmul.mubr.msk.f32.gmra.mxu0 %vm627_vm2, %v7470_v26 }
 0x1cc   : > { %1144 = vst.msk [vmem:[#allocation4 + $0x88] sm:$0xff] %vm627_vm2, %v6034_v19  ;;  %6315 = vmatprep.mubr.msk.f32.mxu1 %vm627_vm2, %v7290_v5  ;;  %6474 = vmatprep.mubr.msk.f32.mxu0 %vm627_vm2, %v7476_v36 }
 0x1cd   : > { %v1048_v49 = vpop.f32.mrf.mxu1  ;;  %v7671_v3 = vpop.f32.mrf.mxu0 }
 0x1ce   : > { %1143 = vst.msk [vmem:[#allocation4 + $0x80] sm:$0xff] %vm627_vm2, %v1048_v49 }
 0x1cf   : > { %v6037_v33 = vpop.f32.mrf.mxu1  ;;  %v7674_v29 = vpop.f32.mrf.mxu0  ;;  %6316 = vmatmul.mubr.msk.f32.gmra.mxu1 %vm627_vm2, %v7296_v6  ;;  %6475 = vmatmul.mubr.msk.f32.gmra.mxu0 %vm627_vm2, %v7482_v11 }
 0x1d0   : > { %1146 = vst.msk [vmem:[#allocation4 + $0x98] sm:$0xff] %vm627_vm2, %v6037_v33  ;;  %6318 = vmatprep.mubr.msk.f32.mxu1 %vm627_vm2, %v7302_v9  ;;  %6477 = vmatprep.mubr.msk.f32.mxu0 %vm627_vm2, %v7488_v37 }
 0x1d1   : > { %v1058_v4 = vpop.f32.mrf.mxu1  ;;  %v7685_v5 = vpop.f32.mrf.mxu0 }
 0x1d2   : > { %1145 = vst.msk [vmem:[#allocation4 + $0x90] sm:$0xff] %vm627_vm2, %v1058_v4  ;;  %v3006_v4 = vld [vmem:[#allocation3 + $0x199] sm:$0xff] }
 0x1d3   : > { %v6040_v45 = vpop.f32.mrf.mxu1  ;;  %v7688_v30 = vpop.f32.mrf.mxu0  ;;  %6319 = vmatmul.mubr.msk.f32.gmra.mxu1 %vm627_vm2, %v7308_v10  ;;  %6478 = vmatmul.mubr.msk.f32.gmra.mxu0 %vm627_vm2, %v7494_v46 }
 0x1d4   : > { %1148 = vst.msk [vmem:[#allocation4 + $0xa8] sm:$0xff] %vm627_vm2, %v6040_v45  ;;  %6321 = vmatprep.mubr.msk.f32.mxu1 %vm627_vm2, %v7314_v12  ;;  %6480 = vmatprep.mubr.msk.f32.mxu0 %vm627_vm2, %v7500_v58 }
 0x1d5   : > { %v1068_v6 = vpop.f32.mrf.mxu1  ;;  %v7699_v9 = vpop.f32.mrf.mxu0 }
 0x1d6   : > { %1147 = vst.msk [vmem:[#allocation4 + $0xa0] sm:$0xff] %vm627_vm2, %v1068_v6 }
 0x1d7   : > { %v6043_v60 = vpop.f32.mrf.mxu1  ;;  %v7702_v8 = vpop.f32.mrf.mxu0  ;;  %6322 = vmatmul.mubr.msk.f32.gmra.mxu1 %vm627_vm2, %v7320_v14  ;;  %6481 = vmatmul.mubr.msk.f32.gmra.mxu0 %vm627_vm2, %v7506_v61 }
 0x1d8   : > { %1150 = vst.msk [vmem:[#allocation4 + $0xb8] sm:$0xff] %vm627_vm2, %v6043_v60  ;;  %6324 = vmatprep.mubr.msk.f32.mxu1 %vm627_vm2, %v7326_v15  ;;  %6483 = vmatprep.mubr.msk.f32.mxu0 %vm627_vm2, %v7512_v7 }
 0x1d9   : > { %v1078_v10 = vpop.f32.mrf.mxu1  ;;  %v7713_v12 = vpop.f32.mrf.mxu0 }
 0x1da   : > { %1149 = vst.msk [vmem:[#allocation4 + $0xb0] sm:$0xff] %vm627_vm2, %v1078_v10 }
 0x1db   : > { %v6046_v1 = vpop.f32.mrf.mxu1  ;;  %v7716_v19 = vpop.f32.mrf.mxu0  ;;  %6325 = vmatmul.mubr.msk.f32.gmra.mxu1 %vm627_vm2, %v7331_v17  ;;  %6484 = vmatmul.mubr.msk.f32.gmra.mxu0 %vm627_vm2, %v7518_v63 }
 0x1dc   : > { %1152 = vst.msk [vmem:[#allocation4 + $0xc8] sm:$0xff] %vm627_vm2, %v6046_v1  ;;  %6327 = vmatprep.mubr.msk.f32.mxu1 %vm627_vm2, %v7342_v21  ;;  %6486 = vmatprep.mubr.msk.f32.mxu0 %vm627_vm2, %v7524_v0 }
 0x1dd   : > { %v1088_v14 = vpop.f32.mrf.mxu1  ;;  %v7727_v15 = vpop.f32.mrf.mxu0 }
 0x1de   : > { %1151 = vst.msk [vmem:[#allocation4 + $0xc0] sm:$0xff] %vm627_vm2, %v1088_v14 }
 0x1df   : > { %v6049_v49 = vpop.f32.mrf.mxu1  ;;  %v7730_v33 = vpop.f32.mrf.mxu0  ;;  %6328 = vmatmul.mubr.msk.f32.gmra.mxu1 %vm627_vm2, %v7346_v22  ;;  %6487 = vmatmul.mubr.msk.f32.gmra.mxu0 %vm627_vm2, %v7530_v13  ;;  %v3007_v22 = vld [vmem:[#allocation3 + $0x1a1] sm:$0xff] }
 0x1e0   : > { %1154 = vst.msk [vmem:[#allocation4 + $0xd8] sm:$0xff] %vm627_vm2, %v6049_v49  ;;  %6330 = vmatprep.mubr.msk.f32.mxu1 %vm627_vm2, %v7355_v24  ;;  %6489 = vmatprep.mubr.msk.f32.mxu0 %vm627_vm2, %v7536_v16  ;;  %v1518_v49 = vld [vmem:[#allocation4 + $0x8] sm:$0xff] }
 0x1e1   : > { %v1098_v17 = vpop.f32.mrf.mxu1  ;;  %v7741_v21 = vpop.f32.mrf.mxu0 }
 0x1e2   : > { %1153 = vst.msk [vmem:[#allocation4 + $0xd0] sm:$0xff] %vm627_vm2, %v1098_v17 }
 0x1e3   : > { %v6052_v45 = vpop.f32.mrf.mxu1  ;;  %v7744_v6 = vpop.f32.mrf.mxu0  ;;  %6331 = vmatmul.mubr.msk.f32.gmra.mxu1 %vm627_vm2, %v7361_v28  ;;  %6490 = vmatmul.mubr.msk.f32.gmra.mxu0 %vm627_vm2, %v7542_v18 }
 0x1e4   : > { %1156 = vst.msk [vmem:[#allocation4 + $0xe8] sm:$0xff] %vm627_vm2, %v6052_v45  ;;  %6492 = vmatprep.mubr.msk.f32.mxu0 %vm627_vm2, %v7554_v47  ;;  %6333 = vmatprep.mubr.msk.f32.mxu1 %vm627_vm2, %v3006_v4  ;;  %v7776_v45 = vld [vmem:[#allocation3 + $0x182] sm:$0xff] }
 0x1e5   : > { %v1108_v24 = vpop.f32.mrf.mxu1  ;;  %v7754_v60 = vpop.f32.mrf.mxu0 }
 0x1e6   : > { %8539 = vst [vmem:[#allocation5_spill] sm:$0xff] %v7754_v60  ;;  %1155 = vst.msk [vmem:[#allocation4 + $0xe0] sm:$0xff] %vm627_vm2, %v1108_v24 }
 0x1e7   : > { %v6055_v10 = vpop.f32.mrf.mxu1  ;;  %v7757_v1 = vpop.f32.mrf.mxu0  ;;  %6334 = vmatmul.mubr.msk.f32.gmra.mxu1 %vm627_vm2, %v3007_v22  ;;  %6493 = vmatmul.mubr.msk.f32.gmra.mxu0 %vm627_vm2, %v7558_v27 }
 0x1e8   : > { %8540 = vst [vmem:[#allocation6_spill] sm:$0xff] %v7757_v1  ;;  %1158 = vst.msk [vmem:[#allocation4 + $0xf8] sm:$0xff] %vm627_vm2, %v6055_v10  ;;  %6400 = vmatprep.mubr.msk.f32.mxu1 %vm627_vm2, %v7381_v50  ;;  %6495 = vmatprep.mubr.msk.f32.mxu0 %vm627_vm2, %v7567_v59  ;;  %v1517_v50 = vld [vmem:[#allocation4] sm:$0xff]  ;;  %v1520_v1 = vld [vmem:[#allocation4 + $0x18] sm:$0xff] }
 0x1e9   : > { %v1118_v28 = vpop.f32.mrf.mxu1  ;;  %v7767_v14 = vpop.f32.mrf.mxu0 }
 0x1ea   : > { %8541 = vst [vmem:[#allocation7_spill] sm:$0xff] %v7767_v14  ;;  %1157 = vst.msk [vmem:[#allocation4 + $0xf0] sm:$0xff] %vm627_vm2, %v1118_v28  ;;  %v4368_v28 = vld [vmem:[#allocation3 + $0x19a] sm:$0xff] }
 0x1eb   : > { %v6066_v17 = vpop.f32.mrf.mxu1  ;;  %v7770_v4 = vpop.f32.mrf.mxu0  ;;  %6401 = vmatmul.mubr.msk.f32.vlgmr.msra.gmra.mxu1 %vm627_vm2, %v7392_v38  ;;  %6496 = vmatmul.mubr.msk.f32.gmra.mxu0 %vm627_vm2, %v7575_v32 }
 0x1ec   : > { %8542 = vst [vmem:[#allocation8_spill] sm:$0xff] %v7770_v4  ;;  %v1550_v22 = vadd.f32 %v6066_v17, %v1518_v49  ;;  %6403 = vmatprep.mubr.msk.f32.mxu1 %vm627_vm2, %v7398_v39  ;;  %6498 = vmatprep.mubr.msk.f32.mxu0 %vm627_vm2, %v7776_v45  ;;  %v7785_v4 = vld [vmem:[#allocation3 + $0x18a] sm:$0xff]  ;;  %v4369_v49 = vld [vmem:[#allocation3 + $0x1a2] sm:$0xff] }
 0x1ed   : > { %v1358_v24 = vpop.f32.mrf.mxu1  ;;  %v7782_v10 = vpop.f32.mrf.mxu0 }
 0x1ee   : > { %8543 = vst [vmem:[#allocation9_spill] sm:$0xff] %v7782_v10  ;;  %1582 = vst.msk [vmem:[#allocation4 + $0x8] sm:$0xff] %vm627_vm2, %v1550_v22  ;;  %v1549_v38 = vadd.f32 %v1517_v50, %v1358_v24  ;;  %v1519_v50 = vld [vmem:[#allocation4 + $0x10] sm:$0xff] }
 0x1ef   : > { %v6069_v14 = vpop.f32.mrf.mxu1  ;;  %v7787_v60 = vpop.f32.mrf.mxu0  ;;  %6404 = vmatmul.mubr.msk.f32.gmra.mxu1 %vm627_vm2, %v7407_v41  ;;  %6499 = vmatmul.mubr.msk.f32.gmra.mxu0 %vm627_vm2, %v7785_v4 }
 0x1f0   : > { %8544 = vst [vmem:[#allocation10_spill] sm:$0xff] %v7787_v60  ;;  %1581 = vst.msk [vmem:[#allocation4] sm:$0xff] %vm627_vm2, %v1549_v38  ;;  %v1552_v39 = vadd.f32 %v6069_v14, %v1520_v1  ;;  %6406 = vmatprep.mubr.msk.f32.mxu1 %vm627_vm2, %v7413_v42  ;;  %6501 = vmatprep.mubr.msk.f32.mxu0 %vm627_vm2, %v4368_v28  ;;  %v1522_v60 = vld [vmem:[#allocation4 + $0x28] sm:$0xff]  ;;  %v1521_v14 = vld [vmem:[#allocation4 + $0x20] sm:$0xff] }
 0x1f1   : > { %v1368_v17 = vpop.f32.mrf.mxu1  ;;  %v7797_v22 = vpop.f32.mrf.mxu0 }
 0x1f2   : > { %1584 = vst.msk [vmem:[#allocation4 + $0x18] sm:$0xff] %vm627_vm2, %v1552_v39  ;;  %v1551_v24 = vadd.f32 %v1519_v50, %v1368_v17 }
 0x1f3   : > { %v6072_v41 = vpop.f32.mrf.mxu1  ;;  %v7800_v10 = vpop.f32.mrf.mxu0  ;;  %6407 = vmatmul.mubr.msk.f32.gmra.mxu1 %vm627_vm2, %v7422_v44  ;;  %6502 = vmatmul.mubr.msk.f32.gmra.mxu0 %vm627_vm2, %v4369_v49  ;;  %v1524_v44 = vld [vmem:[#allocation4 + $0x38] sm:$0xff] }
 0x1f4   : > { %8545 = vst [vmem:[#allocation11_spill] sm:$0xff] %v7800_v10  ;;  %1583 = vst.msk [vmem:[#allocation4 + $0x10] sm:$0xff] %vm627_vm2, %v1551_v24  ;;  %v1554_v42 = vadd.f32 %v6072_v41, %v1522_v60  ;;  %6409 = vmatprep.mubr.msk.f32.mxu1 %vm627_vm2, %v7428_v52 }
 0x1f5   : > { %v1378_v1 = vpop.f32.mrf.mxu1  ;;  %v7808_v28 = vpop.f32.mrf.mxu0  ;;  %v1973_v38 = vld [vmem:[#allocation4 + $0x8] sm:$0xff] }
 0x1f6   : > { %1586 = vst.msk [vmem:[#allocation4 + $0x28] sm:$0xff] %vm627_vm2, %v1554_v42  ;;  %v1553_v39 = vadd.f32 %v1521_v14, %v1378_v1  ;;  %v2005_v17 = vadd.f32 %v7590_v43, %v1973_v38  ;;  %v1523_v43 = vld [vmem:[#allocation4 + $0x30] sm:$0xff]  ;;  %v1526_v38 = vld [vmem:[#allocation4 + $0x48] sm:$0xff] }
 0x1f7   : > { %v6075_v50 = vpop.f32.mrf.mxu1  ;;  %v7812_v10 = vpop.f32.mrf.mxu0  ;;  %6410 = vmatmul.mubr.msk.f32.gmra.mxu1 %vm627_vm2, %v7434_v53  ;;  %v1972_v60 = vld [vmem:[#allocation4] sm:$0xff] }
 0x1f8   : > { %1585 = vst.msk [vmem:[#allocation4 + $0x20] sm:$0xff] %vm627_vm2, %v1553_v39  ;;  %v1556_v52 = vadd.f32 %v6075_v50, %v1524_v44  ;;  %6412 = vmatprep.mubr.msk.f32.mxu1 %vm627_vm2, %v7440_v54  ;;  %2037 = vst.msk [vmem:[#allocation4 + $0x8] sm:$0xff] %vm627_vm2, %v2005_v17  ;;  %v2004_v49 = vadd.f32 %v1972_v60, %v7601_v20 }
 0x1f9   : > { %v1388_v24 = vpop.f32.mrf.mxu1  ;;  %v7821_v41 = vpop.f32.mrf.mxu0  ;;  %v1975_v42 = vld [vmem:[#allocation4 + $0x18] sm:$0xff] }
 0x1fa   : > { %1588 = vst.msk [vmem:[#allocation4 + $0x38] sm:$0xff] %vm627_vm2, %v1556_v52  ;;  %v1555_v1 = vadd.f32 %v1523_v43, %v1388_v24  ;;  %2036 = vst.msk [vmem:[#allocation4] sm:$0xff] %vm627_vm2, %v2004_v49  ;;  %v2007_v53 = vadd.f32 %v7604_v62, %v1975_v42  ;;  %v1525_v62 = vld [vmem:[#allocation4 + $0x40] sm:$0xff]  ;;  %v1528_v24 = vld [vmem:[#allocation4 + $0x58] sm:$0xff] }
 0x1fb   : > { %v6078_v14 = vpop.f32.mrf.mxu1  ;;  %v7826_v39 = vpop.f32.mrf.mxu0  ;;  %6413 = vmatmul.mubr.msk.f32.gmra.mxu1 %vm627_vm2, %v7446_v55  ;;  %v1974_v54 = vld [vmem:[#allocation4 + $0x10] sm:$0xff] }
 0x1fc   : > { %1587 = vst.msk [vmem:[#allocation4 + $0x30] sm:$0xff] %vm627_vm2, %v1555_v1  ;;  %v1558_v20 = vadd.f32 %v6078_v14, %v1526_v38  ;;  %6415 = vmatprep.mubr.msk.f32.mxu1 %vm627_vm2, %v7452_v25  ;;  %2039 = vst.msk [vmem:[#allocation4 + $0x18] sm:$0xff] %vm627_vm2, %v2007_v53  ;;  %v2006_v17 = vadd.f32 %v1974_v54, %v7615_v34 }
 0x1fd   : > { %v1398_v50 = vpop.f32.mrf.mxu1  ;;  %v7835_v44 = vpop.f32.mrf.mxu0  ;;  %v1977_v60 = vld [vmem:[#allocation4 + $0x28] sm:$0xff] }
 0x1fe   : > { %1590 = vst.msk [vmem:[#allocation4 + $0x48] sm:$0xff] %vm627_vm2, %v1558_v20  ;;  %v1557_v52 = vadd.f32 %v1525_v62, %v1398_v50  ;;  %2038 = vst.msk [vmem:[#allocation4 + $0x10] sm:$0xff] %vm627_vm2, %v2006_v17  ;;  %v2009_v55 = vadd.f32 %v7618_v31, %v1977_v60  ;;  %v1527_v31 = vld [vmem:[#allocation4 + $0x50] sm:$0xff]  ;;  %v1530_v20 = vld [vmem:[#allocation4 + $0x68] sm:$0xff] }
 0x1ff   : > { %v6081_v49 = vpop.f32.mrf.mxu1  ;;  %v7840_v43 = vpop.f32.mrf.mxu0  ;;  %6416 = vmatmul.mubr.msk.f32.gmra.mxu1 %vm627_vm2, %v7458_v56  ;;  %v1976_v25 = vld [vmem:[#allocation4 + $0x20] sm:$0xff] }
 0x200   : > { %1589 = vst.msk [vmem:[#allocation4 + $0x40] sm:$0xff] %vm627_vm2, %v1557_v52  ;;  %v1560_v34 = vadd.f32 %v6081_v49, %v1528_v24  ;;  %6418 = vmatprep.mubr.msk.f32.mxu1 %vm627_vm2, %v7464_v57  ;;  %2041 = vst.msk [vmem:[#allocation4 + $0x28] sm:$0xff] %vm627_vm2, %v2009_v55  ;;  %v2008_v42 = vadd.f32 %v1976_v25, %v7629_v51  ;;  %v1532_v24 = vld [vmem:[#allocation4 + $0x78] sm:$0xff] }
 0x201   : > { %v1408_v1 = vpop.f32.mrf.mxu1  ;;  %v7849_v53 = vpop.f32.mrf.mxu0  ;;  %v1979_v14 = vld [vmem:[#allocation4 + $0x38] sm:$0xff] }
 0x202   : > { %1592 = vst.msk [vmem:[#allocation4 + $0x58] sm:$0xff] %vm627_vm2, %v1560_v34  ;;  %v1559_v38 = vadd.f32 %v1527_v31, %v1408_v1  ;;  %2040 = vst.msk [vmem:[#allocation4 + $0x20] sm:$0xff] %vm627_vm2, %v2008_v42  ;;  %v2011_v56 = vadd.f32 %v7632_v35, %v1979_v14  ;;  %v1529_v35 = vld [vmem:[#allocation4 + $0x60] sm:$0xff] }
 0x203   : > { %v6084_v54 = vpop.f32.mrf.mxu1  ;;  %v7854_v17 = vpop.f32.mrf.mxu0  ;;  %6419 = vmatmul.mubr.msk.f32.gmra.mxu1 %vm627_vm2, %v7470_v26  ;;  %v1978_v57 = vld [vmem:[#allocation4 + $0x30] sm:$0xff] }
 0x204   : > { %1591 = vst.msk [vmem:[#allocation4 + $0x50] sm:$0xff] %vm627_vm2, %v1559_v38  ;;  %v1562_v51 = vadd.f32 %v6084_v54, %v1530_v20  ;;  %6421 = vmatprep.mubr.msk.f32.mxu1 %vm627_vm2, %v7476_v36  ;;  %2043 = vst.msk [vmem:[#allocation4 + $0x38] sm:$0xff] %vm627_vm2, %v2011_v56  ;;  %v2010_v50 = vadd.f32 %v1978_v57, %v7643_v48  ;;  %v1534_v56 = vld [vmem:[#allocation4 + $0x88] sm:$0xff] }
 0x205   : > { %v1418_v62 = vpop.f32.mrf.mxu1  ;;  %v7863_v60 = vpop.f32.mrf.mxu0  ;;  %v1981_v52 = vld [vmem:[#allocation4 + $0x48] sm:$0xff] }
 0x206   : > { %1594 = vst.msk [vmem:[#allocation4 + $0x68] sm:$0xff] %vm627_vm2, %v1562_v51  ;;  %v1561_v55 = vadd.f32 %v1529_v35, %v1418_v62  ;;  %2042 = vst.msk [vmem:[#allocation4 + $0x30] sm:$0xff] %vm627_vm2, %v2010_v50  ;;  %v2013_v26 = vadd.f32 %v7646_v40, %v1981_v52  ;;  %v1531_v40 = vld [vmem:[#allocation4 + $0x70] sm:$0xff]  ;;  %v1536_v52 = vld [vmem:[#allocation4 + $0x98] sm:$0xff] }
 0x207   : > { %v6087_v49 = vpop.f32.mrf.mxu1  ;;  %v7868_v25 = vpop.f32.mrf.mxu0  ;;  %6422 = vmatmul.mubr.msk.f32.gmra.mxu1 %vm627_vm2, %v7482_v11  ;;  %v1980_v36 = vld [vmem:[#allocation4 + $0x40] sm:$0xff] }
 0x208   : > { %1593 = vst.msk [vmem:[#allocation4 + $0x60] sm:$0xff] %vm627_vm2, %v1561_v55  ;;  %v1564_v48 = vadd.f32 %v6087_v49, %v1532_v24  ;;  %6424 = vmatprep.mubr.msk.f32.mxu1 %vm627_vm2, %v7488_v37  ;;  %2045 = vst.msk [vmem:[#allocation4 + $0x48] sm:$0xff] %vm627_vm2, %v2013_v26  ;;  %v2012_v34 = vadd.f32 %v1980_v36, %v7657_v2 }
 0x209   : > { %v1428_v42 = vpop.f32.mrf.mxu1  ;;  %v7877_v1 = vpop.f32.mrf.mxu0  ;;  %v1983_v31 = vld [vmem:[#allocation4 + $0x58] sm:$0xff] }
 0x20a   : > { %1596 = vst.msk [vmem:[#allocation4 + $0x78] sm:$0xff] %vm627_vm2, %v1564_v48  ;;  %v1563_v14 = vadd.f32 %v1531_v40, %v1428_v42  ;;  %2044 = vst.msk [vmem:[#allocation4 + $0x40] sm:$0xff] %vm627_vm2, %v2012_v34  ;;  %v2015_v11 = vadd.f32 %v7660_v23, %v1983_v31  ;;  %v1533_v23 = vld [vmem:[#allocation4 + $0x80] sm:$0xff]  ;;  %v1538_v42 = vld [vmem:[#allocation4 + $0xa8] sm:$0xff] }
 0x20b   : > { %v6090_v38 = vpop.f32.mrf.mxu1  ;;  %v7882_v54 = vpop.f32.mrf.mxu0  ;;  %6425 = vmatmul.mubr.msk.f32.gmra.mxu1 %vm627_vm2, %v7494_v46  ;;  %v1982_v37 = vld [vmem:[#allocation4 + $0x50] sm:$0xff] }
 0x20c   : > { %1595 = vst.msk [vmem:[#allocation4 + $0x70] sm:$0xff] %vm627_vm2, %v1563_v14  ;;  %v1566_v2 = vadd.f32 %v6090_v38, %v1534_v56  ;;  %6427 = vmatprep.mubr.msk.f32.mxu1 %vm627_vm2, %v7500_v58  ;;  %2047 = vst.msk [vmem:[#allocation4 + $0x58] sm:$0xff] %vm627_vm2, %v2015_v11  ;;  %v2014_v20 = vadd.f32 %v1982_v37, %v7671_v3 }
 0x20d   : > { %v1438_v57 = vpop.f32.mrf.mxu1  ;;  %v7891_v51 = vpop.f32.mrf.mxu0  ;;  %v1985_v50 = vld [vmem:[#allocation4 + $0x68] sm:$0xff] }
 0x20e   : > { %1598 = vst.msk [vmem:[#allocation4 + $0x88] sm:$0xff] %vm627_vm2, %v1566_v2  ;;  %v1565_v62 = vadd.f32 %v1533_v23, %v1438_v57  ;;  %2046 = vst.msk [vmem:[#allocation4 + $0x50] sm:$0xff] %vm627_vm2, %v2014_v20  ;;  %v2017_v46 = vadd.f32 %v7674_v29, %v1985_v50  ;;  %v1535_v29 = vld [vmem:[#allocation4 + $0x90] sm:$0xff]  ;;  %v1540_v2 = vld [vmem:[#allocation4 + $0xb8] sm:$0xff] }
 0x20f   : > { %v6093_v35 = vpop.f32.mrf.mxu1  ;;  %v7896_v55 = vpop.f32.mrf.mxu0  ;;  %6428 = vmatmul.mubr.msk.f32.gmra.mxu1 %vm627_vm2, %v7506_v61  ;;  %v1984_v58 = vld [vmem:[#allocation4 + $0x60] sm:$0xff] }
 0x210   : > { %1597 = vst.msk [vmem:[#allocation4 + $0x80] sm:$0xff] %vm627_vm2, %v1565_v62  ;;  %v1568_v3 = vadd.f32 %v6093_v35, %v1536_v52  ;;  %6430 = vmatprep.mubr.msk.f32.mxu1 %vm627_vm2, %v7512_v7  ;;  %2049 = vst.msk [vmem:[#allocation4 + $0x68] sm:$0xff] %vm627_vm2, %v2017_v46  ;;  %v2016_v26 = vadd.f32 %v1984_v58, %v7685_v5  ;;  %v1542_v52 = vld [vmem:[#allocation4 + $0xc8] sm:$0xff] }
 0x211   : > { %v1448_v49 = vpop.f32.mrf.mxu1  ;;  %v7905_v24 = vpop.f32.mrf.mxu0  ;;  %v1987_v36 = vld [vmem:[#allocation4 + $0x78] sm:$0xff] }
 0x212   : > { %1600 = vst.msk [vmem:[#allocation4 + $0x98] sm:$0xff] %vm627_vm2, %v1568_v3  ;;  %v1567_v48 = vadd.f32 %v1535_v29, %v1448_v49  ;;  %2048 = vst.msk [vmem:[#allocation4 + $0x60] sm:$0xff] %vm627_vm2, %v2016_v26  ;;  %v2019_v61 = vadd.f32 %v7688_v30, %v1987_v36  ;;  %v1537_v30 = vld [vmem:[#allocation4 + $0xa0] sm:$0xff] }
 0x213   : > { %v6096_v34 = vpop.f32.mrf.mxu1  ;;  %v7910_v40 = vpop.f32.mrf.mxu0  ;;  %6431 = vmatmul.mubr.msk.f32.gmra.mxu1 %vm627_vm2, %v7518_v63  ;;  %v1986_v7 = vld [vmem:[#allocation4 + $0x70] sm:$0xff] }
 0x214   : > { %1599 = vst.msk [vmem:[#allocation4 + $0x90] sm:$0xff] %vm627_vm2, %v1567_v48  ;;  %v1570_v5 = vadd.f32 %v6096_v34, %v1538_v42  ;;  %6433 = vmatprep.mubr.msk.f32.mxu1 %vm627_vm2, %v7524_v0  ;;  %2051 = vst.msk [vmem:[#allocation4 + $0x78] sm:$0xff] %vm627_vm2, %v2019_v61  ;;  %v2018_v31 = vadd.f32 %v1986_v7, %v7699_v9  ;;  %v1544_v61 = vld [vmem:[#allocation4 + $0xd8] sm:$0xff] }
 0x215   : > { %v1458_v14 = vpop.f32.mrf.mxu1  ;;  %v7919_v11 = vpop.f32.mrf.mxu0  ;;  %v1989_v38 = vld [vmem:[#allocation4 + $0x88] sm:$0xff] }
 0x216   : > { %1602 = vst.msk [vmem:[#allocation4 + $0xa8] sm:$0xff] %vm627_vm2, %v1570_v5  ;;  %v1569_v56 = vadd.f32 %v1537_v30, %v1458_v14  ;;  %2050 = vst.msk [vmem:[#allocation4 + $0x70] sm:$0xff] %vm627_vm2, %v2018_v31  ;;  %v2021_v63 = vadd.f32 %v7702_v8, %v1989_v38  ;;  %v1539_v8 = vld [vmem:[#allocation4 + $0xb0] sm:$0xff]  ;;  %v1546_v38 = vld [vmem:[#allocation4 + $0xe8] sm:$0xff] }
 0x217   : > { %v6099_v37 = vpop.f32.mrf.mxu1  ;;  %v7924_v20 = vpop.f32.mrf.mxu0  ;;  %6434 = vmatmul.mubr.msk.f32.gmra.mxu1 %vm627_vm2, %v7530_v13  ;;  %v1988_v0 = vld [vmem:[#allocation4 + $0x80] sm:$0xff] }
 0x218   : > { %1601 = vst.msk [vmem:[#allocation4 + $0xa0] sm:$0xff] %vm627_vm2, %v1569_v56  ;;  %v1572_v9 = vadd.f32 %v6099_v37, %v1540_v2  ;;  %6436 = vmatprep.mubr.msk.f32.mxu1 %vm627_vm2, %v7536_v16  ;;  %2053 = vst.msk [vmem:[#allocation4 + $0x88] sm:$0xff] %vm627_vm2, %v2021_v63  ;;  %v2020_v57 = vadd.f32 %v1988_v0, %v7713_v12  ;;  %v8546_v63 = vld [vmem:[#allocation5_spill] sm:$0xff] }
 0x219   : > { %v1468_v23 = vpop.f32.mrf.mxu1  ;;  %v7933_v50 = vpop.f32.mrf.mxu0  ;;  %v1991_v62 = vld [vmem:[#allocation4 + $0x98] sm:$0xff] }
 0x21a   : > { %1604 = vst.msk [vmem:[#allocation4 + $0xb8] sm:$0xff] %vm627_vm2, %v1572_v9  ;;  %v1571_v46 = vadd.f32 %v1539_v8, %v1468_v23  ;;  %2052 = vst.msk [vmem:[#allocation4 + $0x80] sm:$0xff] %vm627_vm2, %v2020_v57  ;;  %v2023_v13 = vadd.f32 %v7716_v19, %v1991_v62  ;;  %v1541_v19 = vld [vmem:[#allocation4 + $0xc0] sm:$0xff]  ;;  %v1548_v62 = vld [vmem:[#allocation4 + $0xf8] sm:$0xff] }
 0x21b   : > { %v6102_v35 = vpop.f32.mrf.mxu1  ;;  %v7938_v58 = vpop.f32.mrf.mxu0  ;;  %6437 = vmatmul.mubr.msk.f32.gmra.mxu1 %vm627_vm2, %v7542_v18  ;;  %v1990_v16 = vld [vmem:[#allocation4 + $0x90] sm:$0xff] }
 0x21c   : > { %1603 = vst.msk [vmem:[#allocation4 + $0xb0] sm:$0xff] %vm627_vm2, %v1571_v46  ;;  %v1574_v12 = vadd.f32 %v6102_v35, %v1542_v52  ;;  %6439 = vmatprep.mubr.msk.f32.mxu1 %vm627_vm2, %v7554_v47  ;;  %2055 = vst.msk [vmem:[#allocation4 + $0x98] sm:$0xff] %vm627_vm2, %v2023_v13  ;;  %v2022_v3 = vadd.f32 %v1990_v16, %v7727_v15  ;;  %v8548_v35 = vld [vmem:[#allocation7_spill] sm:$0xff] }
 0x21d   : > { %v1478_v26 = vpop.f32.mrf.mxu1  ;;  %v7947_v49 = vpop.f32.mrf.mxu0  ;;  %v1993_v29 = vld [vmem:[#allocation4 + $0xa8] sm:$0xff] }
 0x21e   : > { %1606 = vst.msk [vmem:[#allocation4 + $0xc8] sm:$0xff] %vm627_vm2, %v1574_v12  ;;  %v1573_v36 = vadd.f32 %v1541_v19, %v1478_v26  ;;  %2054 = vst.msk [vmem:[#allocation4 + $0x90] sm:$0xff] %vm627_vm2, %v2022_v3  ;;  %v2025_v18 = vadd.f32 %v7730_v33, %v1993_v29  ;;  %v1543_v33 = vld [vmem:[#allocation4 + $0xd0] sm:$0xff]  ;;  %v8549_v29 = vld [vmem:[#allocation8_spill] sm:$0xff] }
 0x21f   : > { %v6105_v48 = vpop.f32.mrf.mxu1  ;;  %v7952_v34 = vpop.f32.mrf.mxu0  ;;  %6440 = vmatmul.mubr.msk.f32.gmra.mxu1 %vm627_vm2, %v7558_v27  ;;  %v1992_v47 = vld [vmem:[#allocation4 + $0xa0] sm:$0xff]  ;;  %v1547_v12 = vld [vmem:[#allocation4 + $0xf0] sm:$0xff] }
 0x220   : > { %1605 = vst.msk [vmem:[#allocation4 + $0xc0] sm:$0xff] %vm627_vm2, %v1573_v36  ;;  %v1576_v15 = vadd.f32 %v6105_v48, %v1544_v61  ;;  %6442 = vmatprep.mubr.msk.f32.mxu1 %vm627_vm2, %v7567_v59  ;;  %2057 = vst.msk [vmem:[#allocation4 + $0xa8] sm:$0xff] %vm627_vm2, %v2025_v18  ;;  %v2024_v42 = vadd.f32 %v1992_v47, %v7741_v21  ;;  %v4917_v36 = vld [vmem:[%s8536_s3 + $0x18] sm:$0xff] }
 0x221   : > { %v1488_v7 = vpop.f32.mrf.mxu1  ;;  %v7961_v5 = vpop.f32.mrf.mxu0  ;;  %v1995_v31 = vld [vmem:[#allocation4 + $0xb8] sm:$0xff]  ;;  %v2427_v48 = vld [vmem:[#allocation4 + $0x8] sm:$0xff]  ;;  %6504 = vmatprep.subr.mxu1 %v4917_v36 }
 0x222   : > { %1608 = vst.msk [vmem:[#allocation4 + $0xd8] sm:$0xff] %vm627_vm2, %v1576_v15  ;;  %v1575_v14 = vadd.f32 %v1543_v33, %v1488_v7  ;;  %2056 = vst.msk [vmem:[#allocation4 + $0xa0] sm:$0xff] %vm627_vm2, %v2024_v42  ;;  %v2027_v27 = vadd.f32 %v7744_v6, %v1995_v31  ;;  %v1545_v6 = vld [vmem:[#allocation4 + $0xe0] sm:$0xff]  ;;  %6505 = vmatpush3.msra.mxu1 %v4917_v36 }
 0x223   : > { %v6108_v30 = vpop.f32.mrf.mxu1  ;;  %v7966_v56 = vpop.f32.mrf.mxu0  ;;  %6443 = vmatmul.mubr.msk.f32.gmra.mxu1 %vm627_vm2, %v7575_v32  ;;  %v1994_v59 = vld [vmem:[#allocation4 + $0xb0] sm:$0xff]  ;;  %v8547_v32 = vld [vmem:[#allocation6_spill] sm:$0xff]  ;;  %v8550_v42 = vld [vmem:[#allocation9_spill] sm:$0xff] }
 0x224   : > { %1607 = vst.msk [vmem:[#allocation4 + $0xd0] sm:$0xff] %vm627_vm2, %v1575_v14  ;;  %v1578_v21 = vadd.f32 %v6108_v30, %v1546_v38  ;;  %6445 = vmatprep.mubr.msk.f32.mxu1 %vm627_vm2, %v7776_v45  ;;  %2059 = vst.msk [vmem:[#allocation4 + $0xb8] sm:$0xff] %vm627_vm2, %v2027_v27  ;;  %v2026_v37 = vadd.f32 %v1994_v59, %v8546_v63  ;;  %v2426_v31 = vld [vmem:[#allocation4] sm:$0xff]  ;;  %v8551_v38 = vld [vmem:[#allocation10_spill] sm:$0xff] }
 0x225   : > { %v1498_v2 = vpop.f32.mrf.mxu1  ;;  %v7975_v0 = vpop.f32.mrf.mxu0  ;;  %v1997_v9 = vld [vmem:[#allocation4 + $0xc8] sm:$0xff]  ;;  %v2429_v63 = vld [vmem:[#allocation4 + $0x18] sm:$0xff] }
 0x226   : > { %1610 = vst.msk [vmem:[#allocation4 + $0xe8] sm:$0xff] %vm627_vm2, %v1578_v21  ;;  %v1577_v57 = vadd.f32 %v1545_v6, %v1498_v2  ;;  %2058 = vst.msk [vmem:[#allocation4 + $0xb0] sm:$0xff] %vm627_vm2, %v2026_v37  ;;  %v2029_v23 = vadd.f32 %v8547_v32, %v1997_v9  ;;  %v2428_v32 = vld [vmem:[#allocation4 + $0x10] sm:$0xff] }
 0x227   : > { %v6111_v8 = vpop.f32.mrf.mxu1  ;;  %v7980_v46 = vpop.f32.mrf.mxu0  ;;  %6446 = vmatmul.mubr.msk.f32.gmra.mxu1 %vm627_vm2, %v7785_v4  ;;  %v1996_v45 = vld [vmem:[#allocation4 + $0xc0] sm:$0xff] }
 0x228   : > { %1609 = vst.msk [vmem:[#allocation4 + $0xe0] sm:$0xff] %vm627_vm2, %v1577_v57  ;;  %v1580_v13 = vadd.f32 %v6111_v8, %v1548_v62  ;;  %2061 = vst.msk [vmem:[#allocation4 + $0xc8] sm:$0xff] %vm627_vm2, %v2029_v23  ;;  %v2028_v52 = vadd.f32 %v1996_v45, %v8548_v35  ;;  %v8552_v45 = vld [vmem:[#allocation11_spill] sm:$0xff] }
 0x229   : > { %v1508_v16 = vpop.f32.mrf.mxu1  ;;  %v7987_v3 = vpop.f32.mrf.mxu0  ;;  %v1999_v26 = vld [vmem:[#allocation4 + $0xd8] sm:$0xff] }
 0x22a   : > { %1612 = vst.msk [vmem:[#allocation4 + $0xf8] sm:$0xff] %vm627_vm2, %v1580_v13  ;;  %v1579_v19 = vadd.f32 %v1547_v12, %v1508_v16  ;;  %2060 = vst.msk [vmem:[#allocation4 + $0xc0] sm:$0xff] %vm627_vm2, %v2028_v52  ;;  %v2031_v4 = vadd.f32 %v8549_v29, %v1999_v26  ;;  %v2431_v52 = vld [vmem:[#allocation4 + $0x28] sm:$0xff]  ;;  %v2430_v29 = vld [vmem:[#allocation4 + $0x20] sm:$0xff] }
 0x22b   : > { %v6178_v18 = vpop.f32.mrf.mxu1  ;;  %v7995_v61 = vpop.f32.mrf.mxu0  ;;  %v1998_v47 = vld [vmem:[#allocation4 + $0xd0] sm:$0xff] }
 0x22c   : > { %1611 = vst.msk [vmem:[#allocation4 + $0xf0] sm:$0xff] %vm627_vm2, %v1579_v19  ;;  %v2459_v15 = vadd.f32 %v6178_v18, %v2427_v48  ;;  %2063 = vst.msk [vmem:[#allocation4 + $0xd8] sm:$0xff] %vm627_vm2, %v2031_v4  ;;  %v2030_v7 = vadd.f32 %v1998_v47, %v8550_v42 }
 0x22d   : > { %v2267_v33 = vpop.f32.mrf.mxu1  ;;  %v8000_v14 = vpop.f32.mrf.mxu0  ;;  %v2001_v27 = vld [vmem:[#allocation4 + $0xe8] sm:$0xff] }
 0x22e   : > { %2491 = vst.msk [vmem:[#allocation4 + $0x8] sm:$0xff] %vm627_vm2, %v2459_v15  ;;  %v2458_v30 = vadd.f32 %v2426_v31, %v2267_v33  ;;  %2062 = vst.msk [vmem:[#allocation4 + $0xd0] sm:$0xff] %vm627_vm2, %v2030_v7  ;;  %v2033_v59 = vadd.f32 %v8551_v38, %v2001_v27  ;;  %v2433_v15 = vld [vmem:[#allocation4 + $0x38] sm:$0xff]  ;;  %v2432_v27 = vld [vmem:[#allocation4 + $0x30] sm:$0xff] }
 0x22f   : > { %v6181_v21 = vpop.f32.mrf.mxu1  ;;  %v8005_v37 = vpop.f32.mrf.mxu0  ;;  %v2000_v2 = vld [vmem:[#allocation4 + $0xe0] sm:$0xff] }
 0x230   : > { %2490 = vst.msk [vmem:[#allocation4] sm:$0xff] %vm627_vm2, %v2458_v30  ;;  %v2461_v6 = vadd.f32 %v6181_v21, %v2429_v63  ;;  %2065 = vst.msk [vmem:[#allocation4 + $0xe8] sm:$0xff] %vm627_vm2, %v2033_v59  ;;  %v2032_v9 = vadd.f32 %v2000_v2, %v7797_v22  ;;  %v2435_v63 = vld [vmem:[#allocation4 + $0x48] sm:$0xff] }
 0x231   : > { %v2277_v57 = vpop.f32.mrf.mxu1  ;;  %v8010_v23 = vpop.f32.mrf.mxu0  ;;  %v2003_v8 = vld [vmem:[#allocation4 + $0xf8] sm:$0xff] }
 0x232   : > { %2493 = vst.msk [vmem:[#allocation4 + $0x18] sm:$0xff] %vm627_vm2, %v2461_v6  ;;  %v2460_v62 = vadd.f32 %v2428_v32, %v2277_v57  ;;  %2064 = vst.msk [vmem:[#allocation4 + $0xe0] sm:$0xff] %vm627_vm2, %v2032_v9  ;;  %v2035_v13 = vadd.f32 %v8552_v45, %v2003_v8  ;;  %v2434_v32 = vld [vmem:[#allocation4 + $0x40] sm:$0xff] }
 0x233   : > { %v6184_v35 = vpop.f32.mrf.mxu1  ;;  %v8015_v16 = vpop.f32.mrf.mxu0  ;;  %v2002_v12 = vld [vmem:[#allocation4 + $0xf0] sm:$0xff] }
 0x234   : > { %2492 = vst.msk [vmem:[#allocation4 + $0x10] sm:$0xff] %vm627_vm2, %v2460_v62  ;;  %v2463_v22 = vadd.f32 %v6184_v35, %v2431_v52  ;;  %2067 = vst.msk [vmem:[#allocation4 + $0xf8] sm:$0xff] %vm627_vm2, %v2035_v13  ;;  %v2034_v26 = vadd.f32 %v2002_v12, %v7808_v28  ;;  %v2437_v35 = vld [vmem:[#allocation4 + $0x58] sm:$0xff] }
 0x235   : > { %v2287_v19 = vpop.f32.mrf.mxu1  ;;  %v8020_v4 = vpop.f32.mrf.mxu0  ;;  %v2881_v36 = vld [vmem:[#allocation4 + $0x8] sm:$0xff] }
 0x236   : > { %2495 = vst.msk [vmem:[#allocation4 + $0x28] sm:$0xff] %vm627_vm2, %v2463_v22  ;;  %v2462_v18 = vadd.f32 %v2430_v29, %v2287_v19  ;;  %2066 = vst.msk [vmem:[#allocation4 + $0xf0] sm:$0xff] %vm627_vm2, %v2034_v26  ;;  %v2913_v48 = vadd.f32 %v7812_v10, %v2881_v36  ;;  %v2436_v19 = vld [vmem:[#allocation4 + $0x50] sm:$0xff] }
 0x237   : > { %v6187_v47 = vpop.f32.mrf.mxu1  ;;  %v8025_v42 = vpop.f32.mrf.mxu0  ;;  %v2880_v7 = vld [vmem:[#allocation4] sm:$0xff] }
 0x238   : > { %2494 = vst.msk [vmem:[#allocation4 + $0x20] sm:$0xff] %vm627_vm2, %v2462_v18  ;;  %v2465_v28 = vadd.f32 %v6187_v47, %v2433_v15  ;;  %2945 = vst.msk [vmem:[#allocation4 + $0x8] sm:$0xff] %vm627_vm2, %v2913_v48  ;;  %v2912_v33 = vadd.f32 %v2880_v7, %v7821_v41  ;;  %v2439_v47 = vld [vmem:[#allocation4 + $0x68] sm:$0xff] }
 0x239   : > { %v2297_v31 = vpop.f32.mrf.mxu1  ;;  %v8030_v30 = vpop.f32.mrf.mxu0  ;;  %v2883_v38 = vld [vmem:[#allocation4 + $0x18] sm:$0xff] }
 0x23a   : > { %2497 = vst.msk [vmem:[#allocation4 + $0x38] sm:$0xff] %vm627_vm2, %v2465_v28  ;;  %v2464_v10 = vadd.f32 %v2432_v27, %v2297_v31  ;;  %2944 = vst.msk [vmem:[#allocation4] sm:$0xff] %vm627_vm2, %v2912_v33  ;;  %v2915_v59 = vadd.f32 %v7826_v39, %v2883_v38  ;;  %v4916_v33 = vld [vmem:[%s8536_s3 + $0x10] sm:$0xff] }
 0x23b   : > { %v6190_v21 = vpop.f32.mrf.mxu1  ;;  %v8035_v2 = vpop.f32.mrf.mxu0  ;;  %v2882_v6 = vld [vmem:[#allocation4 + $0x10] sm:$0xff]  ;;  %v2438_v27 = vld [vmem:[#allocation4 + $0x60] sm:$0xff]  ;;  %6506 = vmatprep.subr.mxu1 %v4916_v33 }
 0x23c   : > { %2496 = vst.msk [vmem:[#allocation4 + $0x30] sm:$0xff] %vm627_vm2, %v2464_v10  ;;  %v2467_v41 = vadd.f32 %v6190_v21, %v2435_v63  ;;  %2947 = vst.msk [vmem:[#allocation4 + $0x18] sm:$0xff] %vm627_vm2, %v2915_v59  ;;  %v2914_v9 = vadd.f32 %v2882_v6, %v7835_v44  ;;  %6507 = vmatpush3.msra.mxu1 %v4916_v33 }
 0x23d   : > { %v2307_v57 = vpop.f32.mrf.mxu1  ;;  %v8040_v8 = vpop.f32.mrf.mxu0  ;;  %v2885_v62 = vld [vmem:[#allocation4 + $0x28] sm:$0xff] }
 0x23e   : > { %2499 = vst.msk [vmem:[#allocation4 + $0x48] sm:$0xff] %vm627_vm2, %v2467_v41  ;;  %v2466_v39 = vadd.f32 %v2434_v32, %v2307_v57  ;;  %2946 = vst.msk [vmem:[#allocation4 + $0x10] sm:$0xff] %vm627_vm2, %v2914_v9  ;;  %v2917_v45 = vadd.f32 %v7840_v43, %v2885_v62  ;;  %v2440_v32 = vld [vmem:[#allocation4 + $0x70] sm:$0xff] }
 0x23f   : > { %v6193_v13 = vpop.f32.mrf.mxu1  ;;  %v8045_v52 = vpop.f32.mrf.mxu0  ;;  %v2884_v12 = vld [vmem:[#allocation4 + $0x20] sm:$0xff] }
 0x240   : > { %2498 = vst.msk [vmem:[#allocation4 + $0x40] sm:$0xff] %vm627_vm2, %v2466_v39  ;;  %v2469_v44 = vadd.f32 %v6193_v13, %v2437_v35  ;;  %2949 = vst.msk [vmem:[#allocation4 + $0x28] sm:$0xff] %vm627_vm2, %v2917_v45  ;;  %v2916_v22 = vadd.f32 %v2884_v12, %v7849_v53  ;;  %v2443_v35 = vld [vmem:[#allocation4 + $0x88] sm:$0xff] }
 0x241   : > { %v2317_v26 = vpop.f32.mrf.mxu1  ;;  %v8050_v29 = vpop.f32.mrf.mxu0  ;;  %v2887_v36 = vld [vmem:[#allocation4 + $0x38] sm:$0xff] }
 0x242   : > { %2501 = vst.msk [vmem:[#allocation4 + $0x58] sm:$0xff] %vm627_vm2, %v2469_v44  ;;  %v2468_v43 = vadd.f32 %v2436_v19, %v2317_v26  ;;  %2948 = vst.msk [vmem:[#allocation4 + $0x20] sm:$0xff] %vm627_vm2, %v2916_v22  ;;  %v2919_v18 = vadd.f32 %v7854_v17, %v2887_v36  ;;  %v2442_v19 = vld [vmem:[#allocation4 + $0x80] sm:$0xff] }
 0x243   : > { %v6196_v48 = vpop.f32.mrf.mxu1  ;;  %v8055_v15 = vpop.f32.mrf.mxu0  ;;  %v2886_v7 = vld [vmem:[#allocation4 + $0x30] sm:$0xff] }
 0x244   : > { %2500 = vst.msk [vmem:[#allocation4 + $0x50] sm:$0xff] %vm627_vm2, %v2468_v43  ;;  %v2471_v53 = vadd.f32 %v6196_v48, %v2439_v47  ;;  %2951 = vst.msk [vmem:[#allocation4 + $0x38] sm:$0xff] %vm627_vm2, %v2919_v18  ;;  %v2918_v28 = vadd.f32 %v2886_v7, %v7863_v60  ;;  %v2441_v60 = vld [vmem:[#allocation4 + $0x78] sm:$0xff] }
 0x245   : > { %v2327_v31 = vpop.f32.mrf.mxu1  ;;  %v8063_v38 = vpop.f32.mrf.mxu0  ;;  %v2889_v17 = vld [vmem:[#allocation4 + $0x48] sm:$0xff]  ;;  %v2445_v7 = vld [vmem:[#allocation4 + $0x98] sm:$0xff] }
 0x246   : > { %2503 = vst.msk [vmem:[#allocation4 + $0x68] sm:$0xff] %vm627_vm2, %v2471_v53  ;;  %v2470_v10 = vadd.f32 %v2438_v27, %v2327_v31  ;;  %2950 = vst.msk [vmem:[#allocation4 + $0x30] sm:$0xff] %vm627_vm2, %v2918_v28  ;;  %v2921_v59 = vadd.f32 %v7868_v25, %v2889_v17  ;;  %v4914_v28 = vld [vmem:[%s8536_s3] sm:$0xff] }
 0x247   : > { %v6199_v21 = vpop.f32.mrf.mxu1  ;;  %v8068_v63 = vpop.f32.mrf.mxu0  ;;  %v2888_v6 = vld [vmem:[#allocation4 + $0x40] sm:$0xff]  ;;  %v2444_v27 = vld [vmem:[#allocation4 + $0x90] sm:$0xff] }
 0x248   : > { %2502 = vst.msk [vmem:[#allocation4 + $0x60] sm:$0xff] %vm627_vm2, %v2470_v10  ;;  %v2473_v41 = vadd.f32 %v6199_v21, %v2441_v60  ;;  %2953 = vst.msk [vmem:[#allocation4 + $0x48] sm:$0xff] %vm627_vm2, %v2921_v59  ;;  %v2920_v9 = vadd.f32 %v2888_v6, %v7877_v1  ;;  %v2447_v6 = vld [vmem:[#allocation4 + $0xa8] sm:$0xff] }
 0x249   : > { %v2337_v57 = vpop.f32.mrf.mxu1  ;;  %v8073_v62 = vpop.f32.mrf.mxu0  ;;  %v2891_v39 = vld [vmem:[#allocation4 + $0x58] sm:$0xff] }
 0x24a   : > { %2505 = vst.msk [vmem:[#allocation4 + $0x78] sm:$0xff] %vm627_vm2, %v2473_v41  ;;  %v2472_v25 = vadd.f32 %v2440_v32, %v2337_v57  ;;  %2952 = vst.msk [vmem:[#allocation4 + $0x40] sm:$0xff] %vm627_vm2, %v2920_v9  ;;  %v2923_v45 = vadd.f32 %v7882_v54, %v2891_v39  ;;  %v4915_v54 = vld [vmem:[%s8536_s3 + $0x8] sm:$0xff]  ;;  %v2446_v39 = vld [vmem:[#allocation4 + $0xa0] sm:$0xff] }
 0x24b   : > { %v6202_v13 = vpop.f32.mrf.mxu1  ;;  %v8078_v12 = vpop.f32.mrf.mxu0  ;;  %v2890_v44 = vld [vmem:[#allocation4 + $0x50] sm:$0xff]  ;;  %6508 = vmatprep.subr.mxu1 %v4915_v54 }
 0x24c   : > { %2504 = vst.msk [vmem:[#allocation4 + $0x70] sm:$0xff] %vm627_vm2, %v2472_v25  ;;  %v2475_v1 = vadd.f32 %v6202_v13, %v2443_v35  ;;  %2955 = vst.msk [vmem:[#allocation4 + $0x58] sm:$0xff] %vm627_vm2, %v2923_v45  ;;  %v2922_v22 = vadd.f32 %v2890_v44, %v7891_v51  ;;  %6509 = vmatpush3.msra.mxu1 %v4915_v54  ;;  %v2449_v44 = vld [vmem:[#allocation4 + $0xb8] sm:$0xff] }
 0x24d   : > { %v2347_v26 = vpop.f32.mrf.mxu1  ;;  %v8083_v36 = vpop.f32.mrf.mxu0  ;;  %v2893_v43 = vld [vmem:[#allocation4 + $0x68] sm:$0xff]  ;;  %6510 = vmatprep.subr.mxu1 %v4914_v28 }
 0x24e   : > { %2507 = vst.msk [vmem:[#allocation4 + $0x88] sm:$0xff] %vm627_vm2, %v2475_v1  ;;  %v2474_v18 = vadd.f32 %v2442_v19, %v2347_v26  ;;  %2954 = vst.msk [vmem:[#allocation4 + $0x50] sm:$0xff] %vm627_vm2, %v2922_v22  ;;  %v2925_v48 = vadd.f32 %v7896_v55, %v2893_v43  ;;  %6511 = vmatpush3.msra.mxu1 %v4914_v28  ;;  %v2448_v43 = vld [vmem:[#allocation4 + $0xb0] sm:$0xff] }
 0x24f   : > { %v6205_v47 = vpop.f32.mrf.mxu1  ;;  %v8091_v51 = vpop.f32.mrf.mxu0  ;;  %v2892_v53 = vld [vmem:[#allocation4 + $0x60] sm:$0xff] }
 0x250   : > { %2506 = vst.msk [vmem:[#allocation4 + $0x80] sm:$0xff] %vm627_vm2, %v2474_v18  ;;  %v2477_v33 = vadd.f32 %v6205_v47, %v2445_v7  ;;  %2957 = vst.msk [vmem:[#allocation4 + $0x68] sm:$0xff] %vm627_vm2, %v2925_v48  ;;  %v2924_v31 = vadd.f32 %v2892_v53, %v7905_v24  ;;  %v2451_v7 = vld [vmem:[#allocation4 + $0xc8] sm:$0xff] }
 0x251   : > { %v2357_v55 = vpop.f32.mrf.mxu1  ;;  %v8099_v17 = vpop.f32.mrf.mxu0  ;;  %v2895_v10 = vld [vmem:[#allocation4 + $0x78] sm:$0xff] }
 0x252   : > { %2509 = vst.msk [vmem:[#allocation4 + $0x98] sm:$0xff] %vm627_vm2, %v2477_v33  ;;  %v2476_v59 = vadd.f32 %v2444_v27, %v2357_v55  ;;  %2956 = vst.msk [vmem:[#allocation4 + $0x60] sm:$0xff] %vm627_vm2, %v2924_v31  ;;  %v2927_v21 = vadd.f32 %v7910_v40, %v2895_v10  ;;  %v2450_v55 = vld [vmem:[#allocation4 + $0xc0] sm:$0xff] }
 0x253   : > { %v6208_v60 = vpop.f32.mrf.mxu1  ;;  %v8104_v41 = vpop.f32.mrf.mxu0  ;;  %v2894_v9 = vld [vmem:[#allocation4 + $0x70] sm:$0xff] }
 0x254   : > { %2508 = vst.msk [vmem:[#allocation4 + $0x90] sm:$0xff] %vm627_vm2, %v2476_v59  ;;  %v2479_v24 = vadd.f32 %v6208_v60, %v2447_v6  ;;  %2959 = vst.msk [vmem:[#allocation4 + $0x78] sm:$0xff] %vm627_vm2, %v2927_v21  ;;  %v2926_v57 = vadd.f32 %v2894_v9, %v7919_v11  ;;  %v2453_v60 = vld [vmem:[#allocation4 + $0xd8] sm:$0xff] }
 0x255   : > { %v2367_v32 = vpop.f32.mrf.mxu1  ;;  %v8109_v25 = vpop.f32.mrf.mxu0  ;;  %v2897_v45 = vld [vmem:[#allocation4 + $0x88] sm:$0xff] }
 0x256   : > { %2511 = vst.msk [vmem:[#allocation4 + $0xa8] sm:$0xff] %vm627_vm2, %v2479_v24  ;;  %v2478_v40 = vadd.f32 %v2446_v39, %v2367_v32  ;;  %2958 = vst.msk [vmem:[#allocation4 + $0x70] sm:$0xff] %vm627_vm2, %v2926_v57  ;;  %v2929_v13 = vadd.f32 %v7924_v20, %v2897_v45  ;;  %v2452_v32 = vld [vmem:[#allocation4 + $0xd0] sm:$0xff] }
 0x257   : > { %v6211_v35 = vpop.f32.mrf.mxu1  ;;  %v8114_v1 = vpop.f32.mrf.mxu0  ;;  %v2896_v22 = vld [vmem:[#allocation4 + $0x80] sm:$0xff] }
 0x258   : > { %2510 = vst.msk [vmem:[#allocation4 + $0xa0] sm:$0xff] %vm627_vm2, %v2478_v40  ;;  %v2481_v11 = vadd.f32 %v6211_v35, %v2449_v44  ;;  %2961 = vst.msk [vmem:[#allocation4 + $0x88] sm:$0xff] %vm627_vm2, %v2929_v13  ;;  %v2928_v26 = vadd.f32 %v2896_v22, %v7933_v50  ;;  %v2455_v35 = vld [vmem:[#allocation4 + $0xe8] sm:$0xff] }
 0x259   : > { %v2377_v19 = vpop.f32.mrf.mxu1  ;;  %v8119_v54 = vpop.f32.mrf.mxu0  ;;  %v2899_v18 = vld [vmem:[#allocation4 + $0x98] sm:$0xff] }
 0x25a   : > { %2513 = vst.msk [vmem:[#allocation4 + $0xb8] sm:$0xff] %vm627_vm2, %v2481_v11  ;;  %v2480_v20 = vadd.f32 %v2448_v43, %v2377_v19  ;;  %2960 = vst.msk [vmem:[#allocation4 + $0x80] sm:$0xff] %vm627_vm2, %v2928_v26  ;;  %v2931_v48 = vadd.f32 %v7938_v58, %v2899_v18  ;;  %v2454_v19 = vld [vmem:[#allocation4 + $0xe0] sm:$0xff] }
 0x25b   : > { %v6214_v47 = vpop.f32.mrf.mxu1  ;;  %v8124_v53 = vpop.f32.mrf.mxu0  ;;  %v2898_v28 = vld [vmem:[#allocation4 + $0x90] sm:$0xff] }
 0x25c   : > { %2512 = vst.msk [vmem:[#allocation4 + $0xb0] sm:$0xff] %vm627_vm2, %v2480_v20  ;;  %v2483_v50 = vadd.f32 %v6214_v47, %v2451_v7  ;;  %2963 = vst.msk [vmem:[#allocation4 + $0x98] sm:$0xff] %vm627_vm2, %v2931_v48  ;;  %v2930_v33 = vadd.f32 %v2898_v28, %v7947_v49  ;;  %v2457_v47 = vld [vmem:[#allocation4 + $0xf8] sm:$0xff] }
 0x25d   : > { %v2387_v31 = vpop.f32.mrf.mxu1  ;;  %v8129_v27 = vpop.f32.mrf.mxu0  ;;  %v2901_v10 = vld [vmem:[#allocation4 + $0xa8] sm:$0xff] }
 0x25e   : > { %2515 = vst.msk [vmem:[#allocation4 + $0xc8] sm:$0xff] %vm627_vm2, %v2483_v50  ;;  %v2482_v58 = vadd.f32 %v2450_v55, %v2387_v31  ;;  %2962 = vst.msk [vmem:[#allocation4 + $0x90] sm:$0xff] %vm627_vm2, %v2930_v33  ;;  %v2933_v59 = vadd.f32 %v7952_v34, %v2901_v10  ;;  %v2456_v31 = vld [vmem:[#allocation4 + $0xf0] sm:$0xff] }
 0x25f   : > { %v6217_v21 = vpop.f32.mrf.mxu1  ;;  %v8134_v6 = vpop.f32.mrf.mxu0  ;;  %v2900_v9 = vld [vmem:[#allocation4 + $0xa0] sm:$0xff] }
 0x260   : > { %2514 = vst.msk [vmem:[#allocation4 + $0xc0] sm:$0xff] %vm627_vm2, %v2482_v58  ;;  %v2485_v49 = vadd.f32 %v6217_v21, %v2453_v60  ;;  %2965 = vst.msk [vmem:[#allocation4 + $0xa8] sm:$0xff] %vm627_vm2, %v2933_v59  ;;  %v2932_v24 = vadd.f32 %v2900_v9, %v7961_v5  ;;  %v3335_v21 = vld [vmem:[#allocation4 + $0x8] sm:$0xff] }
 0x261   : > { %v2397_v57 = vpop.f32.mrf.mxu1  ;;  %v8139_v39 = vpop.f32.mrf.mxu0  ;;  %v2903_v45 = vld [vmem:[#allocation4 + $0xb8] sm:$0xff] }
 0x262   : > { %2517 = vst.msk [vmem:[#allocation4 + $0xd8] sm:$0xff] %vm627_vm2, %v2485_v49  ;;  %v2484_v34 = vadd.f32 %v2452_v32, %v2397_v57  ;;  %2964 = vst.msk [vmem:[#allocation4 + $0xa0] sm:$0xff] %vm627_vm2, %v2932_v24  ;;  %v2935_v40 = vadd.f32 %v7966_v56, %v2903_v45  ;;  %v3334_v57 = vld [vmem:[#allocation4] sm:$0xff] }
 0x263   : > { %v6220_v13 = vpop.f32.mrf.mxu1  ;;  %v8144_v44 = vpop.f32.mrf.mxu0  ;;  %v2902_v22 = vld [vmem:[#allocation4 + $0xb0] sm:$0xff] }
 0x264   : > { %2516 = vst.msk [vmem:[#allocation4 + $0xd0] sm:$0xff] %vm627_vm2, %v2484_v34  ;;  %v2487_v5 = vadd.f32 %v6220_v13, %v2455_v35  ;;  %2967 = vst.msk [vmem:[#allocation4 + $0xb8] sm:$0xff] %vm627_vm2, %v2935_v40  ;;  %v2934_v11 = vadd.f32 %v2902_v22, %v7975_v0  ;;  %v3337_v13 = vld [vmem:[#allocation4 + $0x18] sm:$0xff] }
 0x265   : > { %v2407_v26 = vpop.f32.mrf.mxu1  ;;  %v8149_v43 = vpop.f32.mrf.mxu0  ;;  %v2905_v18 = vld [vmem:[#allocation4 + $0xc8] sm:$0xff] }
 0x266   : > { %2519 = vst.msk [vmem:[#allocation4 + $0xe8] sm:$0xff] %vm627_vm2, %v2487_v5  ;;  %v2486_v56 = vadd.f32 %v2454_v19, %v2407_v26  ;;  %2966 = vst.msk [vmem:[#allocation4 + $0xb0] sm:$0xff] %vm627_vm2, %v2934_v11  ;;  %v2937_v20 = vadd.f32 %v7980_v46, %v2905_v18  ;;  %v3336_v26 = vld [vmem:[#allocation4 + $0x10] sm:$0xff] }
 0x267   : > { %v6223_v48 = vpop.f32.mrf.mxu1  ;;  %v8154_v7 = vpop.f32.mrf.mxu0  ;;  %v2904_v28 = vld [vmem:[#allocation4 + $0xc0] sm:$0xff] }
 0x268   : > { %2518 = vst.msk [vmem:[#allocation4 + $0xe0] sm:$0xff] %vm627_vm2, %v2486_v56  ;;  %v2489_v0 = vadd.f32 %v6223_v48, %v2457_v47  ;;  %2969 = vst.msk [vmem:[#allocation4 + $0xc8] sm:$0xff] %vm627_vm2, %v2937_v20  ;;  %v2936_v50 = vadd.f32 %v2904_v28, %v7987_v3  ;;  %v3339_v48 = vld [vmem:[#allocation4 + $0x28] sm:$0xff] }
 0x269   : > { %v2417_v33 = vpop.f32.mrf.mxu1  ;;  %v8159_v55 = vpop.f32.mrf.mxu0  ;;  %v2907_v10 = vld [vmem:[#allocation4 + $0xd8] sm:$0xff] }
 0x26a   : > { %2521 = vst.msk [vmem:[#allocation4 + $0xf8] sm:$0xff] %vm627_vm2, %v2489_v0  ;;  %v2488_v46 = vadd.f32 %v2456_v31, %v2417_v33  ;;  %2968 = vst.msk [vmem:[#allocation4 + $0xc0] sm:$0xff] %vm627_vm2, %v2936_v50  ;;  %v2939_v58 = vadd.f32 %v7995_v61, %v2907_v10  ;;  %v3338_v33 = vld [vmem:[#allocation4 + $0x20] sm:$0xff] }
 0x26b   : > { %v6290_v59 = vpop.f32.mrf.mxu1  ;;  %v8164_v60 = vpop.f32.mrf.mxu0  ;;  %v2906_v9 = vld [vmem:[#allocation4 + $0xd0] sm:$0xff] }
 0x26c   : > { %2520 = vst.msk [vmem:[#allocation4 + $0xf0] sm:$0xff] %vm627_vm2, %v2488_v46  ;;  %v3367_v3 = vadd.f32 %v6290_v59, %v3335_v21  ;;  %2971 = vst.msk [vmem:[#allocation4 + $0xd8] sm:$0xff] %vm627_vm2, %v2939_v58  ;;  %v2938_v49 = vadd.f32 %v2906_v9, %v8000_v14  ;;  %v3341_v59 = vld [vmem:[#allocation4 + $0x38] sm:$0xff] }
 0x26d   : > { %v3175_v24 = vpop.f32.mrf.mxu1  ;;  %v8169_v32 = vpop.f32.mrf.mxu0  ;;  %v2909_v45 = vld [vmem:[#allocation4 + $0xe8] sm:$0xff] }
 0x26e   : > { %3399 = vst.msk [vmem:[#allocation4 + $0x8] sm:$0xff] %vm627_vm2, %v3367_v3  ;;  %v3366_v61 = vadd.f32 %v3334_v57, %v3175_v24  ;;  %2970 = vst.msk [vmem:[#allocation4 + $0xd0] sm:$0xff] %vm627_vm2, %v2938_v49  ;;  %v2941_v34 = vadd.f32 %v8005_v37, %v2909_v45  ;;  %v3340_v24 = vld [vmem:[#allocation4 + $0x30] sm:$0xff] }
 0x26f   : > { %v6293_v40 = vpop.f32.mrf.mxu1  ;;  %v8174_v35 = vpop.f32.mrf.mxu0  ;;  %v2908_v22 = vld [vmem:[#allocation4 + $0xe0] sm:$0xff] }
 0x270   : > { %3398 = vst.msk [vmem:[#allocation4] sm:$0xff] %vm627_vm2, %v3366_v61  ;;  %v3369_v14 = vadd.f32 %v6293_v40, %v3337_v13  ;;  %2973 = vst.msk [vmem:[#allocation4 + $0xe8] sm:$0xff] %vm627_vm2, %v2941_v34  ;;  %v2940_v5 = vadd.f32 %v2908_v22, %v8010_v23  ;;  %v3343_v40 = vld [vmem:[#allocation4 + $0x48] sm:$0xff] }
 0x271   : > { %v3185_v11 = vpop.f32.mrf.mxu1  ;;  %v8179_v19 = vpop.f32.mrf.mxu0  ;;  %v2911_v18 = vld [vmem:[#allocation4 + $0xf8] sm:$0xff] }
 0x272   : > { %3401 = vst.msk [vmem:[#allocation4 + $0x18] sm:$0xff] %vm627_vm2, %v3369_v14  ;;  %v3368_v37 = vadd.f32 %v3336_v26, %v3185_v11  ;;  %2972 = vst.msk [vmem:[#allocation4 + $0xe0] sm:$0xff] %vm627_vm2, %v2940_v5  ;;  %v2943_v56 = vadd.f32 %v8015_v16, %v2911_v18  ;;  %v3342_v5 = vld [vmem:[#allocation4 + $0x40] sm:$0xff] }
 0x273   : > { %v6296_v20 = vpop.f32.mrf.mxu1  ;;  %v8184_v47 = vpop.f32.mrf.mxu0  ;;  %v2910_v28 = vld [vmem:[#allocation4 + $0xf0] sm:$0xff] }
 0x274   : > { %3400 = vst.msk [vmem:[#allocation4 + $0x10] sm:$0xff] %vm627_vm2, %v3368_v37  ;;  %v3371_v23 = vadd.f32 %v6296_v20, %v3339_v48  ;;  %2975 = vst.msk [vmem:[#allocation4 + $0xf8] sm:$0xff] %vm627_vm2, %v2943_v56  ;;  %v2942_v0 = vadd.f32 %v2910_v28, %v8020_v4  ;;  %v3345_v56 = vld [vmem:[#allocation4 + $0x58] sm:$0xff] }
 0x275   : > { %v3195_v50 = vpop.f32.mrf.mxu1  ;;  %v8189_v31 = vpop.f32.mrf.mxu0  ;;  %v3789_v10 = vld [vmem:[#allocation4 + $0x8] sm:$0xff] }
 0x276   : > { %3403 = vst.msk [vmem:[#allocation4 + $0x28] sm:$0xff] %vm627_vm2, %v3371_v23  ;;  %v3370_v16 = vadd.f32 %v3338_v33, %v3195_v50  ;;  %2974 = vst.msk [vmem:[#allocation4 + $0xf0] sm:$0xff] %vm627_vm2, %v2942_v0  ;;  %v3821_v46 = vadd.f32 %v8025_v42, %v3789_v10  ;;  %v3344_v23 = vld [vmem:[#allocation4 + $0x50] sm:$0xff] }
 0x277   : > { %v6299_v58 = vpop.f32.mrf.mxu1  ;;  %v8194_v21 = vpop.f32.mrf.mxu0  ;;  %v3788_v9 = vld [vmem:[#allocation4] sm:$0xff] }
 0x278   : > { %3402 = vst.msk [vmem:[#allocation4 + $0x20] sm:$0xff] %vm627_vm2, %v3370_v16  ;;  %v3373_v4 = vadd.f32 %v6299_v58, %v3341_v59  ;;  %3853 = vst.msk [vmem:[#allocation4 + $0x8] sm:$0xff] %vm627_vm2, %v3821_v46  ;;  %v3820_v3 = vadd.f32 %v3788_v9, %v8030_v30  ;;  %v3347_v16 = vld [vmem:[#allocation4 + $0x68] sm:$0xff]  ;;  %v3346_v9 = vld [vmem:[#allocation4 + $0x60] sm:$0xff] }
 0x279   : > { %v3205_v49 = vpop.f32.mrf.mxu1  ;;  %v3791_v57 = vld [vmem:[#allocation4 + $0x18] sm:$0xff]  ;;  %v8202_v61 = vpop.f32.mrf.mxu0 }
 0x27a   : > { %3405 = vst.msk [vmem:[#allocation4 + $0x38] sm:$0xff] %vm627_vm2, %v3373_v4  ;;  %v3372_v45 = vadd.f32 %v3340_v24, %v3205_v49  ;;  %3852 = vst.msk [vmem:[#allocation4] sm:$0xff] %vm627_vm2, %v3820_v3  ;;  %v3823_v42 = vadd.f32 %v8035_v2, %v3791_v57  ;;  %v3349_v57 = vld [vmem:[#allocation4 + $0x78] sm:$0xff] }
 0x27b   : > { %v6302_v34 = vpop.f32.mrf.mxu1  ;;  %v3790_v13 = vld [vmem:[#allocation4 + $0x10] sm:$0xff]  ;;  %v8210_v18 = vpop.f32.mrf.mxu0 }
 0x27c   : > { %3404 = vst.msk [vmem:[#allocation4 + $0x30] sm:$0xff] %vm627_vm2, %v3372_v45  ;;  %v3375_v22 = vadd.f32 %v6302_v34, %v3343_v40  ;;  %3855 = vst.msk [vmem:[#allocation4 + $0x18] sm:$0xff] %vm627_vm2, %v3823_v42  ;;  %v3822_v30 = vadd.f32 %v3790_v13, %v8040_v8  ;;  %v3348_v40 = vld [vmem:[#allocation4 + $0x70] sm:$0xff] }
 0x27d   : > { %v3215_v14 = vpop.f32.mrf.mxu1  ;;  %v3793_v11 = vld [vmem:[#allocation4 + $0x28] sm:$0xff]  ;;  %v8218_v33 = vpop.f32.mrf.mxu0 }
 0x27e   : > { %3407 = vst.msk [vmem:[#allocation4 + $0x48] sm:$0xff] %vm627_vm2, %v3375_v22  ;;  %v3374_v26 = vadd.f32 %v3342_v5, %v3215_v14  ;;  %3854 = vst.msk [vmem:[#allocation4 + $0x10] sm:$0xff] %vm627_vm2, %v3822_v30  ;;  %v3825_v2 = vadd.f32 %v8045_v52, %v3793_v11  ;;  %v3351_v5 = vld [vmem:[#allocation4 + $0x88] sm:$0xff] }
 0x27f   : > { %v6305_v37 = vpop.f32.mrf.mxu1  ;;  %v3792_v20 = vld [vmem:[#allocation4 + $0x20] sm:$0xff]  ;;  %v8226_v49 = vpop.f32.mrf.mxu0 }
 0x280   : > { %3406 = vst.msk [vmem:[#allocation4 + $0x40] sm:$0xff] %vm627_vm2, %v3374_v26  ;;  %v3377_v48 = vadd.f32 %v6305_v37, %v3345_v56  ;;  %3857 = vst.msk [vmem:[#allocation4 + $0x28] sm:$0xff] %vm627_vm2, %v3825_v2  ;;  %v3824_v8 = vadd.f32 %v3792_v20, %v8050_v29  ;;  %v3350_v37 = vld [vmem:[#allocation4 + $0x80] sm:$0xff] }
 0x281   : > { %v3225_v28 = vpop.f32.mrf.mxu1  ;;  %v3795_v0 = vld [vmem:[#allocation4 + $0x38] sm:$0xff]  ;;  %v8234_v30 = vpop.f32.mrf.mxu0 }
 0x282   : > { %3409 = vst.msk [vmem:[#allocation4 + $0x58] sm:$0xff] %vm627_vm2, %v3377_v48  ;;  %v3376_v50 = vadd.f32 %v3344_v23, %v3225_v28  ;;  %3856 = vst.msk [vmem:[#allocation4 + $0x20] sm:$0xff] %vm627_vm2, %v3824_v8  ;;  %v3827_v52 = vadd.f32 %v8055_v15, %v3795_v0  ;;  %v3353_v28 = vld [vmem:[#allocation4 + $0x98] sm:$0xff] }
 0x283   : > { %v6308_v10 = vpop.f32.mrf.mxu1  ;;  %v3794_v46 = vld [vmem:[#allocation4 + $0x30] sm:$0xff]  ;;  %v8242_v48 = vpop.f32.mrf.mxu0 }
 0x284   : > { %3408 = vst.msk [vmem:[#allocation4 + $0x50] sm:$0xff] %vm627_vm2, %v3376_v50  ;;  %v3379_v58 = vadd.f32 %v6308_v10, %v3347_v16  ;;  %3859 = vst.msk [vmem:[#allocation4 + $0x38] sm:$0xff] %vm627_vm2, %v3827_v52  ;;  %v3826_v29 = vadd.f32 %v3794_v46, %v8063_v38  ;;  %v3352_v52 = vld [vmem:[#allocation4 + $0x90] sm:$0xff] }
 0x285   : > { %v3235_v59 = vpop.f32.mrf.mxu1  ;;  %v3797_v4 = vld [vmem:[#allocation4 + $0x48] sm:$0xff]  ;;  %v8250_v46 = vpop.f32.mrf.mxu0 }
 0x286   : > { %3411 = vst.msk [vmem:[#allocation4 + $0x68] sm:$0xff] %vm627_vm2, %v3379_v58  ;;  %v3378_v3 = vadd.f32 %v3346_v9, %v3235_v59  ;;  %3858 = vst.msk [vmem:[#allocation4 + $0x30] sm:$0xff] %vm627_vm2, %v3826_v29  ;;  %v3829_v15 = vadd.f32 %v8068_v63, %v3797_v4  ;;  %v3355_v29 = vld [vmem:[#allocation4 + $0xa8] sm:$0xff] }
 0x287   : > { %v6311_v24 = vpop.f32.mrf.mxu1  ;;  %v3796_v45 = vld [vmem:[#allocation4 + $0x40] sm:$0xff] }
 0x288   : > { %3410 = vst.msk [vmem:[#allocation4 + $0x60] sm:$0xff] %vm627_vm2, %v3378_v3  ;;  %v3381_v42 = vadd.f32 %v6311_v24, %v3349_v57  ;;  %3861 = vst.msk [vmem:[#allocation4 + $0x48] sm:$0xff] %vm627_vm2, %v3829_v15  ;;  %v3828_v38 = vadd.f32 %v3796_v45, %v8073_v62  ;;  %v3354_v3 = vld [vmem:[#allocation4 + $0xa0] sm:$0xff]  ;;  %v8258_v57 = vpop.f32.mrf.mxu0 }
 0x289   : > { %v3245_v34 = vpop.f32.mrf.mxu1  ;;  %v3799_v13 = vld [vmem:[#allocation4 + $0x58] sm:$0xff] }
 0x28a   : > { %3413 = vst.msk [vmem:[#allocation4 + $0x78] sm:$0xff] %vm627_vm2, %v3381_v42  ;;  %v3380_v22 = vadd.f32 %v3348_v40, %v3245_v34  ;;  %3860 = vst.msk [vmem:[#allocation4 + $0x40] sm:$0xff] %vm627_vm2, %v3828_v38  ;;  %v3831_v63 = vadd.f32 %v8078_v12, %v3799_v13  ;;  %v3357_v42 = vld [vmem:[#allocation4 + $0xb8] sm:$0xff]  ;;  %v3356_v13 = vld [vmem:[#allocation4 + $0xb0] sm:$0xff] }
 0x28b   : > { %v6314_v14 = vpop.f32.mrf.mxu1  ;;  %v3798_v11 = vld [vmem:[#allocation4 + $0x50] sm:$0xff] }
 0x28c   : > { %3412 = vst.msk [vmem:[#allocation4 + $0x70] sm:$0xff] %vm627_vm2, %v3380_v22  ;;  %v3383_v26 = vadd.f32 %v6314_v14, %v3351_v5  ;;  %3863 = vst.msk [vmem:[#allocation4 + $0x58] sm:$0xff] %vm627_vm2, %v3831_v63  ;;  %v3830_v62 = vadd.f32 %v3798_v11, %v8083_v36  ;;  %v8266_v14 = vpop.f32.mrf.mxu0  ;;  %v3359_v11 = vld [vmem:[#allocation4 + $0xc8] sm:$0xff] }
 0x28d   : > { %v3255_v2 = vpop.f32.mrf.mxu1  ;;  %v3801_v56 = vld [vmem:[#allocation4 + $0x68] sm:$0xff] }
 0x28e   : > { %3415 = vst.msk [vmem:[#allocation4 + $0x88] sm:$0xff] %vm627_vm2, %v3383_v26  ;;  %v3382_v20 = vadd.f32 %v3350_v37, %v3255_v2  ;;  %3862 = vst.msk [vmem:[#allocation4 + $0x50] sm:$0xff] %vm627_vm2, %v3830_v62  ;;  %v3833_v12 = vadd.f32 %v8091_v51, %v3801_v56  ;;  %v3358_v37 = vld [vmem:[#allocation4 + $0xc0] sm:$0xff] }
 0x28f   : > { %v6317_v8 = vpop.f32.mrf.mxu1  ;;  %v3800_v23 = vld [vmem:[#allocation4 + $0x60] sm:$0xff] }
 0x290   : > { %3414 = vst.msk [vmem:[#allocation4 + $0x80] sm:$0xff] %vm627_vm2, %v3382_v20  ;;  %v3385_v0 = vadd.f32 %v6317_v8, %v3353_v28  ;;  %3865 = vst.msk [vmem:[#allocation4 + $0x68] sm:$0xff] %vm627_vm2, %v3833_v12  ;;  %v3832_v36 = vadd.f32 %v3800_v23, %v8099_v17  ;;  %v8274_v12 = vpop.f32.mrf.mxu0  ;;  %v3361_v28 = vld [vmem:[#allocation4 + $0xd8] sm:$0xff] }
 0x291   : > { %v3265_v50 = vpop.f32.mrf.mxu1  ;;  %v3803_v10 = vld [vmem:[#allocation4 + $0x78] sm:$0xff] }
 0x292   : > { %3417 = vst.msk [vmem:[#allocation4 + $0x98] sm:$0xff] %vm627_vm2, %v3385_v0  ;;  %v3384_v16 = vadd.f32 %v3352_v52, %v3265_v50  ;;  %3864 = vst.msk [vmem:[#allocation4 + $0x60] sm:$0xff] %vm627_vm2, %v3832_v36  ;;  %v3835_v51 = vadd.f32 %v8104_v41, %v3803_v10  ;;  %v3360_v50 = vld [vmem:[#allocation4 + $0xd0] sm:$0xff] }
 0x293   : > { %v6320_v58 = vpop.f32.mrf.mxu1  ;;  %v3802_v59 = vld [vmem:[#allocation4 + $0x70] sm:$0xff] }
 0x294   : > { %3416 = vst.msk [vmem:[#allocation4 + $0x90] sm:$0xff] %vm627_vm2, %v3384_v16  ;;  %v3387_v9 = vadd.f32 %v6320_v58, %v3355_v29  ;;  %3867 = vst.msk [vmem:[#allocation4 + $0x78] sm:$0xff] %vm627_vm2, %v3835_v51  ;;  %v3834_v17 = vadd.f32 %v3802_v59, %v8109_v25  ;;  %v8282_v16 = vpop.f32.mrf.mxu0  ;;  %v3363_v58 = vld [vmem:[#allocation4 + $0xe8] sm:$0xff] }
 0x295   : > { %v3275_v4 = vpop.f32.mrf.mxu1  ;;  %v3805_v15 = vld [vmem:[#allocation4 + $0x88] sm:$0xff] }
 0x296   : > { %3419 = vst.msk [vmem:[#allocation4 + $0xa8] sm:$0xff] %vm627_vm2, %v3387_v9  ;;  %v3386_v24 = vadd.f32 %v3354_v3, %v3275_v4  ;;  %3866 = vst.msk [vmem:[#allocation4 + $0x70] sm:$0xff] %vm627_vm2, %v3834_v17  ;;  %v3837_v41 = vadd.f32 %v8114_v1, %v3805_v15  ;;  %v3362_v17 = vld [vmem:[#allocation4 + $0xe0] sm:$0xff]  ;;  %v8290_v15 = vpop.f32.mrf.mxu0 }
 0x297   : > { %v6323_v45 = vpop.f32.mrf.mxu1  ;;  %v3804_v38 = vld [vmem:[#allocation4 + $0x80] sm:$0xff] }
 0x298   : > { %3418 = vst.msk [vmem:[#allocation4 + $0xa0] sm:$0xff] %vm627_vm2, %v3386_v24  ;;  %v3389_v34 = vadd.f32 %v6323_v45, %v3357_v42  ;;  %3869 = vst.msk [vmem:[#allocation4 + $0x88] sm:$0xff] %vm627_vm2, %v3837_v41  ;;  %v3836_v25 = vadd.f32 %v3804_v38, %v8119_v54  ;;  %v3365_v41 = vld [vmem:[#allocation4 + $0xf8] sm:$0xff] }
 0x299   : > { %v3285_v40 = vpop.f32.mrf.mxu1  ;;  %v3807_v22 = vld [vmem:[#allocation4 + $0x98] sm:$0xff] }
 0x29a   : > { %3421 = vst.msk [vmem:[#allocation4 + $0xb8] sm:$0xff] %vm627_vm2, %v3389_v34  ;;  %v3388_v63 = vadd.f32 %v3356_v13, %v3285_v40  ;;  %3868 = vst.msk [vmem:[#allocation4 + $0x80] sm:$0xff] %vm627_vm2, %v3836_v25  ;;  %v3839_v1 = vadd.f32 %v8124_v53, %v3807_v22  ;;  %v3364_v34 = vld [vmem:[#allocation4 + $0xf0] sm:$0xff]  ;;  %v8298_v13 = vpop.f32.mrf.mxu0 }
 0x29b   : > { %v6326_v5 = vpop.f32.mrf.mxu1  ;;  %v3806_v26 = vld [vmem:[#allocation4 + $0x90] sm:$0xff] }
 0x29c   : > { %3420 = vst.msk [vmem:[#allocation4 + $0xb0] sm:$0xff] %vm627_vm2, %v3388_v63  ;;  %v3391_v62 = vadd.f32 %v6326_v5, %v3359_v11  ;;  %3871 = vst.msk [vmem:[#allocation4 + $0x98] sm:$0xff] %vm627_vm2, %v3839_v1  ;;  %v3838_v54 = vadd.f32 %v3806_v26, %v8129_v27  ;;  %v4243_v63 = vld [vmem:[#allocation4 + $0x8] sm:$0xff]  ;;  %v4242_v26 = vld [vmem:[#allocation4] sm:$0xff] }
 0x29d   : > { %v3295_v2 = vpop.f32.mrf.mxu1  ;;  %v3809_v56 = vld [vmem:[#allocation4 + $0xa8] sm:$0xff] }
 0x29e   : > { %3423 = vst.msk [vmem:[#allocation4 + $0xc8] sm:$0xff] %vm627_vm2, %v3391_v62  ;;  %v3390_v20 = vadd.f32 %v3358_v37, %v3295_v2  ;;  %3870 = vst.msk [vmem:[#allocation4 + $0x90] sm:$0xff] %vm627_vm2, %v3838_v54  ;;  %v3841_v53 = vadd.f32 %v8134_v6, %v3809_v56  ;;  %v8306_v2 = vpop.f32.mrf.mxu0  ;;  %v4245_v56 = vld [vmem:[#allocation4 + $0x18] sm:$0xff] }
 0x29f   : > { %v6329_v8 = vpop.f32.mrf.mxu1  ;;  %v3808_v23 = vld [vmem:[#allocation4 + $0xa0] sm:$0xff] }
 0x2a0   : > { %3422 = vst.msk [vmem:[#allocation4 + $0xc0] sm:$0xff] %vm627_vm2, %v3390_v20  ;;  %v3393_v0 = vadd.f32 %v6329_v8, %v3361_v28  ;;  %3873 = vst.msk [vmem:[#allocation4 + $0xa8] sm:$0xff] %vm627_vm2, %v3841_v53  ;;  %v3840_v27 = vadd.f32 %v3808_v23, %v8139_v39  ;;  %v4244_v28 = vld [vmem:[#allocation4 + $0x10] sm:$0xff] }
 0x2a1   : > { %v3305_v36 = vpop.f32.mrf.mxu1  ;;  %v3811_v52 = vld [vmem:[#allocation4 + $0xb8] sm:$0xff] }
 0x2a2   : > { %3425 = vst.msk [vmem:[#allocation4 + $0xd8] sm:$0xff] %vm627_vm2, %v3393_v0  ;;  %v3392_v10 = vadd.f32 %v3360_v50, %v3305_v36  ;;  %3872 = vst.msk [vmem:[#allocation4 + $0xa0] sm:$0xff] %vm627_vm2, %v3840_v27  ;;  %v3843_v6 = vadd.f32 %v8144_v44, %v3811_v52  ;;  %v8314_v27 = vpop.f32.mrf.mxu0  ;;  %v4247_v50 = vld [vmem:[#allocation4 + $0x28] sm:$0xff] }
 0x2a3   : > { %v6332_v51 = vpop.f32.mrf.mxu1  ;;  %v3810_v29 = vld [vmem:[#allocation4 + $0xb0] sm:$0xff] }
 0x2a4   : > { %3424 = vst.msk [vmem:[#allocation4 + $0xd0] sm:$0xff] %vm627_vm2, %v3392_v10  ;;  %v3395_v59 = vadd.f32 %v6332_v51, %v3363_v58  ;;  %3875 = vst.msk [vmem:[#allocation4 + $0xb8] sm:$0xff] %vm627_vm2, %v3843_v6  ;;  %v3842_v39 = vadd.f32 %v3810_v29, %v8149_v43  ;;  %v4246_v58 = vld [vmem:[#allocation4 + $0x20] sm:$0xff] }
 0x2a5   : > { %v3315_v9 = vpop.f32.mrf.mxu1  ;;  %v3813_v4 = vld [vmem:[#allocation4 + $0xc8] sm:$0xff] }
 0x2a6   : > { %3427 = vst.msk [vmem:[#allocation4 + $0xe8] sm:$0xff] %vm627_vm2, %v3395_v59  ;;  %v3394_v3 = vadd.f32 %v3362_v17, %v3315_v9  ;;  %3874 = vst.msk [vmem:[#allocation4 + $0xb0] sm:$0xff] %vm627_vm2, %v3842_v39  ;;  %v3845_v44 = vadd.f32 %v8154_v7, %v3813_v4  ;;  %v8322_v59 = vpop.f32.mrf.mxu0  ;;  %v4249_v17 = vld [vmem:[#allocation4 + $0x38] sm:$0xff] }
 0x2a7   : > { %v6335_v24 = vpop.f32.mrf.mxu1  ;;  %v3812_v45 = vld [vmem:[#allocation4 + $0xc0] sm:$0xff] }
 0x2a8   : > { %3426 = vst.msk [vmem:[#allocation4 + $0xe0] sm:$0xff] %vm627_vm2, %v3394_v3  ;;  %v3397_v42 = vadd.f32 %v6335_v24, %v3365_v41  ;;  %3877 = vst.msk [vmem:[#allocation4 + $0xc8] sm:$0xff] %vm627_vm2, %v3845_v44  ;;  %v3844_v43 = vadd.f32 %v3812_v45, %v8159_v55  ;;  %v8330_v45 = vpop.f32.mrf.mxu0 }
 0x2a9   : > { %v3325_v38 = vpop.f32.mrf.mxu1  ;;  %v3815_v25 = vld [vmem:[#allocation4 + $0xd8] sm:$0xff] }
 0x2aa   : > { %3429 = vst.msk [vmem:[#allocation4 + $0xf8] sm:$0xff] %vm627_vm2, %v3397_v42  ;;  %v3396_v40 = vadd.f32 %v3364_v34, %v3325_v38  ;;  %3876 = vst.msk [vmem:[#allocation4 + $0xc0] sm:$0xff] %vm627_vm2, %v3844_v43  ;;  %v3847_v7 = vadd.f32 %v8164_v60, %v3815_v25  ;;  %v4251_v38 = vld [vmem:[#allocation4 + $0x48] sm:$0xff] }
 0x2ab   : > { %v6402_v22 = vpop.f32.mrf.mxu1  ;;  %v3814_v1 = vld [vmem:[#allocation4 + $0xd0] sm:$0xff] }
 0x2ac   : > { %3428 = vst.msk [vmem:[#allocation4 + $0xf0] sm:$0xff] %vm627_vm2, %v3396_v40  ;;  %v4275_v5 = vadd.f32 %v6402_v22, %v4243_v63  ;;  %3879 = vst.msk [vmem:[#allocation4 + $0xd8] sm:$0xff] %vm627_vm2, %v3847_v7  ;;  %v3846_v55 = vadd.f32 %v3814_v1, %v8169_v32  ;;  %v4250_v7 = vld [vmem:[#allocation4 + $0x40] sm:$0xff]  ;;  %v8338_v63 = vpop.f32.mrf.mxu0 }
 0x2ad   : > { %v4083_v11 = vpop.f32.mrf.mxu1  ;;  %v3817_v62 = vld [vmem:[#allocation4 + $0xe8] sm:$0xff] }
 0x2ae   : > { %4307 = vst.msk [vmem:[#allocation4 + $0x8] sm:$0xff] %vm627_vm2, %v4275_v5  ;;  %v4274_v54 = vadd.f32 %v4242_v26, %v4083_v11  ;;  %3878 = vst.msk [vmem:[#allocation4 + $0xd0] sm:$0xff] %vm627_vm2, %v3846_v55  ;;  %v3849_v60 = vadd.f32 %v8174_v35, %v3817_v62  ;;  %v4253_v55 = vld [vmem:[#allocation4 + $0x58] sm:$0xff] }
 0x2af   : > { %v6405_v37 = vpop.f32.mrf.mxu1  ;;  %v3816_v20 = vld [vmem:[#allocation4 + $0xe0] sm:$0xff] }
 0x2b0   : > { %4306 = vst.msk [vmem:[#allocation4] sm:$0xff] %vm627_vm2, %v4274_v54  ;;  %v4277_v53 = vadd.f32 %v6405_v37, %v4245_v56  ;;  %3881 = vst.msk [vmem:[#allocation4 + $0xe8] sm:$0xff] %vm627_vm2, %v3849_v60  ;;  %v3848_v32 = vadd.f32 %v3816_v20, %v8179_v19  ;;  %v4252_v54 = vld [vmem:[#allocation4 + $0x50] sm:$0xff]  ;;  %v4255_v37 = vld [vmem:[#allocation4 + $0x68] sm:$0xff]  ;;  %v8346_v56 = vpop.f32.mrf.mxu0 }
 0x2b1   : > { %v4093_v8 = vpop.f32.mrf.mxu1  ;;  %v3819_v23 = vld [vmem:[#allocation4 + $0xf8] sm:$0xff] }
 0x2b2   : > { %4309 = vst.msk [vmem:[#allocation4 + $0x18] sm:$0xff] %vm627_vm2, %v4277_v53  ;;  %v4276_v0 = vadd.f32 %v4244_v28, %v4093_v8  ;;  %3880 = vst.msk [vmem:[#allocation4 + $0xe0] sm:$0xff] %vm627_vm2, %v3848_v32  ;;  %v3851_v35 = vadd.f32 %v8184_v47, %v3819_v23 }
 0x2b3   : > { %v6408_v36 = vpop.f32.mrf.mxu1  ;;  %v3818_v52 = vld [vmem:[#allocation4 + $0xf0] sm:$0xff] }
 0x2b4   : > { %4308 = vst.msk [vmem:[#allocation4 + $0x10] sm:$0xff] %vm627_vm2, %v4276_v0  ;;  %v4279_v10 = vadd.f32 %v6408_v36, %v4247_v50  ;;  %3883 = vst.msk [vmem:[#allocation4 + $0xf8] sm:$0xff] %vm627_vm2, %v3851_v35  ;;  %v3850_v19 = vadd.f32 %v3818_v52, %v8189_v31  ;;  %v4254_v36 = vld [vmem:[#allocation4 + $0x60] sm:$0xff] }
 0x2b5   : > { %v4697_v6 = vld [vmem:[#allocation4 + $0x8] sm:$0xff]  ;;  %v4103_v51 = vpop.f32.mrf.mxu1 }
 0x2b6   : > { %v4729_v29 = vadd.f32 %v8194_v21, %v4697_v6  ;;  %4311 = vst.msk [vmem:[#allocation4 + $0x28] sm:$0xff] %vm627_vm2, %v4279_v10  ;;  %v4278_v47 = vadd.f32 %v4246_v58, %v4103_v51  ;;  %3882 = vst.msk [vmem:[#allocation4 + $0xf0] sm:$0xff] %vm627_vm2, %v3850_v19  ;;  %v4248_v21 = vld [vmem:[#allocation4 + $0x30] sm:$0xff]  ;;  %v8362_v51 = vpop.f32.mrf.mxu0 }
 0x2b7   : > { %v4696_v39 = vld [vmem:[#allocation4] sm:$0xff]  ;;  %v6411_v9 = vpop.f32.mrf.mxu1 }
 0x2b8   : > { %4761 = vst.msk [vmem:[#allocation4 + $0x8] sm:$0xff] %vm627_vm2, %v4729_v29  ;;  %v4728_v4 = vadd.f32 %v4696_v39, %v8202_v61  ;;  %4310 = vst.msk [vmem:[#allocation4 + $0x20] sm:$0xff] %vm627_vm2, %v4278_v47  ;;  %v4281_v31 = vadd.f32 %v6411_v9, %v4249_v17  ;;  %v4257_v47 = vld [vmem:[#allocation4 + $0x78] sm:$0xff] }
 0x2b9   : > { %v4699_v3 = vld [vmem:[#allocation4 + $0x18] sm:$0xff]  ;;  %v4113_v44 = vpop.f32.mrf.mxu1 }
 0x2ba   : > { %4760 = vst.msk [vmem:[#allocation4] sm:$0xff] %vm627_vm2, %v4728_v4  ;;  %v4731_v24 = vadd.f32 %v8210_v18, %v4699_v3  ;;  %4313 = vst.msk [vmem:[#allocation4 + $0x38] sm:$0xff] %vm627_vm2, %v4281_v31  ;;  %v4280_v41 = vadd.f32 %v4248_v21, %v4113_v44  ;;  %v4256_v21 = vld [vmem:[#allocation4 + $0x70] sm:$0xff] }
 0x2bb   : > { %v4698_v42 = vld [vmem:[#allocation4 + $0x10] sm:$0xff]  ;;  %v6414_v43 = vpop.f32.mrf.mxu1 }
 0x2bc   : > { %4763 = vst.msk [vmem:[#allocation4 + $0x18] sm:$0xff] %vm627_vm2, %v4731_v24  ;;  %v4730_v61 = vadd.f32 %v4698_v42, %v8218_v33  ;;  %4312 = vst.msk [vmem:[#allocation4 + $0x30] sm:$0xff] %vm627_vm2, %v4280_v41  ;;  %v4283_v34 = vadd.f32 %v6414_v43, %v4251_v38 }
 0x2bd   : > { %v4701_v25 = vld [vmem:[#allocation4 + $0x28] sm:$0xff]  ;;  %v4123_v40 = vpop.f32.mrf.mxu1 }
 0x2be   : > { %4762 = vst.msk [vmem:[#allocation4 + $0x10] sm:$0xff] %vm627_vm2, %v4730_v61  ;;  %v4733_v18 = vadd.f32 %v8226_v49, %v4701_v25  ;;  %4315 = vst.msk [vmem:[#allocation4 + $0x48] sm:$0xff] %vm627_vm2, %v4283_v34  ;;  %v4282_v22 = vadd.f32 %v4250_v7, %v4123_v40  ;;  %v8377_v61 = vpop.f32.mrf.mxu0  ;;  %v4259_v40 = vld [vmem:[#allocation4 + $0x88] sm:$0xff] }
 0x2bf   : > { %v4700_v1 = vld [vmem:[#allocation4 + $0x20] sm:$0xff]  ;;  %v6417_v5 = vpop.f32.mrf.mxu1  ;;  %v4793_v23 = vld [vmem:[#allocation4 + $0x8] sm:$0xff] }
 0x2c0   : > { %4765 = vst.msk [vmem:[#allocation4 + $0x28] sm:$0xff] %vm627_vm2, %v4733_v18  ;;  %v4732_v33 = vadd.f32 %v4700_v1, %v8234_v30  ;;  %4314 = vst.msk [vmem:[#allocation4 + $0x40] sm:$0xff] %vm627_vm2, %v4282_v22  ;;  %v4285_v11 = vadd.f32 %v6417_v5, %v4253_v55 }
 0x2c1   : > { %v4703_v26 = vld [vmem:[#allocation4 + $0x38] sm:$0xff]  ;;  %v4133_v62 = vpop.f32.mrf.mxu1  ;;  %v4792_v32 = vld [vmem:[#allocation4] sm:$0xff] }
 0x2c2   : > { %4764 = vst.msk [vmem:[#allocation4 + $0x20] sm:$0xff] %vm627_vm2, %v4732_v33  ;;  %v4735_v49 = vadd.f32 %v8242_v48, %v4703_v26  ;;  %4317 = vst.msk [vmem:[#allocation4 + $0x58] sm:$0xff] %vm627_vm2, %v4285_v11  ;;  %v4284_v60 = vadd.f32 %v4252_v54, %v4133_v62  ;;  %v8354_v48 = vld [vmem:[%s8537_s4 + $0x1] ss:$0 sm:$0xff]  ;;  %v4258_v26 = vld [vmem:[#allocation4 + $0x80] sm:$0xff] }
 0x2c3   : > { %v4702_v20 = vld [vmem:[#allocation4 + $0x30] sm:$0xff]  ;;  %v6420_v53 = vpop.f32.mrf.mxu1  ;;  %v4795_v30 = vld [vmem:[#allocation4 + $0x18] sm:$0xff]  ;;  %v4826_v19 = vadd.f32 %v8354_v48, %v4792_v32  ;;  %v4827_v9 = vadd.f32 %v8354_v48, %v4793_v23 }
 0x2c4   : > { %4767 = vst.msk [vmem:[#allocation4 + $0x38] sm:$0xff] %vm627_vm2, %v4735_v49  ;;  %v4734_v8 = vadd.f32 %v4702_v20, %v8250_v46  ;;  %4316 = vst.msk [vmem:[#allocation4 + $0x50] sm:$0xff] %vm627_vm2, %v4284_v60  ;;  %v4287_v28 = vadd.f32 %v6420_v53, %v4255_v37  ;;  %v4829_v52 = vadd.f32 %v8354_v48, %v4795_v30  ;;  %v8389_v53 = vpop.f32.mrf.mxu0 }
 0x2c5   : > { %v4705_v0 = vld [vmem:[#allocation4 + $0x48] sm:$0xff]  ;;  %v4143_v35 = vpop.f32.mrf.mxu1  ;;  %v4794_v50 = vld [vmem:[#allocation4 + $0x10] sm:$0xff]  ;;  %v4856_v38 = vmax.f32 %v4826_v19, 0.0  ;;  %v4857_v7 = vmax.f32 %v4827_v9, 0.0 }
 0x2c6   : > { %4766 = vst.msk [vmem:[#allocation4 + $0x30] sm:$0xff] %vm627_vm2, %v4734_v8  ;;  %v4737_v10 = vadd.f32 %v8258_v57, %v4705_v0  ;;  %4319 = vst.msk [vmem:[#allocation4 + $0x68] sm:$0xff] %vm627_vm2, %v4287_v28  ;;  %v4286_v46 = vadd.f32 %v4254_v36, %v4143_v35  ;;  %v4828_v6 = vadd.f32 %v8354_v48, %v4794_v50  ;;  %v4859_v41 = vmax.f32 %v4829_v52, 0.0  ;;  %v4261_v8 = vld [vmem:[#allocation4 + $0x98] sm:$0xff]  ;;  %v4263_v9 = vld [vmem:[#allocation4 + $0xa8] sm:$0xff] }
 0x2c7   : > { %v4704_v58 = vld [vmem:[#allocation4 + $0x40] sm:$0xff]  ;;  %v6423_v29 = vpop.f32.mrf.mxu1  ;;  %v4797_v39 = vld [vmem:[#allocation4 + $0x28] sm:$0xff] }
 0x2c8   : > { %4769 = vst.msk [vmem:[#allocation4 + $0x48] sm:$0xff] %vm627_vm2, %v4737_v10  ;;  %v4736_v17 = vadd.f32 %v4704_v58, %v8266_v14  ;;  %4318 = vst.msk [vmem:[#allocation4 + $0x60] sm:$0xff] %vm627_vm2, %v4286_v46  ;;  %v4289_v57 = vadd.f32 %v6423_v29, %v4257_v47  ;;  %v4858_v4 = vmax.f32 %v4828_v6, 0.0  ;;  %v8369_v31 = vadd.f32 %v8354_v48, %v4797_v39  ;;  %v4260_v10 = vld [vmem:[#allocation4 + $0x90] sm:$0xff]  ;;  %v8403_v29 = vpop.f32.mrf.mxu0 }
 0x2c9   : > { %v4707_v3 = vld [vmem:[#allocation4 + $0x58] sm:$0xff]  ;;  %v4153_v44 = vpop.f32.mrf.mxu1  ;;  %v4796_v24 = vld [vmem:[#allocation4 + $0x20] sm:$0xff]  ;;  %v4887_v62 = vmax.f32 %v4857_v7, %v4859_v41 }
 0x2ca   : > { %4768 = vst.msk [vmem:[#allocation4 + $0x40] sm:$0xff] %vm627_vm2, %v4736_v17  ;;  %v4739_v42 = vadd.f32 %v8274_v12, %v4707_v3  ;;  %4321 = vst.msk [vmem:[#allocation4 + $0x78] sm:$0xff] %vm627_vm2, %v4289_v57  ;;  %v4288_v43 = vadd.f32 %v4256_v21, %v4153_v44  ;;  %v8375_v14 = vadd.f32 %v8354_v48, %v4796_v24  ;;  %v4861_v18 = vmax.f32 %v8369_v31, 0.0  ;;  %v4262_v24 = vld [vmem:[#allocation4 + $0xa0] sm:$0xff] }
 0x2cb   : > { %v4706_v34 = vld [vmem:[#allocation4 + $0x50] sm:$0xff]  ;;  %v6426_v25 = vpop.f32.mrf.mxu1  ;;  %v4799_v22 = vld [vmem:[#allocation4 + $0x38] sm:$0xff]  ;;  %v4886_v55 = vmax.f32 %v4856_v38, %v4858_v4 }
 0x2cc   : > { %4771 = vst.msk [vmem:[#allocation4 + $0x58] sm:$0xff] %vm627_vm2, %v4739_v42  ;;  %v4738_v12 = vadd.f32 %v4706_v34, %v8282_v16  ;;  %4320 = vst.msk [vmem:[#allocation4 + $0x70] sm:$0xff] %vm627_vm2, %v4288_v43  ;;  %v4291_v1 = vadd.f32 %v6426_v25, %v4259_v40  ;;  %v4860_v5 = vmax.f32 %v8375_v14, 0.0  ;;  %v4833_v49 = vadd.f32 %v8354_v48, %v4799_v22  ;;  %v8414_v25 = vpop.f32.mrf.mxu0  ;;  %v4265_v22 = vld [vmem:[#allocation4 + $0xb8] sm:$0xff] }
 0x2cd   : > { %v4709_v33 = vld [vmem:[#allocation4 + $0x68] sm:$0xff]  ;;  %v4163_v11 = vpop.f32.mrf.mxu1  ;;  %v4798_v54 = vld [vmem:[#allocation4 + $0x30] sm:$0xff]  ;;  %v4901_v28 = vmax.f32 %v4887_v62, %v4861_v18 }
 0x2ce   : > { %4770 = vst.msk [vmem:[#allocation4 + $0x50] sm:$0xff] %vm627_vm2, %v4738_v12  ;;  %v4741_v60 = vadd.f32 %v8290_v15, %v4709_v33  ;;  %4323 = vst.msk [vmem:[#allocation4 + $0x88] sm:$0xff] %vm627_vm2, %v4291_v1  ;;  %v4290_v16 = vadd.f32 %v4258_v26, %v4163_v11  ;;  %v4900_v37 = vmax.f32 %v4886_v55, %v4860_v5  ;;  %v4863_v19 = vmax.f32 %v4833_v49, 0.0  ;;  %v4264_v26 = vld [vmem:[#allocation4 + $0xb0] sm:$0xff] }
 0x2cf   : > { %v4832_v20 = vadd.f32 %v8354_v48, %v4798_v54  ;;  %v4708_v32 = vld [vmem:[#allocation4 + $0x60] sm:$0xff]  ;;  %v6429_v30 = vpop.f32.mrf.mxu1  ;;  %v4801_v23 = vld [vmem:[#allocation4 + $0x48] sm:$0xff] }
 0x2d0   : > { %4773 = vst.msk [vmem:[#allocation4 + $0x68] sm:$0xff] %vm627_vm2, %v4741_v60  ;;  %v4740_v0 = vadd.f32 %v4708_v32, %v8298_v13  ;;  %4322 = vst.msk [vmem:[#allocation4 + $0x80] sm:$0xff] %vm627_vm2, %v4290_v16  ;;  %v4293_v15 = vadd.f32 %v6429_v30, %v4261_v8  ;;  %6512 = vmatprep.mubr.msk.f32.mxu1 %vm627_vm2, %v4900_v37  ;;  %v8396_v36 = vadd.f32 %v8354_v48, %v4801_v23  ;;  %v8428_v16 = vpop.f32.mrf.mxu0  ;;  %v4267_v32 = vld [vmem:[#allocation4 + $0xc8] sm:$0xff] }
 0x2d1   : > { %v4862_v35 = vmax.f32 %v4832_v20, 0.0  ;;  %v4711_v50 = vld [vmem:[#allocation4 + $0x78] sm:$0xff]  ;;  %v4173_v52 = vpop.f32.mrf.mxu1  ;;  %6513 = vmatmul.mubr.msk.f32.vlgmr.msra.gmra.mxu1 %vm627_vm2, %v4901_v28  ;;  %v4800_v46 = vld [vmem:[#allocation4 + $0x40] sm:$0xff]  ;;  %v4889_v41 = vmax.f32 %v4861_v18, %v4863_v19 }
 0x2d2   : > { %4772 = vst.msk [vmem:[#allocation4 + $0x60] sm:$0xff] %vm627_vm2, %v4740_v0  ;;  %v4743_v13 = vadd.f32 %v8306_v2, %v4711_v50  ;;  %4325 = vst.msk [vmem:[#allocation4 + $0x98] sm:$0xff] %vm627_vm2, %v4293_v15  ;;  %v4292_v6 = vadd.f32 %v4260_v10, %v4173_v52  ;;  %v4834_v58 = vadd.f32 %v8354_v48, %v4800_v46  ;;  %v4865_v17 = vmax.f32 %v8396_v36, 0.0  ;;  %v4266_v36 = vld [vmem:[#allocation4 + $0xc0] sm:$0xff] }
 0x2d3   : > { %v4710_v47 = vld [vmem:[#allocation4 + $0x70] sm:$0xff]  ;;  %v6432_v39 = vpop.f32.mrf.mxu1  ;;  %v4803_v57 = vld [vmem:[#allocation4 + $0x58] sm:$0xff]  ;;  %v4888_v3 = vmax.f32 %v4860_v5, %v4862_v35 }
 0x2d4   : > { %4775 = vst.msk [vmem:[#allocation4 + $0x78] sm:$0xff] %vm627_vm2, %v4743_v13  ;;  %v4742_v4 = vadd.f32 %v4710_v47, %v8314_v27  ;;  %4324 = vst.msk [vmem:[#allocation4 + $0x90] sm:$0xff] %vm627_vm2, %v4292_v6  ;;  %v4295_v2 = vadd.f32 %v6432_v39, %v4263_v9  ;;  %v4864_v31 = vmax.f32 %v4834_v58, 0.0  ;;  %v4837_v43 = vadd.f32 %v8354_v48, %v4803_v57  ;;  %v8439_v6 = vpop.f32.mrf.mxu0  ;;  %v4269_v39 = vld [vmem:[#allocation4 + $0xd8] sm:$0xff] }
 0x2d5   : > { %v4713_v44 = vld [vmem:[#allocation4 + $0x88] sm:$0xff]  ;;  %v4183_v21 = vpop.f32.mrf.mxu1  ;;  %v4802_v42 = vld [vmem:[#allocation4 + $0x50] sm:$0xff]  ;;  %v4903_v12 = vmax.f32 %v4889_v41, %v4865_v17 }
 0x2d6   : > { %4774 = vst.msk [vmem:[#allocation4 + $0x70] sm:$0xff] %vm627_vm2, %v4742_v4  ;;  %v4745_v14 = vadd.f32 %v8322_v59, %v4713_v44  ;;  %4327 = vst.msk [vmem:[#allocation4 + $0xa8] sm:$0xff] %vm627_vm2, %v4295_v2  ;;  %v4294_v38 = vadd.f32 %v4262_v24, %v4183_v21  ;;  %v4902_v27 = vmax.f32 %v4888_v3, %v4864_v31  ;;  %v4867_v54 = vmax.f32 %v4837_v43, 0.0  ;;  %v4268_v44 = vld [vmem:[#allocation4 + $0xd0] sm:$0xff]  ;;  %v4667_v43 = vpop.f32.mrf.mxu0 }
 0x2d7   : > { %v4836_v34 = vadd.f32 %v8354_v48, %v4802_v42  ;;  %v4712_v40 = vld [vmem:[#allocation4 + $0x80] sm:$0xff]  ;;  %v6435_v7 = vpop.f32.mrf.mxu1  ;;  %v4805_v18 = vld [vmem:[#allocation4 + $0x68] sm:$0xff] }
 0x2d8   : > { %4777 = vst.msk [vmem:[#allocation4 + $0x88] sm:$0xff] %vm627_vm2, %v4745_v14  ;;  %v4744_v1 = vadd.f32 %v4712_v40, %v8330_v45  ;;  %4326 = vst.msk [vmem:[#allocation4 + $0xa0] sm:$0xff] %vm627_vm2, %v4294_v38  ;;  %v4297_v59 = vadd.f32 %v6435_v7, %v4265_v22  ;;  %6515 = vmatprep.mubr.msk.f32.mxu1 %vm627_vm2, %v4902_v27  ;;  %v8421_v55 = vadd.f32 %v8354_v48, %v4805_v18  ;;  %v4271_v27 = vld [vmem:[#allocation4 + $0xe8] sm:$0xff] }
 0x2d9   : > { %v4866_v5 = vmax.f32 %v4836_v34, 0.0  ;;  %v4715_v33 = vld [vmem:[#allocation4 + $0x98] sm:$0xff]  ;;  %v4193_v11 = vpop.f32.mrf.mxu1  ;;  %6516 = vmatmul.mubr.msk.f32.gmra.mxu1 %vm627_vm2, %v4903_v12  ;;  %v4804_v62 = vld [vmem:[#allocation4 + $0x60] sm:$0xff]  ;;  %v4891_v50 = vmax.f32 %v4865_v17, %v4867_v54  ;;  %v6500_v54 = vpop.f32.mrf.mxu0 }
 0x2da   : > { %4776 = vst.msk [vmem:[#allocation4 + $0x80] sm:$0xff] %vm627_vm2, %v4744_v1  ;;  %v4747_v45 = vadd.f32 %v8338_v63, %v4715_v33  ;;  %4329 = vst.msk [vmem:[#allocation4 + $0xb8] sm:$0xff] %vm627_vm2, %v4297_v59  ;;  %v4296_v49 = vadd.f32 %v4264_v26, %v4193_v11  ;;  %v4838_v60 = vadd.f32 %v8354_v48, %v4804_v62  ;;  %v4869_v30 = vmax.f32 %v8421_v55, 0.0  ;;  %v4270_v59 = vld [vmem:[#allocation4 + $0xe0] sm:$0xff] }
 0x2db   : > { %v4714_v37 = vld [vmem:[#allocation4 + $0x90] sm:$0xff]  ;;  %v6438_v20 = vpop.f32.mrf.mxu1  ;;  %v4807_v8 = vld [vmem:[#allocation4 + $0x78] sm:$0xff]  ;;  %v4890_v0 = vmax.f32 %v4864_v31, %v4866_v5 }
 0x2dc   : > { %4779 = vst.msk [vmem:[#allocation4 + $0x98] sm:$0xff] %vm627_vm2, %v4747_v45  ;;  %v4746_v28 = vadd.f32 %v4714_v37, %v8346_v56  ;;  %4328 = vst.msk [vmem:[#allocation4 + $0xb0] sm:$0xff] %vm627_vm2, %v4296_v49  ;;  %v4299_v63 = vadd.f32 %v6438_v20, %v4267_v32  ;;  %v4868_v23 = vmax.f32 %v4838_v60, 0.0  ;;  %v4841_v10 = vadd.f32 %v8354_v48, %v4807_v8  ;;  %v4273_v60 = vld [vmem:[#allocation4 + $0xf8] sm:$0xff] }
 0x2dd   : > { %v4717_v15 = vld [vmem:[#allocation4 + $0xa8] sm:$0xff]  ;;  %v4203_v35 = vpop.f32.mrf.mxu1  ;;  %v4806_v52 = vld [vmem:[#allocation4 + $0x70] sm:$0xff]  ;;  %v4905_v9 = vmax.f32 %v4891_v50, %v4869_v30  ;;  %v4677_v50 = vpop.f32.mrf.mxu0 }
 0x2de   : > { %4778 = vst.msk [vmem:[#allocation4 + $0x90] sm:$0xff] %vm627_vm2, %v4746_v28  ;;  %v4749_v46 = vadd.f32 %v8362_v51, %v4717_v15  ;;  %4331 = vst.msk [vmem:[#allocation4 + $0xc8] sm:$0xff] %vm627_vm2, %v4299_v63  ;;  %v4298_v19 = vadd.f32 %v4266_v36, %v4203_v35  ;;  %v4904_v56 = vmax.f32 %v4890_v0, %v4868_v23  ;;  %v4871_v24 = vmax.f32 %v4841_v10, 0.0 }
 0x2df   : > { %v4840_v13 = vadd.f32 %v8354_v48, %v4806_v52  ;;  %v4716_v58 = vld [vmem:[#allocation4 + $0xa0] sm:$0xff]  ;;  %v6441_v47 = vpop.f32.mrf.mxu1  ;;  %v4809_v17 = vld [vmem:[#allocation4 + $0x88] sm:$0xff] }
 0x2e0   : > { %4781 = vst.msk [vmem:[#allocation4 + $0xa8] sm:$0xff] %vm627_vm2, %v4749_v46  ;;  %v4748_v57 = vadd.f32 %v4716_v58, %v8377_v61  ;;  %4330 = vst.msk [vmem:[#allocation4 + $0xc0] sm:$0xff] %vm627_vm2, %v4298_v19  ;;  %v4301_v51 = vadd.f32 %v6441_v47, %v4269_v39  ;;  %6518 = vmatprep.mubr.msk.f32.mxu1 %vm627_vm2, %v4904_v56  ;;  %v8446_v2 = vadd.f32 %v8354_v48, %v4809_v17  ;;  %v6503_v47 = vpop.f32.mrf.mxu0 }
 0x2e1   : > { %v4870_v4 = vmax.f32 %v4840_v13, 0.0  ;;  %v4719_v31 = vld [vmem:[#allocation4 + $0xb8] sm:$0xff]  ;;  %v4213_v3 = vpop.f32.mrf.mxu1  ;;  %6519 = vmatmul.mubr.msk.f32.gmra.mxu1 %vm627_vm2, %v4905_v9  ;;  %v4808_v21 = vld [vmem:[#allocation4 + $0x80] sm:$0xff]  ;;  %v4893_v5 = vmax.f32 %v4869_v30, %v4871_v24 }
 0x2e2   : > { %4780 = vst.msk [vmem:[#allocation4 + $0xa0] sm:$0xff] %vm627_vm2, %v4748_v57  ;;  %v4751_v61 = vadd.f32 %v8389_v53, %v4719_v31  ;;  %4333 = vst.msk [vmem:[#allocation4 + $0xd8] sm:$0xff] %vm627_vm2, %v4301_v51  ;;  %v4300_v41 = vadd.f32 %v4268_v44, %v4213_v3  ;;  %v4842_v42 = vadd.f32 %v8354_v48, %v4808_v21  ;;  %v4873_v34 = vmax.f32 %v8446_v2, 0.0 }
 0x2e3   : > { %v4718_v14 = vld [vmem:[#allocation4 + $0xb0] sm:$0xff]  ;;  %v6444_v38 = vpop.f32.mrf.mxu1  ;;  %v4811_v40 = vld [vmem:[#allocation4 + $0x98] sm:$0xff]  ;;  %v4892_v12 = vmax.f32 %v4868_v23, %v4870_v4 }
 0x2e4   : > { %4783 = vst.msk [vmem:[#allocation4 + $0xb8] sm:$0xff] %vm627_vm2, %v4751_v61  ;;  %v4750_v7 = vadd.f32 %v4718_v14, %v8403_v29  ;;  %4332 = vst.msk [vmem:[#allocation4 + $0xd0] sm:$0xff] %vm627_vm2, %v4300_v41  ;;  %v4303_v22 = vadd.f32 %v6444_v38, %v4271_v27  ;;  %v4872_v53 = vmax.f32 %v4842_v42, 0.0  ;;  %v4845_v33 = vadd.f32 %v8354_v48, %v4811_v40  ;;  %v4272_v23 = vld [vmem:[#allocation4 + $0xf0] sm:$0xff]  ;;  %v4687_v61 = vpop.f32.mrf.mxu0 }
 0x2e5   : > { %v4721_v18 = vld [vmem:[#allocation4 + $0xc8] sm:$0xff]  ;;  %v4223_v1 = vpop.f32.mrf.mxu1  ;;  %v4810_v55 = vld [vmem:[#allocation4 + $0x90] sm:$0xff]  ;;  %v4907_v37 = vmax.f32 %v4893_v5, %v4873_v34 }
 0x2e6   : > { %4782 = vst.msk [vmem:[#allocation4 + $0xb0] sm:$0xff] %vm627_vm2, %v4750_v7  ;;  %v4753_v11 = vadd.f32 %v8414_v25, %v4721_v18  ;;  %4335 = vst.msk [vmem:[#allocation4 + $0xe8] sm:$0xff] %vm627_vm2, %v4303_v22  ;;  %v4302_v26 = vadd.f32 %v4270_v59, %v4223_v1  ;;  %v4906_v29 = vmax.f32 %v4892_v12, %v4872_v53  ;;  %v4875_v15 = vmax.f32 %v4845_v33, 0.0 }
 0x2e7   : > { %v4844_v62 = vadd.f32 %v8354_v48, %v4810_v55  ;;  %v4720_v45 = vld [vmem:[#allocation4 + $0xc0] sm:$0xff]  ;;  %v6447_v49 = vpop.f32.mrf.mxu1  ;;  %v4813_v20 = vld [vmem:[#allocation4 + $0xa8] sm:$0xff] }
 0x2e8   : > { %4785 = vst.msk [vmem:[#allocation4 + $0xc8] sm:$0xff] %vm627_vm2, %v4753_v11  ;;  %v4752_v32 = vadd.f32 %v4720_v45, %v8428_v16  ;;  %4334 = vst.msk [vmem:[#allocation4 + $0xe0] sm:$0xff] %vm627_vm2, %v4302_v26  ;;  %v4305_v30 = vadd.f32 %v6447_v49, %v4273_v60  ;;  %6521 = vmatprep.mubr.msk.f32.mxu1 %vm627_vm2, %v4906_v29  ;;  %v4847_v8 = vadd.f32 %v8354_v48, %v4813_v20 }
 0x2e9   : > { %v4874_v25 = vmax.f32 %v4844_v62, 0.0  ;;  %v4723_v28 = vld [vmem:[#allocation4 + $0xd8] sm:$0xff]  ;;  %v4233_v63 = vpop.f32.mrf.mxu1  ;;  %6522 = vmatmul.mubr.msk.f32.gmra.mxu1 %vm627_vm2, %v4907_v37  ;;  %v4812_v0 = vld [vmem:[#allocation4 + $0xa0] sm:$0xff]  ;;  %v4895_v39 = vmax.f32 %v4873_v34, %v4875_v15 }
 0x2ea   : > { %4784 = vst.msk [vmem:[#allocation4 + $0xc0] sm:$0xff] %vm627_vm2, %v4752_v32  ;;  %v4755_v35 = vadd.f32 %v8439_v6, %v4723_v28  ;;  %4337 = vst.msk [vmem:[#allocation4 + $0xf8] sm:$0xff] %vm627_vm2, %v4305_v30  ;;  %v4304_v16 = vadd.f32 %v4272_v23, %v4233_v63  ;;  %v4846_v36 = vadd.f32 %v8354_v48, %v4812_v0  ;;  %v4877_v10 = vmax.f32 %v4847_v8, 0.0  ;;  %v5545_v32 = vld [vmem:[%s8537_s4 + $0x2] ss:$0 sm:$0xff] }
 0x2eb   : > { %v4722_v52 = vld [vmem:[#allocation4 + $0xd0] sm:$0xff]  ;;  %v4815_v46 = vld [vmem:[#allocation4 + $0xb8] sm:$0xff]  ;;  %v4894_v13 = vmax.f32 %v4872_v53, %v4874_v25 }
 0x2ec   : > { %4787 = vst.msk [vmem:[#allocation4 + $0xd8] sm:$0xff] %vm627_vm2, %v4755_v35  ;;  %v4754_v19 = vadd.f32 %v4722_v52, %v4667_v43  ;;  %4336 = vst.msk [vmem:[#allocation4 + $0xf0] sm:$0xff] %vm627_vm2, %v4304_v16  ;;  %v4876_v56 = vmax.f32 %v4846_v36, 0.0  ;;  %v4849_v9 = vadd.f32 %v8354_v48, %v4815_v46  ;;  %v4909_v2 = vmax.f32 %v4895_v39, %v4877_v10 }
 0x2ed   : > { %v4725_v58 = vld [vmem:[#allocation4 + $0xe8] sm:$0xff]  ;;  %v4814_v6 = vld [vmem:[#allocation4 + $0xb0] sm:$0xff] }
 0x2ee   : > { %4786 = vst.msk [vmem:[#allocation4 + $0xd0] sm:$0xff] %vm627_vm2, %v4754_v19  ;;  %v4757_v17 = vadd.f32 %v6500_v54, %v4725_v58  ;;  %v4908_v57 = vmax.f32 %v4894_v13, %v4876_v56  ;;  %v4848_v51 = vadd.f32 %v8354_v48, %v4814_v6  ;;  %v4879_v42 = vmax.f32 %v4849_v9, 0.0 }
 0x2ef   : > { %v4724_v4 = vld [vmem:[#allocation4 + $0xe0] sm:$0xff]  ;;  %v4817_v31 = vld [vmem:[#allocation4 + $0xc8] sm:$0xff] }
 0x2f0   : > { %4789 = vst.msk [vmem:[#allocation4 + $0xe8] sm:$0xff] %vm627_vm2, %v4757_v17  ;;  %v4756_v3 = vadd.f32 %v4724_v4, %v4677_v50  ;;  %6524 = vmatprep.mubr.msk.f32.mxu1 %vm627_vm2, %v4908_v57  ;;  %v4878_v44 = vmax.f32 %v4848_v51, 0.0  ;;  %v4851_v21 = vadd.f32 %v8354_v48, %v4817_v31  ;;  %v4897_v53 = vmax.f32 %v4877_v10, %v4879_v42 }
 0x2f1   : > { %v4727_v24 = vld [vmem:[#allocation4 + $0xf8] sm:$0xff]  ;;  %6525 = vmatmul.mubr.msk.f32.gmra.mxu1 %vm627_vm2, %v4909_v2  ;;  %v4816_v41 = vld [vmem:[#allocation4 + $0xc0] sm:$0xff] }
 0x2f2   : > { %4788 = vst.msk [vmem:[#allocation4 + $0xe0] sm:$0xff] %vm627_vm2, %v4756_v3  ;;  %v4759_v43 = vadd.f32 %v6503_v47, %v4727_v24  ;;  %v4850_v14 = vadd.f32 %v8354_v48, %v4816_v41  ;;  %v4881_v27 = vmax.f32 %v4851_v21, 0.0  ;;  %v4896_v22 = vmax.f32 %v4876_v56, %v4878_v44 }
 0x2f3   : > { %v4726_v38 = vld [vmem:[#allocation4 + $0xf0] sm:$0xff]  ;;  %v4819_v34 = vld [vmem:[#allocation4 + $0xd8] sm:$0xff] }
 0x2f4   : > { %4791 = vst.msk [vmem:[#allocation4 + $0xf8] sm:$0xff] %vm627_vm2, %v4759_v43  ;;  %v4758_v40 = vadd.f32 %v4726_v38, %v4687_v61  ;;  %v4880_v7 = vmax.f32 %v4850_v14, 0.0  ;;  %v4853_v18 = vadd.f32 %v8354_v48, %v4819_v34  ;;  %v4911_v5 = vmax.f32 %v4897_v53, %v4881_v27 }
 0x2f5   : > { %v4818_v12 = vld [vmem:[#allocation4 + $0xd0] sm:$0xff] }
 0x2f6   : > { %4790 = vst.msk [vmem:[#allocation4 + $0xf0] sm:$0xff] %vm627_vm2, %v4758_v40  ;;  %v4910_v1 = vmax.f32 %v4896_v22, %v4880_v7  ;;  %v4852_v59 = vadd.f32 %v8354_v48, %v4818_v12  ;;  %v4883_v29 = vmax.f32 %v4853_v18, 0.0 }
 0x2f7   : > { %v4821_v55 = vld [vmem:[#allocation4 + $0xe8] sm:$0xff] }
 0x2f8   : > { %6527 = vmatprep.mubr.msk.f32.mxu1 %vm627_vm2, %v4910_v1  ;;  %v4882_v33 = vmax.f32 %v4852_v59, 0.0  ;;  %v4855_v11 = vadd.f32 %v8354_v48, %v4821_v55  ;;  %v4899_v60 = vmax.f32 %v4881_v27, %v4883_v29 }
 0x2f9   : > { %6528 = vmatmul.mubr.msk.f32.gmra.mxu1 %vm627_vm2, %v4911_v5  ;;  %v4820_v26 = vld [vmem:[#allocation4 + $0xe0] sm:$0xff] }
 0x2fa   : > { %v4854_v62 = vadd.f32 %v8354_v48, %v4820_v26  ;;  %v4885_v54 = vmax.f32 %v4855_v11, 0.0  ;;  %v4898_v49 = vmax.f32 %v4880_v7, %v4882_v33 }
 0x2fc   : > { %v4884_v45 = vmax.f32 %v4854_v62, 0.0  ;;  %v4913_v20 = vmax.f32 %v4899_v60, %v4885_v54 }
 0x2fe   : > { %v4912_v37 = vmax.f32 %v4898_v49, %v4884_v45 }
 0x300   : > { %6530 = vmatprep.mubr.msk.f32.mxu1 %vm627_vm2, %v4912_v37 }
 0x301   : > { %6531 = vmatmul.mubr.msk.f32.gmra.mxu1 %vm627_vm2, %v4913_v20 }
 0x391   : > { %v6514_v30 = vpop.f32.mrf.mxu1 }
 0x392   : > { %v5036_v25 = vadd.f32 %v6514_v30, %v5545_v32 }
 0x393   : > { %v5030_v48 = vpop.f32.mrf.mxu1 }
 0x394   : > { %v5100_v8 = vmax.f32 %v5036_v25, 0.0  ;;  %v5031_v28 = vadd.f32 %v5545_v32, %v5030_v48 }
 0x396   : > { %5114 = vst.msk [vmem:[%s8500_s6 + $0x8] sm:$0xff] %vm627_vm2, %v5100_v8  ;;  %v5099_v63 = vmax.f32 %v5031_v28, 0.0 }
 0x398   : > { %5113 = vst.msk [vmem:[%s8500_s6] sm:$0xff] %vm627_vm2, %v5099_v63 }
 0x399   : > { %v6517_v23 = vpop.f32.mrf.mxu1 }
 0x39a   : > { %v5046_v0 = vadd.f32 %v6517_v23, %v5545_v32 }
 0x39b   : > { %v5040_v15 = vpop.f32.mrf.mxu1 }
 0x39c   : > { %v5102_v35 = vmax.f32 %v5046_v0, 0.0  ;;  %v5041_v16 = vadd.f32 %v5545_v32, %v5040_v15 }
 0x39e   : > { %5116 = vst.msk [vmem:[%s8500_s6 + $0x18] sm:$0xff] %vm627_vm2, %v5102_v35  ;;  %v5101_v36 = vmax.f32 %v5041_v16, 0.0 }
 0x3a0   : > { %5115 = vst.msk [vmem:[%s8500_s6 + $0x10] sm:$0xff] %vm627_vm2, %v5101_v36 }
 0x3a1   : > { %v6520_v50 = vpop.f32.mrf.mxu1 }
 0x3a2   : > { %v5056_v52 = vadd.f32 %v6520_v50, %v5545_v32 }
 0x3a3   : > { %v5050_v10 = vpop.f32.mrf.mxu1 }
 0x3a4   : > { %v5104_v46 = vmax.f32 %v5056_v52, 0.0  ;;  %v5051_v19 = vadd.f32 %v5545_v32, %v5050_v10 }
 0x3a6   : > { %5118 = vst.msk [vmem:[%s8500_s6 + $0x28] sm:$0xff] %vm627_vm2, %v5104_v46  ;;  %v5103_v56 = vmax.f32 %v5051_v19, 0.0 }
 0x3a8   : > { %5117 = vst.msk [vmem:[%s8500_s6 + $0x20] sm:$0xff] %vm627_vm2, %v5103_v56 }
 0x3a9   : > { %v6523_v13 = vpop.f32.mrf.mxu1 }
 0x3aa   : > { %v5066_v58 = vadd.f32 %v6523_v13, %v5545_v32 }
 0x3ab   : > { %v5060_v47 = vpop.f32.mrf.mxu1 }
 0x3ac   : > { %v5106_v39 = vmax.f32 %v5066_v58, 0.0  ;;  %v5061_v6 = vadd.f32 %v5545_v32, %v5060_v47 }
 0x3ae   : > { %5120 = vst.msk [vmem:[%s8500_s6 + $0x38] sm:$0xff] %vm627_vm2, %v5106_v39  ;;  %v5105_v9 = vmax.f32 %v5061_v6, 0.0 }
 0x3b0   : > { %5119 = vst.msk [vmem:[%s8500_s6 + $0x30] sm:$0xff] %vm627_vm2, %v5105_v9 }
 0x3b1   : > { %v6526_v17 = vpop.f32.mrf.mxu1 }
 0x3b2   : > { %v5076_v57 = vadd.f32 %v6526_v17, %v5545_v32 }
 0x3b3   : > { %v5070_v51 = vpop.f32.mrf.mxu1 }
 0x3b4   : > { %v5108_v4 = vmax.f32 %v5076_v57, 0.0  ;;  %v5071_v2 = vadd.f32 %v5545_v32, %v5070_v51 }
 0x3b6   : > { %5122 = vst.msk [vmem:[%s8500_s6 + $0x48] sm:$0xff] %vm627_vm2, %v5108_v4  ;;  %v5107_v31 = vmax.f32 %v5071_v2, 0.0 }
 0x3b8   : > { %5121 = vst.msk [vmem:[%s8500_s6 + $0x40] sm:$0xff] %vm627_vm2, %v5107_v31 }
 0x3b9   : > { %v6529_v3 = vpop.f32.mrf.mxu1 }
 0x3ba   : > { %v5086_v44 = vadd.f32 %v6529_v3, %v5545_v32 }
 0x3bb   : > { %v5080_v21 = vpop.f32.mrf.mxu1 }
 0x3bc   : > { %v5110_v24 = vmax.f32 %v5086_v44, 0.0  ;;  %v5081_v61 = vadd.f32 %v5545_v32, %v5080_v21 }
 0x3be   : > { %5124 = vst.msk [vmem:[%s8500_s6 + $0x58] sm:$0xff] %vm627_vm2, %v5110_v24  ;;  %v5109_v41 = vmax.f32 %v5081_v61, 0.0 }
 0x3c0   : > { %5123 = vst.msk [vmem:[%s8500_s6 + $0x50] sm:$0xff] %vm627_vm2, %v5109_v41 }
 0x3c1   : > { %v6532_v42 = vpop.f32.mrf.mxu1 }
 0x3c2   : > { %v5096_v43 = vadd.f32 %v6532_v42, %v5545_v32 }
 0x3c3   : > { %v5090_v14 = vpop.f32.mrf.mxu1 }
 0x3c4   : > { %v5112_v38 = vmax.f32 %v5096_v43, 0.0  ;;  %v5091_v27 = vadd.f32 %v5545_v32, %v5090_v14 }
 0x3c6   : > { %5126 = vst.msk [vmem:[%s8500_s6 + $0x68] sm:$0xff] %vm627_vm2, %v5112_v38  ;;  %v5111_v34 = vmax.f32 %v5091_v27, 0.0 }
 0x3c8   : > { %5125 = vst.msk [vmem:[%s8500_s6 + $0x60] sm:$0xff] %vm627_vm2, %v5111_v34 }
 0x3c9 PF: > { %s15_s18 = sadd.s32 1, %s6557_s18  }
 0x3ca   : > { %p12_p4 = scmp.ge.s32.totalorder %s15_s18, 4  }
 0x3cc   :  { %14 = sbr.rel (!%p12_p4) target bundleno = 1 (0x1), region = 81 }

</bundles_post_ra>
